<compile_context>
chip_gen: v7x
topology: tpu7x:2x2x1
jax: 0.10.0
libtpu: 0.0.40
codegen_flags: <defaults>
</compile_context>

<pallas_src>
import functools
import math

import jax
import jax.numpy as jnp
from jax.experimental import pallas as pl
from jax.experimental.pallas import tpu as pltpu


def _layer_norm(x, w, b, eps=1e-5):
    mu = jnp.mean(x, axis=-1, keepdims=True)
    var = jnp.mean((x - mu) ** 2, axis=-1, keepdims=True)
    return (x - mu) * jax.lax.rsqrt(var + eps) * w + b


def background_encoder_kernel(
    emb_ref, feat_ref, goal_ref, keep_ref,
    wpg_ref, bpg_ref,
    win_ref, bin_ref, wout_ref, bout_ref,
    ln1w_ref, ln1b_ref, ln2w_ref, ln2b_ref,
    w1_ref, b1_ref, w2_ref, b2_ref,
    out_ref,
    x_ref,
    *, nhead,
):
    nb, sl, d = emb_ref.shape          # (seq_block, sl, d)
    fd = feat_ref.shape[-1]
    S = sl + 1                         # goal token appended at row sl
    hd = d // nhead
    M = nb * S

    emb = emb_ref[...].astype(jnp.float32)      # (nb, sl, d)
    feat = feat_ref[...].astype(jnp.float32)    # (nb, sl, fd)
    goal = goal_ref[...].astype(jnp.float32)    # (nb, 1, d)
    keep = keep_ref[...]                        # (nb, 1, S) f32, 1 = valid key

    # ---- StateEncoder (FiLM): Linear(feat) -> (gamma, beta); tanh(gamma*emb + beta).
    # fd is tiny/odd (7), so do fd VPU broadcast-FMAs instead of a K=7 MXU dot. ----
    wpg = wpg_ref[...]                          # (fd, 2d) f32
    gb = bpg_ref[...].reshape(1, 1, 2 * d)      # bias; broadcasts on first add
    for f in range(fd):
        gb = gb + feat[:, :, f:f + 1] * wpg[f].reshape(1, 1, 2 * d)
    shifted = jnp.tanh(gb[..., :d] * emb + gb[..., d:])     # (nb, sl, d)

    # ---- assemble (nb, S, d) token sequence; goal row (index sl) bypasses FiLM ----
    x_ref[:, :sl, :] = shifted
    x_ref[:, sl:, :] = goal
    x2 = x_ref[...].reshape(M, d)               # f32 residual stream

    # ---- TransformerEncoderLayer (norm_first=True, activation=relu, eval) ----
    h = _layer_norm(x2, ln1w_ref[...], ln1b_ref[...])
    qkv = jnp.dot(h.astype(jnp.bfloat16), win_ref[...],
                  preferred_element_type=jnp.float32) + bin_ref[...]
    qkv = qkv.reshape(nb, S, 3 * d)
    q, k, v = qkv[..., :d], qkv[..., d:2 * d], qkv[..., 2 * d:]

    # per-head attention: single-batch-dim einsums on direct lane slices (no
    # batch-concat copies, no keep replication); 1/sqrt(hd) pre-folded into win/bin.
    head_out = []
    for hix in range(nhead):
        lo, hi = hix * hd, (hix + 1) * hd
        s = jnp.einsum('bqd,bkd->bqk',
                       q[..., lo:hi].astype(jnp.bfloat16),
                       k[..., lo:hi].astype(jnp.bfloat16),
                       preferred_element_type=jnp.float32)          # (nb, S, S)
        s = jnp.where(keep > 0.0, s, -1e30)      # key-padding mask (broadcast over q)
        s = s - jnp.max(s, axis=-1, keepdims=True)
        p = jnp.exp(s)
        p = p * pl.reciprocal(jnp.sum(p, axis=-1, keepdims=True), approx=True)
        head_out.append(jnp.einsum('bqk,bkd->bqd',
                                   p.astype(jnp.bfloat16),
                                   v[..., lo:hi].astype(jnp.bfloat16),
                                   preferred_element_type=jnp.float32))
    attn = jnp.concatenate(head_out, axis=-1).reshape(M, d)
    attn = jnp.dot(attn.astype(jnp.bfloat16), wout_ref[...],
                   preferred_element_type=jnp.float32) + bout_ref[...]
    x2 = x2 + attn                               # dropout1 = identity (eval)

    # feed-forward block
    h2 = _layer_norm(x2, ln2w_ref[...], ln2b_ref[...])
    ff = jnp.dot(h2.astype(jnp.bfloat16), w1_ref[...],
                 preferred_element_type=jnp.float32) + b1_ref[...]
    ff = jnp.maximum(ff, 0.0)
    ff = jnp.dot(ff.astype(jnp.bfloat16), w2_ref[...],
                 preferred_element_type=jnp.float32) + b2_ref[...]
    x2 = x2 + ff                                 # dropout2 = identity (eval)

    out_ref[...] = x2.reshape(nb, S, d).astype(out_ref.dtype)


def init_params(key, d, fd, d_ff):
    ks = jax.random.split(key, 8)

    def nrm(k, shape, scale=0.05):
        return scale * jax.random.normal(k, shape, jnp.float32)

    return dict(
        wpg_t=nrm(ks[0], (fd, 2 * d)),          # StateEncoder.param_gen.weight^T
        bpg=nrm(ks[1], (1, 2 * d)),             # StateEncoder.param_gen.bias
        win_t=nrm(ks[2], (d, 3 * d)),           # MHA in_proj_weight^T
        bin=jnp.zeros((1, 3 * d), jnp.float32),
        wout_t=nrm(ks[3], (d, d)),              # MHA out_proj.weight^T
        bout=jnp.zeros((1, d), jnp.float32),
        ln1w=jnp.ones((1, d), jnp.float32),
        ln1b=jnp.zeros((1, d), jnp.float32),
        ln2w=jnp.ones((1, d), jnp.float32),
        ln2b=jnp.zeros((1, d), jnp.float32),
        w1_t=nrm(ks[4], (d, d_ff)),             # linear1.weight^T
        b1=nrm(ks[5], (1, d_ff)),
        w2_t=nrm(ks[6], (d_ff, d)),             # linear2.weight^T
        b2=nrm(ks[7], (1, d)),
    )


def _pick_seq_block(n, S, target_rows=512):
    """Sequences per grid step.  Targets ~target_rows token rows per step (amortizes
    ~0.35us/step overhead), prefers exact divisors of n (no pad pass) and an even
    grid with >= 2 steps (keeps both v7x TensorCores busy)."""
    if n <= 1:
        return max(n, 1)
    target = max(1, min(target_rows // S, n // 2))
    lo = max(1, target // 2)
    best, best_key = 1, None
    for blk in range(lo, target + 1):
        g = pl.cdiv(n, blk)
        waste = g * blk - n
        key = (-waste, g % 2 == 0, blk)     # no padding > even grid > bigger block
        if best_key is None or key > best_key:
            best, best_key = blk, key
    return best


def background_encoder_forward(params, agent_emb, agent_feature, goal_emb,
                               agent_mask=None, *, nhead=4, seq_block=None,
                               out_dtype=jnp.bfloat16):
    bz, t, sl, d = agent_emb.shape
    fd = agent_feature.shape[-1]
    n = bz * t
    S = sl + 1
    hd = d // nhead

    # ---- no big-tensor copies in the wrapper: reshapes only + tiny goal/mask prep ----
    emb = agent_emb.reshape(n, sl, d)
    feat = agent_feature.reshape(n, sl, fd)
    goal = jnp.broadcast_to(goal_emb[:, None, None, :], (bz, t, 1, d)).reshape(n, 1, d)
    if agent_mask is None:
        keep = jnp.ones((n, 1, S), jnp.float32)
    else:
        keep = jnp.concatenate(                      # tiny: n*S floats total
            [agent_mask.reshape(n, 1, sl).astype(jnp.float32),
             jnp.ones((n, 1, 1), jnp.float32)], axis=-1)

    if seq_block is None:
        seq_block = _pick_seq_block(n, S)
    seq_block = max(1, min(seq_block, n))
    n_pad = pl.cdiv(n, seq_block) * seq_block
    if n_pad != n:          # fallback only; _pick_seq_block prefers exact divisors
        pad = n_pad - n     # padded rows have all-zero keep -> numerically safe
        emb = jnp.pad(emb, ((0, pad), (0, 0), (0, 0)))
        feat = jnp.pad(feat, ((0, pad), (0, 0), (0, 0)))
        goal = jnp.pad(goal, ((0, pad), (0, 0), (0, 0)))
        keep = jnp.pad(keep, ((0, pad), (0, 0), (0, 0)))

    # fold 1/sqrt(hd) into the q columns of in_proj weight & bias (trace-time const)
    scale = 1.0 / math.sqrt(hd)
    win_t = params['win_t'].at[:, :d].multiply(scale).astype(jnp.bfloat16)
    bin_s = params['bin'].at[:, :d].multiply(scale)

    weights = [
        params['wpg_t'], params['bpg'],
        win_t, bin_s,
        params['wout_t'].astype(jnp.bfloat16), params['bout'],
        params['ln1w'], params['ln1b'], params['ln2w'], params['ln2b'],
        params['w1_t'].astype(jnp.bfloat16), params['b1'],
        params['w2_t'].astype(jnp.bfloat16), params['b2'],
    ]

    def blk_spec(shape):
        return pl.BlockSpec(shape, lambda i: (i, 0, 0))

    def full_spec(arr):
        return pl.BlockSpec(arr.shape, lambda i, _nd=arr.ndim: (0,) * _nd)

    in_specs = [
        blk_spec((seq_block, sl, d)),     # agent embeddings (no goal row)
        blk_spec((seq_block, sl, fd)),    # agent features
        blk_spec((seq_block, 1, d)),      # per-sequence goal row
        blk_spec((seq_block, 1, S)),      # key-keep mask (goal column included)
    ] + [full_spec(w) for w in weights]

    out = pl.pallas_call(
        functools.partial(background_encoder_kernel, nhead=nhead),
        out_shape=jax.ShapeDtypeStruct((n_pad, S, d), out_dtype),
        grid=(n_pad // seq_block,),
        in_specs=in_specs,
        out_specs=pl.BlockSpec((seq_block, S, d), lambda i: (i, 0, 0)),
        scratch_shapes=[pltpu.VMEM((seq_block, S, d), jnp.float32)],
        compiler_params=pltpu.CompilerParams(
            dimension_semantics=("parallel",),
            vmem_limit_bytes=32 * 1024 * 1024),
    )(emb, feat, goal, keep, *weights)

    return out[:n].reshape(bz, t, S, d)


def reference_forward(params, agent_emb, agent_feature, goal_emb, agent_mask, nhead=4):
    """Pure-JAX f32 reference for self-consistency checking."""
    bz, t, sl, d = agent_emb.shape
    fd = agent_feature.shape[-1]
    n, S, hd = bz * t, sl + 1, d // nhead

    emb = agent_emb.reshape(n, sl, d)
    feat = agent_feature.reshape(n, sl, fd)
    gb = feat @ params['wpg_t'] + params['bpg']
    shifted = jnp.tanh(gb[..., :d] * emb + gb[..., d:])
    goal = jnp.repeat(goal_emb[:, None, :], t, axis=1).reshape(n, 1, d)
    x = jnp.concatenate([shifted, goal], axis=1)
    keep = jnp.concatenate([agent_mask.reshape(n, sl).astype(jnp.float32),
                            jnp.ones((n, 1), jnp.float32)], axis=1)

    def ln(x, w, b):
        mu = x.mean(-1, keepdims=True)
        var = ((x - mu) ** 2).mean(-1, keepdims=True)
        return (x - mu) * jax.lax.rsqrt(var + 1e-5) * w + b

    h = ln(x, params['ln1w'], params['ln1b'])
    qkv = h @ params['win_t'] + params['bin']
    q, k, v = qkv[..., :d], qkv[..., d:2 * d], qkv[..., 2 * d:]
    qh = q.reshape(n, S, nhead, hd).transpose(0, 2, 1, 3)
    kh = k.reshape(n, S, nhead, hd).transpose(0, 2, 1, 3)
    vh = v.reshape(n, S, nhead, hd).transpose(0, 2, 1, 3)
    s = jnp.einsum('nhqd,nhkd->nhqk', qh, kh) / math.sqrt(hd)
    s = jnp.where(keep[:, None, None, :] > 0, s, -1e30)
    p = jax.nn.softmax(s, axis=-1)
    attn = jnp.einsum('nhqk,nhkd->nhqd', p, vh).transpose(0, 2, 1, 3).reshape(n, S, d)
    x = x + (attn @ params['wout_t'] + params['bout'])
    h2 = ln(x, params['ln2w'], params['ln2b'])
    ff = jnp.maximum(h2 @ params['w1_t'] + params['b1'], 0.0) @ params['w2_t'] + params['b2']
    x = x + ff
    return x.reshape(bz, t, S, d)


if __name__ == "__main__":
    key = jax.random.PRNGKey(0)
    bz, t, sl, d_pos, feat_dim, nhead = 2, 4, 7, 128, 7, 4

    kp, ke, kf, kg, km = jax.random.split(key, 5)
    params = init_params(kp, d_pos, feat_dim, d_pos)   # dim_feedforward == pos_embed_dim
    agent_emb = jax.random.normal(ke, (bz, t, sl, d_pos), jnp.float32)
    agent_feature = jax.random.normal(kf, (bz, t, sl, feat_dim), jnp.float32)
    goal_emb = jax.random.normal(kg, (bz, d_pos), jnp.float32)
    agent_mask = jax.random.uniform(km, (bz, t, sl)) > 0.3   # True = valid agent

    out = background_encoder_forward(params, agent_emb, agent_feature, goal_emb,
                                     agent_mask, nhead=nhead)
    out = jax.block_until_ready(out)

    assert out.shape == (bz, t, sl + 1, d_pos), out.shape
    out_f32 = out.astype(jnp.float32)
    assert bool(jnp.all(jnp.isfinite(out_f32))), "non-finite output"

    ref = reference_forward(params, agent_emb, agent_feature, goal_emb, agent_mask, nhead)
    max_err = float(jnp.max(jnp.abs(out_f32 - ref)))
    # bf16 MXU operands + bf16 output + approx softmax reciprocal vs pure-f32 reference.
    assert max_err < 1e-1, f"mismatch vs reference: {max_err}"
    print("KERNEL_OK")
</pallas_src>

<mosaic_0001>
module attributes {stable_mosaic.version = 11 : i64} {
  func.func @background_encoder_kernel(%arg0: i32, %arg1: memref<4x7x128xf32, #tpu.memory_space<vmem>>, %arg2: memref<4x7x7xf32, #tpu.memory_space<vmem>>, %arg3: memref<4x1x128xf32, #tpu.memory_space<vmem>>, %arg4: memref<4x1x8xf32, #tpu.memory_space<vmem>>, %arg5: memref<7x256xf32, #tpu.memory_space<vmem>>, %arg6: memref<1x256xf32, #tpu.memory_space<vmem>>, %arg7: memref<128x384xbf16, #tpu.memory_space<vmem>>, %arg8: memref<1x384xf32, #tpu.memory_space<vmem>>, %arg9: memref<128x128xbf16, #tpu.memory_space<vmem>>, %arg10: memref<1x128xf32, #tpu.memory_space<vmem>>, %arg11: memref<1x128xf32, #tpu.memory_space<vmem>>, %arg12: memref<1x128xf32, #tpu.memory_space<vmem>>, %arg13: memref<1x128xf32, #tpu.memory_space<vmem>>, %arg14: memref<1x128xf32, #tpu.memory_space<vmem>>, %arg15: memref<128x128xbf16, #tpu.memory_space<vmem>>, %arg16: memref<1x128xf32, #tpu.memory_space<vmem>>, %arg17: memref<128x128xbf16, #tpu.memory_space<vmem>>, %arg18: memref<1x128xf32, #tpu.memory_space<vmem>>, %arg19: memref<4x8x128xbf16, #tpu.memory_space<vmem>>, %arg20: memref<4x8x128xf32, #tpu.memory_space<vmem>>) attributes {dimension_semantics = [#tpu.dimension_semantics<parallel>], iteration_bounds = array<i64: 2>, scalar_prefetch = 0 : i64, scratch_operands = 1 : i64, tpu.core_type = #tpu.core_type<tc>, window_params = [{transform_indices = @transform_0, window_bounds = array<i64: 4, 7, 128>}, {transform_indices = @transform_1, window_bounds = array<i64: 4, 7, 7>}, {transform_indices = @transform_2, window_bounds = array<i64: 4, 1, 128>}, {transform_indices = @transform_3, window_bounds = array<i64: 4, 1, 8>}, {pipeline_mode = #tpu.pipeline_mode<synchronous>, transform_indices = @transform_4, window_bounds = array<i64: 7, 256>}, {pipeline_mode = #tpu.pipeline_mode<synchronous>, transform_indices = @transform_5, window_bounds = array<i64: 1, 256>}, {pipeline_mode = #tpu.pipeline_mode<synchronous>, transform_indices = @transform_6, window_bounds = array<i64: 128, 384>}, {pipeline_mode = #tpu.pipeline_mode<synchronous>, transform_indices = @transform_7, window_bounds = array<i64: 1, 384>}, {pipeline_mode = #tpu.pipeline_mode<synchronous>, transform_indices = @transform_8, window_bounds = array<i64: 128, 128>}, {pipeline_mode = #tpu.pipeline_mode<synchronous>, transform_indices = @transform_9, window_bounds = array<i64: 1, 128>}, {pipeline_mode = #tpu.pipeline_mode<synchronous>, transform_indices = @transform_10, window_bounds = array<i64: 1, 128>}, {pipeline_mode = #tpu.pipeline_mode<synchronous>, transform_indices = @transform_11, window_bounds = array<i64: 1, 128>}, {pipeline_mode = #tpu.pipeline_mode<synchronous>, transform_indices = @transform_12, window_bounds = array<i64: 1, 128>}, {pipeline_mode = #tpu.pipeline_mode<synchronous>, transform_indices = @transform_13, window_bounds = array<i64: 1, 128>}, {pipeline_mode = #tpu.pipeline_mode<synchronous>, transform_indices = @transform_14, window_bounds = array<i64: 128, 128>}, {pipeline_mode = #tpu.pipeline_mode<synchronous>, transform_indices = @transform_15, window_bounds = array<i64: 1, 128>}, {pipeline_mode = #tpu.pipeline_mode<synchronous>, transform_indices = @transform_16, window_bounds = array<i64: 128, 128>}, {pipeline_mode = #tpu.pipeline_mode<synchronous>, transform_indices = @transform_17, window_bounds = array<i64: 1, 128>}, {transform_indices = @transform_18, window_bounds = array<i64: 4, 8, 128>}]} {
    %c0 = arith.constant 0 : index
    %c0_0 = arith.constant 0 : index
    %c0_1 = arith.constant 0 : index
    %0 = vector.load %arg1[%c0, %c0_0, %c0_1] : memref<4x7x128xf32, #tpu.memory_space<vmem>>, vector<4x7x128xf32>
    %c0_2 = arith.constant 0 : index
    %c0_3 = arith.constant 0 : index
    %c0_4 = arith.constant 0 : index
    %1 = vector.load %arg2[%c0_2, %c0_3, %c0_4] : memref<4x7x7xf32, #tpu.memory_space<vmem>>, vector<4x7x7xf32>
    %c0_5 = arith.constant 0 : index
    %c0_6 = arith.constant 0 : index
    %c0_7 = arith.constant 0 : index
    %2 = vector.load %arg3[%c0_5, %c0_6, %c0_7] : memref<4x1x128xf32, #tpu.memory_space<vmem>>, vector<4x1x128xf32>
    %c0_8 = arith.constant 0 : index
    %c0_9 = arith.constant 0 : index
    %c0_10 = arith.constant 0 : index
    %3 = vector.load %arg4[%c0_8, %c0_9, %c0_10] : memref<4x1x8xf32, #tpu.memory_space<vmem>>, vector<4x1x8xf32>
    %c0_11 = arith.constant 0 : index
    %c0_12 = arith.constant 0 : index
    %4 = vector.load %arg5[%c0_11, %c0_12] : memref<7x256xf32, #tpu.memory_space<vmem>>, vector<7x256xf32>
    %c0_13 = arith.constant 0 : index
    %c0_14 = arith.constant 0 : index
    %5 = vector.load %arg6[%c0_13, %c0_14] : memref<1x256xf32, #tpu.memory_space<vmem>>, vector<1x256xf32>
    %6 = vector.shape_cast %5 : vector<1x256xf32> to vector<1x1x256xf32>
    %7 = vector.extract_strided_slice %1 {offsets = [0, 0, 0], sizes = [4, 7, 1], strides = [1, 1, 1]} : vector<4x7x7xf32> to vector<4x7x1xf32>
    %8 = vector.extract_strided_slice %4 {offsets = [0, 0], sizes = [1, 256], strides = [1, 1]} : vector<7x256xf32> to vector<1x256xf32>
    %9 = vector.shape_cast %8 : vector<1x256xf32> to vector<256xf32>
    %10 = vector.shape_cast %9 : vector<256xf32> to vector<1x1x256xf32>
    %11 = vector.broadcast %7 : vector<4x7x1xf32> to vector<4x7x256xf32>
    %12 = vector.broadcast %10 : vector<1x1x256xf32> to vector<4x7x256xf32>
    %13 = arith.mulf %11, %12 : vector<4x7x256xf32>
    %14 = vector.broadcast %6 : vector<1x1x256xf32> to vector<4x7x256xf32>
    %15 = arith.addf %14, %13 : vector<4x7x256xf32>
    %16 = vector.extract_strided_slice %1 {offsets = [0, 0, 1], sizes = [4, 7, 1], strides = [1, 1, 1]} : vector<4x7x7xf32> to vector<4x7x1xf32>
    %17 = vector.extract_strided_slice %4 {offsets = [1, 0], sizes = [1, 256], strides = [1, 1]} : vector<7x256xf32> to vector<1x256xf32>
    %18 = vector.shape_cast %17 : vector<1x256xf32> to vector<256xf32>
    %19 = vector.shape_cast %18 : vector<256xf32> to vector<1x1x256xf32>
    %20 = vector.broadcast %16 : vector<4x7x1xf32> to vector<4x7x256xf32>
    %21 = vector.broadcast %19 : vector<1x1x256xf32> to vector<4x7x256xf32>
    %22 = arith.mulf %20, %21 : vector<4x7x256xf32>
    %23 = arith.addf %15, %22 : vector<4x7x256xf32>
    %24 = vector.extract_strided_slice %1 {offsets = [0, 0, 2], sizes = [4, 7, 1], strides = [1, 1, 1]} : vector<4x7x7xf32> to vector<4x7x1xf32>
    %25 = vector.extract_strided_slice %4 {offsets = [2, 0], sizes = [1, 256], strides = [1, 1]} : vector<7x256xf32> to vector<1x256xf32>
    %26 = vector.shape_cast %25 : vector<1x256xf32> to vector<256xf32>
    %27 = vector.shape_cast %26 : vector<256xf32> to vector<1x1x256xf32>
    %28 = vector.broadcast %24 : vector<4x7x1xf32> to vector<4x7x256xf32>
    %29 = vector.broadcast %27 : vector<1x1x256xf32> to vector<4x7x256xf32>
    %30 = arith.mulf %28, %29 : vector<4x7x256xf32>
    %31 = arith.addf %23, %30 : vector<4x7x256xf32>
    %32 = vector.extract_strided_slice %1 {offsets = [0, 0, 3], sizes = [4, 7, 1], strides = [1, 1, 1]} : vector<4x7x7xf32> to vector<4x7x1xf32>
    %33 = vector.extract_strided_slice %4 {offsets = [3, 0], sizes = [1, 256], strides = [1, 1]} : vector<7x256xf32> to vector<1x256xf32>
    %34 = vector.shape_cast %33 : vector<1x256xf32> to vector<256xf32>
    %35 = vector.shape_cast %34 : vector<256xf32> to vector<1x1x256xf32>
    %36 = vector.broadcast %32 : vector<4x7x1xf32> to vector<4x7x256xf32>
    %37 = vector.broadcast %35 : vector<1x1x256xf32> to vector<4x7x256xf32>
    %38 = arith.mulf %36, %37 : vector<4x7x256xf32>
    %39 = arith.addf %31, %38 : vector<4x7x256xf32>
    %40 = vector.extract_strided_slice %1 {offsets = [0, 0, 4], sizes = [4, 7, 1], strides = [1, 1, 1]} : vector<4x7x7xf32> to vector<4x7x1xf32>
    %41 = vector.extract_strided_slice %4 {offsets = [4, 0], sizes = [1, 256], strides = [1, 1]} : vector<7x256xf32> to vector<1x256xf32>
    %42 = vector.shape_cast %41 : vector<1x256xf32> to vector<256xf32>
    %43 = vector.shape_cast %42 : vector<256xf32> to vector<1x1x256xf32>
    %44 = vector.broadcast %40 : vector<4x7x1xf32> to vector<4x7x256xf32>
    %45 = vector.broadcast %43 : vector<1x1x256xf32> to vector<4x7x256xf32>
    %46 = arith.mulf %44, %45 : vector<4x7x256xf32>
    %47 = arith.addf %39, %46 : vector<4x7x256xf32>
    %48 = vector.extract_strided_slice %1 {offsets = [0, 0, 5], sizes = [4, 7, 1], strides = [1, 1, 1]} : vector<4x7x7xf32> to vector<4x7x1xf32>
    %49 = vector.extract_strided_slice %4 {offsets = [5, 0], sizes = [1, 256], strides = [1, 1]} : vector<7x256xf32> to vector<1x256xf32>
    %50 = vector.shape_cast %49 : vector<1x256xf32> to vector<256xf32>
    %51 = vector.shape_cast %50 : vector<256xf32> to vector<1x1x256xf32>
    %52 = vector.broadcast %48 : vector<4x7x1xf32> to vector<4x7x256xf32>
    %53 = vector.broadcast %51 : vector<1x1x256xf32> to vector<4x7x256xf32>
    %54 = arith.mulf %52, %53 : vector<4x7x256xf32>
    %55 = arith.addf %47, %54 : vector<4x7x256xf32>
    %56 = vector.extract_strided_slice %1 {offsets = [0, 0, 6], sizes = [4, 7, 1], strides = [1, 1, 1]} : vector<4x7x7xf32> to vector<4x7x1xf32>
    %57 = vector.extract_strided_slice %4 {offsets = [6, 0], sizes = [1, 256], strides = [1, 1]} : vector<7x256xf32> to vector<1x256xf32>
    %58 = vector.shape_cast %57 : vector<1x256xf32> to vector<256xf32>
    %59 = vector.shape_cast %58 : vector<256xf32> to vector<1x1x256xf32>
    %60 = vector.broadcast %56 : vector<4x7x1xf32> to vector<4x7x256xf32>
    %61 = vector.broadcast %59 : vector<1x1x256xf32> to vector<4x7x256xf32>
    %62 = arith.mulf %60, %61 : vector<4x7x256xf32>
    %63 = arith.addf %55, %62 : vector<4x7x256xf32>
    %64 = vector.extract_strided_slice %63 {offsets = [0, 0, 0], sizes = [4, 7, 128], strides = [1, 1, 1]} : vector<4x7x256xf32> to vector<4x7x128xf32>
    %65 = arith.mulf %64, %0 : vector<4x7x128xf32>
    %66 = vector.extract_strided_slice %63 {offsets = [0, 0, 128], sizes = [4, 7, 128], strides = [1, 1, 1]} : vector<4x7x256xf32> to vector<4x7x128xf32>
    %67 = arith.addf %65, %66 : vector<4x7x128xf32>
    %68 = math.tanh %67 : vector<4x7x128xf32>
    %c0_15 = arith.constant 0 : index
    %c0_16 = arith.constant 0 : index
    %c0_17 = arith.constant 0 : index
    %69 = vector.load %arg20[%c0_15, %c0_16, %c0_17] : memref<4x8x128xf32, #tpu.memory_space<vmem>>, vector<4x7x128xf32>
    tpu.vector_store %arg20[%c0_15, %c0_16, %c0_17], %68 {strides = array<i32>} : memref<4x8x128xf32, #tpu.memory_space<vmem>>, vector<4x7x128xf32>,
    %c0_18 = arith.constant 0 : index
    %c7 = arith.constant 7 : index
    %c0_19 = arith.constant 0 : index
    %70 = vector.load %arg20[%c0_18, %c7, %c0_19] : memref<4x8x128xf32, #tpu.memory_space<vmem>>, vector<4x1x128xf32>
    tpu.vector_store %arg20[%c0_18, %c7, %c0_19], %2 {strides = array<i32>} : memref<4x8x128xf32, #tpu.memory_space<vmem>>, vector<4x1x128xf32>,
    %c0_20 = arith.constant 0 : index
    %c0_21 = arith.constant 0 : index
    %c0_22 = arith.constant 0 : index
    %71 = vector.load %arg20[%c0_20, %c0_21, %c0_22] : memref<4x8x128xf32, #tpu.memory_space<vmem>>, vector<4x8x128xf32>
    %72 = vector.shape_cast %71 : vector<4x8x128xf32> to vector<32x128xf32>
    %c0_23 = arith.constant 0 : index
    %c0_24 = arith.constant 0 : index
    %73 = vector.load %arg11[%c0_23, %c0_24] : memref<1x128xf32, #tpu.memory_space<vmem>>, vector<1x128xf32>
    %c0_25 = arith.constant 0 : index
    %c0_26 = arith.constant 0 : index
    %74 = vector.load %arg12[%c0_25, %c0_26] : memref<1x128xf32, #tpu.memory_space<vmem>>, vector<1x128xf32>
    %cst = arith.constant dense<0.000000e+00> : vector<32xf32>
    %75 = vector.multi_reduction <add>, %72, %cst [1] : vector<32x128xf32> to vector<32xf32>
    %76 = vector.shape_cast %75 : vector<32xf32> to vector<32x1xf32>
    %cst_27 = arith.constant 1.280000e+02 : f32
    %77 = vector.broadcast %cst_27 : f32 to vector<32x1xf32>
    %78 = arith.divf %76, %77 : vector<32x1xf32>
    %79 = vector.broadcast %78 : vector<32x1xf32> to vector<32x128xf32>
    %80 = arith.subf %72, %79 : vector<32x128xf32>
    %81 = arith.mulf %80, %80 : vector<32x128xf32>
    %cst_28 = arith.constant dense<0.000000e+00> : vector<32xf32>
    %82 = vector.multi_reduction <add>, %81, %cst_28 [1] : vector<32x128xf32> to vector<32xf32>
    %83 = vector.shape_cast %82 : vector<32xf32> to vector<32x1xf32>
    %cst_29 = arith.constant 1.280000e+02 : f32
    %84 = vector.broadcast %cst_29 : f32 to vector<32x1xf32>
    %85 = arith.divf %83, %84 : vector<32x1xf32>
    %86 = vector.broadcast %78 : vector<32x1xf32> to vector<32x128xf32>
    %87 = arith.subf %72, %86 : vector<32x128xf32>
    %cst_30 = arith.constant 9.99999974E-6 : f32
    %88 = vector.broadcast %cst_30 : f32 to vector<32x1xf32>
    %89 = arith.addf %85, %88 : vector<32x1xf32>
    %90 = math.rsqrt %89 : vector<32x1xf32>
    %91 = vector.broadcast %90 : vector<32x1xf32> to vector<32x128xf32>
    %92 = arith.mulf %87, %91 : vector<32x128xf32>
    %93 = vector.broadcast %73 : vector<1x128xf32> to vector<32x128xf32>
    %94 = arith.mulf %92, %93 : vector<32x128xf32>
    %95 = vector.broadcast %74 : vector<1x128xf32> to vector<32x128xf32>
    %96 = arith.addf %94, %95 : vector<32x128xf32>
    %97 = arith.truncf %96 : vector<32x128xf32> to vector<32x128xbf16>
    %c0_31 = arith.constant 0 : index
    %c0_32 = arith.constant 0 : index
    %98 = vector.load %arg7[%c0_31, %c0_32] : memref<128x384xbf16, #tpu.memory_space<vmem>>, vector<128x384xbf16>
    %cst_33 = arith.constant dense<0.000000e+00> : vector<32x384xf32>
    %99 = tpu.matmul %97, %98, %cst_33 {dimension_numbers = #tpu.dot_dimension_numbers<[1], [0], [0], [1], [0, 0, 1, 1], [], []>} : vector<32x128xbf16>, vector<128x384xbf16>, vector<32x384xf32> -> vector<32x384xf32>
    %c0_34 = arith.constant 0 : index
    %c0_35 = arith.constant 0 : index
    %100 = vector.load %arg8[%c0_34, %c0_35] : memref<1x384xf32, #tpu.memory_space<vmem>>, vector<1x384xf32>
    %101 = vector.broadcast %100 : vector<1x384xf32> to vector<32x384xf32>
    %102 = arith.addf %99, %101 : vector<32x384xf32>
    %103 = vector.shape_cast %102 : vector<32x384xf32> to vector<4x8x384xf32>
    %104 = vector.extract_strided_slice %103 {offsets = [0, 0, 0], sizes = [4, 8, 128], strides = [1, 1, 1]} : vector<4x8x384xf32> to vector<4x8x128xf32>
    %105 = vector.extract_strided_slice %103 {offsets = [0, 0, 128], sizes = [4, 8, 128], strides = [1, 1, 1]} : vector<4x8x384xf32> to vector<4x8x128xf32>
    %106 = vector.extract_strided_slice %103 {offsets = [0, 0, 256], sizes = [4, 8, 128], strides = [1, 1, 1]} : vector<4x8x384xf32> to vector<4x8x128xf32>
    %107 = vector.extract_strided_slice %104 {offsets = [0, 0, 0], sizes = [4, 8, 32], strides = [1, 1, 1]} : vector<4x8x128xf32> to vector<4x8x32xf32>
    %108 = arith.truncf %107 : vector<4x8x32xf32> to vector<4x8x32xbf16>
    %109 = vector.extract_strided_slice %105 {offsets = [0, 0, 0], sizes = [4, 8, 32], strides = [1, 1, 1]} : vector<4x8x128xf32> to vector<4x8x32xf32>
    %110 = arith.truncf %109 : vector<4x8x32xf32> to vector<4x8x32xbf16>
    "tpu.trace_start"() <{level = 10 : i32, message = "bqd,bkd->bqk"}> : () -> ()
    %cst_36 = arith.constant dense<0.000000e+00> : vector<4x8x8xf32>
    %111 = tpu.matmul %108, %110, %cst_36 {dimension_numbers = #tpu.dot_dimension_numbers<[2], [2], [1], [1], [0, 0, 0, 1, 1, 1], [0], [0]>} : vector<4x8x32xbf16>, vector<4x8x32xbf16>, vector<4x8x8xf32> -> vector<4x8x8xf32>
    %cst_37 = arith.constant 0.000000e+00 : f32
    "tpu.trace_stop"() : () -> ()
    %112 = vector.broadcast %cst_37 : f32 to vector<4x1x8xf32>
    %113 = arith.cmpf ogt, %3, %112 : vector<4x1x8xf32>
    %cst_38 = arith.constant -1.000000e+30 : f32
    %114 = vector.shape_cast %113 : vector<4x1x8xi1> to vector<4x1x8xi1>
    %115 = vector.broadcast %114 : vector<4x1x8xi1> to vector<4x8x8xi1>
    %116 = vector.broadcast %cst_38 : f32 to vector<4x8x8xf32>
    %117 = arith.select %115, %111, %116 : vector<4x8x8xi1>, vector<4x8x8xf32>
    %cst_39 = arith.constant dense<0xFF800000> : vector<4x8xf32>
    %118 = vector.multi_reduction <maximumf>, %117, %cst_39 [2] : vector<4x8x8xf32> to vector<4x8xf32>
    %119 = vector.shape_cast %118 : vector<4x8xf32> to vector<4x8x1xf32>
    %120 = vector.broadcast %119 : vector<4x8x1xf32> to vector<4x8x8xf32>
    %121 = arith.subf %117, %120 : vector<4x8x8xf32>
    %122 = math.exp %121 : vector<4x8x8xf32>
    %cst_40 = arith.constant dense<0.000000e+00> : vector<4x8xf32>
    %123 = vector.multi_reduction <add>, %122, %cst_40 [2] : vector<4x8x8xf32> to vector<4x8xf32>
    %124 = vector.shape_cast %123 : vector<4x8xf32> to vector<4x8x1xf32>
    %125 = tpu.reciprocal %124 {approx = true} : vector<4x8x1xf32> -> vector<4x8x1xf32>
    %126 = vector.broadcast %125 : vector<4x8x1xf32> to vector<4x8x8xf32>
    %127 = arith.mulf %122, %126 : vector<4x8x8xf32>
    %128 = arith.truncf %127 : vector<4x8x8xf32> to vector<4x8x8xbf16>
    %129 = vector.extract_strided_slice %106 {offsets = [0, 0, 0], sizes = [4, 8, 32], strides = [1, 1, 1]} : vector<4x8x128xf32> to vector<4x8x32xf32>
    %130 = arith.truncf %129 : vector<4x8x32xf32> to vector<4x8x32xbf16>
    "tpu.trace_start"() <{level = 10 : i32, message = "bqk,bkd->bqd"}> : () -> ()
    %cst_41 = arith.constant dense<0.000000e+00> : vector<4x8x32xf32>
    %131 = tpu.matmul %128, %130, %cst_41 {dimension_numbers = #tpu.dot_dimension_numbers<[2], [1], [1], [2], [0, 0, 0, 1, 1, 2], [0], [0]>} : vector<4x8x8xbf16>, vector<4x8x32xbf16>, vector<4x8x32xf32> -> vector<4x8x32xf32>
    "tpu.trace_stop"() : () -> ()
    %132 = vector.extract_strided_slice %104 {offsets = [0, 0, 32], sizes = [4, 8, 32], strides = [1, 1, 1]} : vector<4x8x128xf32> to vector<4x8x32xf32>
    %133 = arith.truncf %132 : vector<4x8x32xf32> to vector<4x8x32xbf16>
    %134 = vector.extract_strided_slice %105 {offsets = [0, 0, 32], sizes = [4, 8, 32], strides = [1, 1, 1]} : vector<4x8x128xf32> to vector<4x8x32xf32>
    %135 = arith.truncf %134 : vector<4x8x32xf32> to vector<4x8x32xbf16>
    "tpu.trace_start"() <{level = 10 : i32, message = "bqd,bkd->bqk"}> : () -> ()
    %cst_42 = arith.constant dense<0.000000e+00> : vector<4x8x8xf32>
    %136 = tpu.matmul %133, %135, %cst_42 {dimension_numbers = #tpu.dot_dimension_numbers<[2], [2], [1], [1], [0, 0, 0, 1, 1, 1], [0], [0]>} : vector<4x8x32xbf16>, vector<4x8x32xbf16>, vector<4x8x8xf32> -> vector<4x8x8xf32>
    %cst_43 = arith.constant 0.000000e+00 : f32
    "tpu.trace_stop"() : () -> ()
    %137 = vector.broadcast %cst_43 : f32 to vector<4x1x8xf32>
    %138 = arith.cmpf ogt, %3, %137 : vector<4x1x8xf32>
    %cst_44 = arith.constant -1.000000e+30 : f32
    %139 = vector.shape_cast %138 : vector<4x1x8xi1> to vector<4x1x8xi1>
    %140 = vector.broadcast %139 : vector<4x1x8xi1> to vector<4x8x8xi1>
    %141 = vector.broadcast %cst_44 : f32 to vector<4x8x8xf32>
    %142 = arith.select %140, %136, %141 : vector<4x8x8xi1>, vector<4x8x8xf32>
    %cst_45 = arith.constant dense<0xFF800000> : vector<4x8xf32>
    %143 = vector.multi_reduction <maximumf>, %142, %cst_45 [2] : vector<4x8x8xf32> to vector<4x8xf32>
    %144 = vector.shape_cast %143 : vector<4x8xf32> to vector<4x8x1xf32>
    %145 = vector.broadcast %144 : vector<4x8x1xf32> to vector<4x8x8xf32>
    %146 = arith.subf %142, %145 : vector<4x8x8xf32>
    %147 = math.exp %146 : vector<4x8x8xf32>
    %cst_46 = arith.constant dense<0.000000e+00> : vector<4x8xf32>
    %148 = vector.multi_reduction <add>, %147, %cst_46 [2] : vector<4x8x8xf32> to vector<4x8xf32>
    %149 = vector.shape_cast %148 : vector<4x8xf32> to vector<4x8x1xf32>
    %150 = tpu.reciprocal %149 {approx = true} : vector<4x8x1xf32> -> vector<4x8x1xf32>
    %151 = vector.broadcast %150 : vector<4x8x1xf32> to vector<4x8x8xf32>
    %152 = arith.mulf %147, %151 : vector<4x8x8xf32>
    %153 = arith.truncf %152 : vector<4x8x8xf32> to vector<4x8x8xbf16>
    %154 = vector.extract_strided_slice %106 {offsets = [0, 0, 32], sizes = [4, 8, 32], strides = [1, 1, 1]} : vector<4x8x128xf32> to vector<4x8x32xf32>
    %155 = arith.truncf %154 : vector<4x8x32xf32> to vector<4x8x32xbf16>
    "tpu.trace_start"() <{level = 10 : i32, message = "bqk,bkd->bqd"}> : () -> ()
    %cst_47 = arith.constant dense<0.000000e+00> : vector<4x8x32xf32>
    %156 = tpu.matmul %153, %155, %cst_47 {dimension_numbers = #tpu.dot_dimension_numbers<[2], [1], [1], [2], [0, 0, 0, 1, 1, 2], [0], [0]>} : vector<4x8x8xbf16>, vector<4x8x32xbf16>, vector<4x8x32xf32> -> vector<4x8x32xf32>
    "tpu.trace_stop"() : () -> ()
    %157 = vector.extract_strided_slice %104 {offsets = [0, 0, 64], sizes = [4, 8, 32], strides = [1, 1, 1]} : vector<4x8x128xf32> to vector<4x8x32xf32>
    %158 = arith.truncf %157 : vector<4x8x32xf32> to vector<4x8x32xbf16>
    %159 = vector.extract_strided_slice %105 {offsets = [0, 0, 64], sizes = [4, 8, 32], strides = [1, 1, 1]} : vector<4x8x128xf32> to vector<4x8x32xf32>
    %160 = arith.truncf %159 : vector<4x8x32xf32> to vector<4x8x32xbf16>
    "tpu.trace_start"() <{level = 10 : i32, message = "bqd,bkd->bqk"}> : () -> ()
    %cst_48 = arith.constant dense<0.000000e+00> : vector<4x8x8xf32>
    %161 = tpu.matmul %158, %160, %cst_48 {dimension_numbers = #tpu.dot_dimension_numbers<[2], [2], [1], [1], [0, 0, 0, 1, 1, 1], [0], [0]>} : vector<4x8x32xbf16>, vector<4x8x32xbf16>, vector<4x8x8xf32> -> vector<4x8x8xf32>
    %cst_49 = arith.constant 0.000000e+00 : f32
    "tpu.trace_stop"() : () -> ()
    %162 = vector.broadcast %cst_49 : f32 to vector<4x1x8xf32>
    %163 = arith.cmpf ogt, %3, %162 : vector<4x1x8xf32>
    %cst_50 = arith.constant -1.000000e+30 : f32
    %164 = vector.shape_cast %163 : vector<4x1x8xi1> to vector<4x1x8xi1>
    %165 = vector.broadcast %164 : vector<4x1x8xi1> to vector<4x8x8xi1>
    %166 = vector.broadcast %cst_50 : f32 to vector<4x8x8xf32>
    %167 = arith.select %165, %161, %166 : vector<4x8x8xi1>, vector<4x8x8xf32>
    %cst_51 = arith.constant dense<0xFF800000> : vector<4x8xf32>
    %168 = vector.multi_reduction <maximumf>, %167, %cst_51 [2] : vector<4x8x8xf32> to vector<4x8xf32>
    %169 = vector.shape_cast %168 : vector<4x8xf32> to vector<4x8x1xf32>
    %170 = vector.broadcast %169 : vector<4x8x1xf32> to vector<4x8x8xf32>
    %171 = arith.subf %167, %170 : vector<4x8x8xf32>
    %172 = math.exp %171 : vector<4x8x8xf32>
    %cst_52 = arith.constant dense<0.000000e+00> : vector<4x8xf32>
    %173 = vector.multi_reduction <add>, %172, %cst_52 [2] : vector<4x8x8xf32> to vector<4x8xf32>
    %174 = vector.shape_cast %173 : vector<4x8xf32> to vector<4x8x1xf32>
    %175 = tpu.reciprocal %174 {approx = true} : vector<4x8x1xf32> -> vector<4x8x1xf32>
    %176 = vector.broadcast %175 : vector<4x8x1xf32> to vector<4x8x8xf32>
    %177 = arith.mulf %172, %176 : vector<4x8x8xf32>
    %178 = arith.truncf %177 : vector<4x8x8xf32> to vector<4x8x8xbf16>
    %179 = vector.extract_strided_slice %106 {offsets = [0, 0, 64], sizes = [4, 8, 32], strides = [1, 1, 1]} : vector<4x8x128xf32> to vector<4x8x32xf32>
    %180 = arith.truncf %179 : vector<4x8x32xf32> to vector<4x8x32xbf16>
    "tpu.trace_start"() <{level = 10 : i32, message = "bqk,bkd->bqd"}> : () -> ()
    %cst_53 = arith.constant dense<0.000000e+00> : vector<4x8x32xf32>
    %181 = tpu.matmul %178, %180, %cst_53 {dimension_numbers = #tpu.dot_dimension_numbers<[2], [1], [1], [2], [0, 0, 0, 1, 1, 2], [0], [0]>} : vector<4x8x8xbf16>, vector<4x8x32xbf16>, vector<4x8x32xf32> -> vector<4x8x32xf32>
    "tpu.trace_stop"() : () -> ()
    %182 = vector.extract_strided_slice %104 {offsets = [0, 0, 96], sizes = [4, 8, 32], strides = [1, 1, 1]} : vector<4x8x128xf32> to vector<4x8x32xf32>
    %183 = arith.truncf %182 : vector<4x8x32xf32> to vector<4x8x32xbf16>
    %184 = vector.extract_strided_slice %105 {offsets = [0, 0, 96], sizes = [4, 8, 32], strides = [1, 1, 1]} : vector<4x8x128xf32> to vector<4x8x32xf32>
    %185 = arith.truncf %184 : vector<4x8x32xf32> to vector<4x8x32xbf16>
    "tpu.trace_start"() <{level = 10 : i32, message = "bqd,bkd->bqk"}> : () -> ()
    %cst_54 = arith.constant dense<0.000000e+00> : vector<4x8x8xf32>
    %186 = tpu.matmul %183, %185, %cst_54 {dimension_numbers = #tpu.dot_dimension_numbers<[2], [2], [1], [1], [0, 0, 0, 1, 1, 1], [0], [0]>} : vector<4x8x32xbf16>, vector<4x8x32xbf16>, vector<4x8x8xf32> -> vector<4x8x8xf32>
    %cst_55 = arith.constant 0.000000e+00 : f32
    "tpu.trace_stop"() : () -> ()
    %187 = vector.broadcast %cst_55 : f32 to vector<4x1x8xf32>
    %188 = arith.cmpf ogt, %3, %187 : vector<4x1x8xf32>
    %cst_56 = arith.constant -1.000000e+30 : f32
    %189 = vector.shape_cast %188 : vector<4x1x8xi1> to vector<4x1x8xi1>
    %190 = vector.broadcast %189 : vector<4x1x8xi1> to vector<4x8x8xi1>
    %191 = vector.broadcast %cst_56 : f32 to vector<4x8x8xf32>
    %192 = arith.select %190, %186, %191 : vector<4x8x8xi1>, vector<4x8x8xf32>
    %cst_57 = arith.constant dense<0xFF800000> : vector<4x8xf32>
    %193 = vector.multi_reduction <maximumf>, %192, %cst_57 [2] : vector<4x8x8xf32> to vector<4x8xf32>
    %194 = vector.shape_cast %193 : vector<4x8xf32> to vector<4x8x1xf32>
    %195 = vector.broadcast %194 : vector<4x8x1xf32> to vector<4x8x8xf32>
    %196 = arith.subf %192, %195 : vector<4x8x8xf32>
    %197 = math.exp %196 : vector<4x8x8xf32>
    %cst_58 = arith.constant dense<0.000000e+00> : vector<4x8xf32>
    %198 = vector.multi_reduction <add>, %197, %cst_58 [2] : vector<4x8x8xf32> to vector<4x8xf32>
    %199 = vector.shape_cast %198 : vector<4x8xf32> to vector<4x8x1xf32>
    %200 = tpu.reciprocal %199 {approx = true} : vector<4x8x1xf32> -> vector<4x8x1xf32>
    %201 = vector.broadcast %200 : vector<4x8x1xf32> to vector<4x8x8xf32>
    %202 = arith.mulf %197, %201 : vector<4x8x8xf32>
    %203 = arith.truncf %202 : vector<4x8x8xf32> to vector<4x8x8xbf16>
    %204 = vector.extract_strided_slice %106 {offsets = [0, 0, 96], sizes = [4, 8, 32], strides = [1, 1, 1]} : vector<4x8x128xf32> to vector<4x8x32xf32>
    %205 = arith.truncf %204 : vector<4x8x32xf32> to vector<4x8x32xbf16>
    "tpu.trace_start"() <{level = 10 : i32, message = "bqk,bkd->bqd"}> : () -> ()
    %cst_59 = arith.constant dense<0.000000e+00> : vector<4x8x32xf32>
    %206 = tpu.matmul %203, %205, %cst_59 {dimension_numbers = #tpu.dot_dimension_numbers<[2], [1], [1], [2], [0, 0, 0, 1, 1, 2], [0], [0]>} : vector<4x8x8xbf16>, vector<4x8x32xbf16>, vector<4x8x32xf32> -> vector<4x8x32xf32>
    "tpu.trace_stop"() : () -> ()
    %207 = tpu.concatenate %131, %156, %181, %206 in 2 : vector<4x8x32xf32>, vector<4x8x32xf32>, vector<4x8x32xf32>, vector<4x8x32xf32> -> vector<4x8x128xf32>
    %208 = vector.shape_cast %207 : vector<4x8x128xf32> to vector<32x128xf32>
    %209 = arith.truncf %208 : vector<32x128xf32> to vector<32x128xbf16>
    %c0_60 = arith.constant 0 : index
    %c0_61 = arith.constant 0 : index
    %210 = vector.load %arg9[%c0_60, %c0_61] : memref<128x128xbf16, #tpu.memory_space<vmem>>, vector<128x128xbf16>
    %cst_62 = arith.constant dense<0.000000e+00> : vector<32x128xf32>
    %211 = tpu.matmul %209, %210, %cst_62 {dimension_numbers = #tpu.dot_dimension_numbers<[1], [0], [0], [1], [0, 0, 1, 1], [], []>} : vector<32x128xbf16>, vector<128x128xbf16>, vector<32x128xf32> -> vector<32x128xf32>
    %c0_63 = arith.constant 0 : index
    %c0_64 = arith.constant 0 : index
    %212 = vector.load %arg10[%c0_63, %c0_64] : memref<1x128xf32, #tpu.memory_space<vmem>>, vector<1x128xf32>
    %213 = vector.broadcast %212 : vector<1x128xf32> to vector<32x128xf32>
    %214 = arith.addf %211, %213 : vector<32x128xf32>
    %215 = arith.addf %72, %214 : vector<32x128xf32>
    %c0_65 = arith.constant 0 : index
    %c0_66 = arith.constant 0 : index
    %216 = vector.load %arg13[%c0_65, %c0_66] : memref<1x128xf32, #tpu.memory_space<vmem>>, vector<1x128xf32>
    %c0_67 = arith.constant 0 : index
    %c0_68 = arith.constant 0 : index
    %217 = vector.load %arg14[%c0_67, %c0_68] : memref<1x128xf32, #tpu.memory_space<vmem>>, vector<1x128xf32>
    %cst_69 = arith.constant dense<0.000000e+00> : vector<32xf32>
    %218 = vector.multi_reduction <add>, %215, %cst_69 [1] : vector<32x128xf32> to vector<32xf32>
    %219 = vector.shape_cast %218 : vector<32xf32> to vector<32x1xf32>
    %cst_70 = arith.constant 1.280000e+02 : f32
    %220 = vector.broadcast %cst_70 : f32 to vector<32x1xf32>
    %221 = arith.divf %219, %220 : vector<32x1xf32>
    %222 = vector.broadcast %221 : vector<32x1xf32> to vector<32x128xf32>
    %223 = arith.subf %215, %222 : vector<32x128xf32>
    %224 = arith.mulf %223, %223 : vector<32x128xf32>
    %cst_71 = arith.constant dense<0.000000e+00> : vector<32xf32>
    %225 = vector.multi_reduction <add>, %224, %cst_71 [1] : vector<32x128xf32> to vector<32xf32>
    %226 = vector.shape_cast %225 : vector<32xf32> to vector<32x1xf32>
    %cst_72 = arith.constant 1.280000e+02 : f32
    %227 = vector.broadcast %cst_72 : f32 to vector<32x1xf32>
    %228 = arith.divf %226, %227 : vector<32x1xf32>
    %229 = vector.broadcast %221 : vector<32x1xf32> to vector<32x128xf32>
    %230 = arith.subf %215, %229 : vector<32x128xf32>
    %cst_73 = arith.constant 9.99999974E-6 : f32
    %231 = vector.broadcast %cst_73 : f32 to vector<32x1xf32>
    %232 = arith.addf %228, %231 : vector<32x1xf32>
    %233 = math.rsqrt %232 : vector<32x1xf32>
    %234 = vector.broadcast %233 : vector<32x1xf32> to vector<32x128xf32>
    %235 = arith.mulf %230, %234 : vector<32x128xf32>
    %236 = vector.broadcast %216 : vector<1x128xf32> to vector<32x128xf32>
    %237 = arith.mulf %235, %236 : vector<32x128xf32>
    %238 = vector.broadcast %217 : vector<1x128xf32> to vector<32x128xf32>
    %239 = arith.addf %237, %238 : vector<32x128xf32>
    %240 = arith.truncf %239 : vector<32x128xf32> to vector<32x128xbf16>
    %c0_74 = arith.constant 0 : index
    %c0_75 = arith.constant 0 : index
    %241 = vector.load %arg15[%c0_74, %c0_75] : memref<128x128xbf16, #tpu.memory_space<vmem>>, vector<128x128xbf16>
    %cst_76 = arith.constant dense<0.000000e+00> : vector<32x128xf32>
    %242 = tpu.matmul %240, %241, %cst_76 {dimension_numbers = #tpu.dot_dimension_numbers<[1], [0], [0], [1], [0, 0, 1, 1], [], []>} : vector<32x128xbf16>, vector<128x128xbf16>, vector<32x128xf32> -> vector<32x128xf32>
    %c0_77 = arith.constant 0 : index
    %c0_78 = arith.constant 0 : index
    %243 = vector.load %arg16[%c0_77, %c0_78] : memref<1x128xf32, #tpu.memory_space<vmem>>, vector<1x128xf32>
    %244 = vector.broadcast %243 : vector<1x128xf32> to vector<32x128xf32>
    %245 = arith.addf %242, %244 : vector<32x128xf32>
    %cst_79 = arith.constant 0.000000e+00 : f32
    %246 = vector.broadcast %cst_79 : f32 to vector<32x128xf32>
    %247 = arith.maximumf %245, %246 : vector<32x128xf32>
    %248 = arith.truncf %247 : vector<32x128xf32> to vector<32x128xbf16>
    %c0_80 = arith.constant 0 : index
    %c0_81 = arith.constant 0 : index
    %249 = vector.load %arg17[%c0_80, %c0_81] : memref<128x128xbf16, #tpu.memory_space<vmem>>, vector<128x128xbf16>
    %cst_82 = arith.constant dense<0.000000e+00> : vector<32x128xf32>
    %250 = tpu.matmul %248, %249, %cst_82 {dimension_numbers = #tpu.dot_dimension_numbers<[1], [0], [0], [1], [0, 0, 1, 1], [], []>} : vector<32x128xbf16>, vector<128x128xbf16>, vector<32x128xf32> -> vector<32x128xf32>
    %c0_83 = arith.constant 0 : index
    %c0_84 = arith.constant 0 : index
    %251 = vector.load %arg18[%c0_83, %c0_84] : memref<1x128xf32, #tpu.memory_space<vmem>>, vector<1x128xf32>
    %252 = vector.broadcast %251 : vector<1x128xf32> to vector<32x128xf32>
    %253 = arith.addf %250, %252 : vector<32x128xf32>
    %254 = arith.addf %215, %253 : vector<32x128xf32>
    %255 = vector.shape_cast %254 : vector<32x128xf32> to vector<4x8x128xf32>
    %256 = arith.truncf %255 : vector<4x8x128xf32> to vector<4x8x128xbf16>
    %c0_85 = arith.constant 0 : index
    %c0_86 = arith.constant 0 : index
    %c0_87 = arith.constant 0 : index
    %257 = vector.load %arg19[%c0_85, %c0_86, %c0_87] : memref<4x8x128xbf16, #tpu.memory_space<vmem>>, vector<4x8x128xbf16>
    tpu.vector_store %arg19[%c0_85, %c0_86, %c0_87], %256 {strides = array<i32>} : memref<4x8x128xbf16, #tpu.memory_space<vmem>>, vector<4x8x128xbf16>,
    return
  }
  func.func @transform_0(%arg0: i32) -> (i32, i32, i32) {
    %c0_i32 = arith.constant 0 : i32
    %c0_i32_0 = arith.constant 0 : i32
    %c0_i32_1 = arith.constant 0 : i32
    return %arg0, %c0_i32, %c0_i32_0 : i32, i32, i32
  }
  func.func @transform_1(%arg0: i32) -> (i32, i32, i32) {
    %c0_i32 = arith.constant 0 : i32
    %c0_i32_0 = arith.constant 0 : i32
    %c0_i32_1 = arith.constant 0 : i32
    return %arg0, %c0_i32, %c0_i32_0 : i32, i32, i32
  }
  func.func @transform_2(%arg0: i32) -> (i32, i32, i32) {
    %c0_i32 = arith.constant 0 : i32
    %c0_i32_0 = arith.constant 0 : i32
    %c0_i32_1 = arith.constant 0 : i32
    return %arg0, %c0_i32, %c0_i32_0 : i32, i32, i32
  }
  func.func @transform_3(%arg0: i32) -> (i32, i32, i32) {
    %c0_i32 = arith.constant 0 : i32
    %c0_i32_0 = arith.constant 0 : i32
    %c0_i32_1 = arith.constant 0 : i32
    return %arg0, %c0_i32, %c0_i32_0 : i32, i32, i32
  }
  func.func @transform_4(%arg0: i32) -> (i32, i32) {
    %c0_i32 = arith.constant 0 : i32
    %c0_i32_0 = arith.constant 0 : i32
    %c0_i32_1 = arith.constant 0 : i32
    return %c0_i32, %c0_i32_0 : i32, i32
  }
  func.func @transform_5(%arg0: i32) -> (i32, i32) {
    %c0_i32 = arith.constant 0 : i32
    %c0_i32_0 = arith.constant 0 : i32
    %c0_i32_1 = arith.constant 0 : i32
    return %c0_i32, %c0_i32_0 : i32, i32
  }
  func.func @transform_6(%arg0: i32) -> (i32, i32) {
    %c0_i32 = arith.constant 0 : i32
    %c0_i32_0 = arith.constant 0 : i32
    %c0_i32_1 = arith.constant 0 : i32
    return %c0_i32, %c0_i32_0 : i32, i32
  }
  func.func @transform_7(%arg0: i32) -> (i32, i32) {
    %c0_i32 = arith.constant 0 : i32
    %c0_i32_0 = arith.constant 0 : i32
    %c0_i32_1 = arith.constant 0 : i32
    return %c0_i32, %c0_i32_0 : i32, i32
  }
  func.func @transform_8(%arg0: i32) -> (i32, i32) {
    %c0_i32 = arith.constant 0 : i32
    %c0_i32_0 = arith.constant 0 : i32
    %c0_i32_1 = arith.constant 0 : i32
    return %c0_i32, %c0_i32_0 : i32, i32
  }
  func.func @transform_9(%arg0: i32) -> (i32, i32) {
    %c0_i32 = arith.constant 0 : i32
    %c0_i32_0 = arith.constant 0 : i32
    %c0_i32_1 = arith.constant 0 : i32
    return %c0_i32, %c0_i32_0 : i32, i32
  }
  func.func @transform_10(%arg0: i32) -> (i32, i32) {
    %c0_i32 = arith.constant 0 : i32
    %c0_i32_0 = arith.constant 0 : i32
    %c0_i32_1 = arith.constant 0 : i32
    return %c0_i32, %c0_i32_0 : i32, i32
  }
  func.func @transform_11(%arg0: i32) -> (i32, i32) {
    %c0_i32 = arith.constant 0 : i32
    %c0_i32_0 = arith.constant 0 : i32
    %c0_i32_1 = arith.constant 0 : i32
    return %c0_i32, %c0_i32_0 : i32, i32
  }
  func.func @transform_12(%arg0: i32) -> (i32, i32) {
    %c0_i32 = arith.constant 0 : i32
    %c0_i32_0 = arith.constant 0 : i32
    %c0_i32_1 = arith.constant 0 : i32
    return %c0_i32, %c0_i32_0 : i32, i32
  }
  func.func @transform_13(%arg0: i32) -> (i32, i32) {
    %c0_i32 = arith.constant 0 : i32
    %c0_i32_0 = arith.constant 0 : i32
    %c0_i32_1 = arith.constant 0 : i32
    return %c0_i32, %c0_i32_0 : i32, i32
  }
  func.func @transform_14(%arg0: i32) -> (i32, i32) {
    %c0_i32 = arith.constant 0 : i32
    %c0_i32_0 = arith.constant 0 : i32
    %c0_i32_1 = arith.constant 0 : i32
    return %c0_i32, %c0_i32_0 : i32, i32
  }
  func.func @transform_15(%arg0: i32) -> (i32, i32) {
    %c0_i32 = arith.constant 0 : i32
    %c0_i32_0 = arith.constant 0 : i32
    %c0_i32_1 = arith.constant 0 : i32
    return %c0_i32, %c0_i32_0 : i32, i32
  }
  func.func @transform_16(%arg0: i32) -> (i32, i32) {
    %c0_i32 = arith.constant 0 : i32
    %c0_i32_0 = arith.constant 0 : i32
    %c0_i32_1 = arith.constant 0 : i32
    return %c0_i32, %c0_i32_0 : i32, i32
  }
  func.func @transform_17(%arg0: i32) -> (i32, i32) {
    %c0_i32 = arith.constant 0 : i32
    %c0_i32_0 = arith.constant 0 : i32
    %c0_i32_1 = arith.constant 0 : i32
    return %c0_i32, %c0_i32_0 : i32, i32
  }
  func.func @transform_18(%arg0: i32) -> (i32, i32, i32) {
    %c0_i32 = arith.constant 0 : i32
    %c0_i32_0 = arith.constant 0 : i32
    %c0_i32_1 = arith.constant 0 : i32
    return %arg0, %c0_i32, %c0_i32_0 : i32, i32, i32
  }
}

</mosaic_0001>

<bundles_post_ra>
// kernel: tpu_custom_call.1
= control target key start
LH: loop header
LB: loop body
LE: loop exit
PB: predicated region body
PF: predicated region fallthrough
CT: control target
= control target key end

     0   :  { %s6122_s0 = inlined_call_operand.vmem [shape: f32[8,7,128], index: 0, kind: input, shape index: {}]   ;;  %s6123_s1 = inlined_call_operand.vmem [shape: f32[8,7,7], index: 1, kind: input, shape index: {}]   ;;  %s6124_s2 = inlined_call_operand.hbm [shape: f32[8,1,128], index: 2, kind: input, shape index: {}]   ;;  %s6125_s3 = inlined_call_operand.hbm [shape: f32[8,1,8], index: 3, kind: input, shape index: {}]   ;;  %s6126_s4 = inlined_call_operand.hbm [shape: f32[7,256], index: 4, kind: input, shape index: {}]   ;;  %s6127_s5 = inlined_call_operand.vmem [shape: f32[1,256], index: 5, kind: input, shape index: {}]   ;;  %s6128_s6 = inlined_call_operand.vmem [shape: bf16[128,384], index: 6, kind: input, shape index: {}]   ;;  %s6129_s7 = inlined_call_operand.vmem [shape: f32[1,384], index: 7, kind: input, shape index: {}]   ;;  %s6130_s8 = inlined_call_operand.vmem [shape: bf16[128,128], index: 8, kind: input, shape index: {}]   ;;  %s6131_s9 = inlined_call_operand.vmem [shape: f32[1,128], index: 9, kind: input, shape index: {}]   ;;  %s6132_s10 = inlined_call_operand.vmem [shape: f32[1,128], index: 10, kind: input, shape index: {}]   ;;  %s6133_s11 = inlined_call_operand.vmem [shape: f32[1,128], index: 11, kind: input, shape index: {}]   ;;  %s6134_s12 = inlined_call_operand.vmem [shape: f32[1,128], index: 12, kind: input, shape index: {}]   ;;  %s6135_s13 = inlined_call_operand.vmem [shape: f32[1,128], index: 13, kind: input, shape index: {}]   ;;  %s6136_s14 = inlined_call_operand.hbm [shape: bf16[128,128], index: 14, kind: input, shape index: {}]   ;;  %s6137_s15 = inlined_call_operand.vmem [shape: f32[1,128], index: 15, kind: input, shape index: {}]   ;;  %s6138_s16 = inlined_call_operand.hbm [shape: bf16[128,128], index: 16, kind: input, shape index: {}]   ;;  %s6139_s17 = inlined_call_operand.vmem [shape: f32[1,128], index: 17, kind: input, shape index: {}]   ;;  %s6140_s18 = inlined_call_operand.hbm [shape: bf16[8,8,128], index: 18, kind: output, shape index: {}]  }
   0x1   :  { %6151 = sst [smem:[#allocation22_spill]] %s6122_s0 }
   0x2   :  { %6152 = sst [smem:[#allocation23_spill]] %s6123_s1 }
   0x3   :  { %6153 = sst [smem:[#allocation24_spill]] %s6124_s2 }
   0x4   :  { %6154 = sst [smem:[#allocation25_spill]] %s6126_s4 }
   0x5   :  { %6155 = sst [smem:[#allocation26_spill]] %s6134_s12 }
   0x6   :  { %6156 = sst [smem:[#allocation27_spill]] %s6135_s13 }
   0x7   :  { %6157 = sst [smem:[#allocation28_spill]] %s6136_s14 }
   0x8   :  { %6158 = sst [smem:[#allocation29_spill]] %s6137_s15 }
   0x9   :  { %6159 = sst [smem:[#allocation30_spill]] %s6138_s16 }
   0xa   :  { %6160 = sst [smem:[#allocation31_spill]] %s6139_s17 }
   0xb   :  { %6161 = sst [smem:[#allocation32_spill]] %s6140_s18 }
   0xc   :  { %23 = vsyncpa [#allocation4], 0 }
   0xd   :  { %25 = vsyncpa [#allocation4 + $0x1], 0 }
   0xe   :  { %26 = vsyncpa [#allocation7], 0 }
   0xf   :  { %28 = vsyncpa [#allocation7 + $0x1], 0 }
  0x10   :  { %29 = vsyncpa [#allocation10], 0 }
  0x11   :  { %30 = vsyncpa [#allocation5], 0 }
  0x12   :  { %32 = vsyncpa [#allocation5 + $0x1], 0  ;;  %s5038_s27 = smov 0   ;;  %s5040_s28 = smov 0  }
  0x13   :  { %s5042_s29 = smov 0   ;;  %s5044_s30 = smov 0  }
  0x14 LB: > { %6162 = sst [smem:[#allocation18_spill]] %s4906_s27  ;;  %s5059_s0 = sadd.s32 4294967295, %s4918_s30   ;;  %s4918_s30 = sphi %s5044_s30, %s6209_s30   ;;  %s4914_s29 = sphi %s5042_s29, %s6206_s29   ;;  %s4910_s28 = sphi %s5040_s28, %s6208_s28   ;;  %s4906_s27 = sphi %s5038_s27, %s6207_s27  }
  0x15   : > { %6163 = sst [smem:[#allocation19_spill]] %s4914_s29  ;;  %s3892_s19 = sadd.s32 4294967294, %s4918_s30  }
  0x16   : > { %p110_p0 = scmp.ne.s32.totalorder %s4910_s28, %s4906_s27  ;;  %p6145_p1 = scmp.eq.s32.totalorder %s5059_s0, 0 }
  0x17   : > { %p460_p3 = scmp.eq.s32.totalorder %s3892_s19, 1  ;;  %p3893_p5 = scmp.ge.s32.totalorder %s4918_s30, 1 }
  0x18   : > { %p5068_p4 = por %p6145_p1, %p110_p0  ;;  %p467_p7 = scmp.lt.s32.totalorder %s4918_s30, 3 }
  0x19   : > { %p5073_p6 = por %p460_p3, %p110_p0  ;;  %s4920_s22 = smov [#allocation8]  }
  0x1a   : > { %s6164_s1 = scalar_select %p5068_p4, 1, 0 }
  0x1b   : > { %s6165_s20 = scalar_select %p5073_p6, 1, 0 }
  0x1c   : > { %p5078_p8 = pnand %p3893_p5, %p467_p7  ;;  %s480_s2 = sshll.u32 %s4920_s22, 4  ;;  %s481_s2 = int_to_ptr.vmem [resolvable:$true] %s480_s2 }
  0x1d   : > { %6166 = sst [smem:[#allocation20_spill]] %s6165_s20  ;;  %s4921_s23 = smov [#allocation9]  }
  0x1e   : > { %s6167_s21 = scalar_select %p5078_p8, 1, 0 }
  0x1f   : > { %p4415_p10 = pneg %p5078_p8  ;;  %s517_s24 = sshll.u32 %s4921_s23, 4  ;;  %s5091_s24 = int_to_ptr.vmem [resolvable:$true] %s517_s24 }
  0x20   : > { %s4922_s26 = smov [#allocation11]   ;;  %s6169_s4 = sld [smem:[#allocation25_spill]] }
  0x21   : > { %p5087_p11 = pnand %p4415_p10, %p6145_p1  ;;  %s5093_s19 = sshll.u32 %s4922_s26, 4  ;;  %s534_s19 = int_to_ptr.vmem [resolvable:$true] %s5093_s19 }
  0x23   : > { %p5103_p13 = pneg %p5087_p11 }
  0x26   : > { %s4696_s22 = scalar_lea.hbm %s6169_s4, 256 }
  0x27   : > { %p4697_p12 = scmp.ne.s32.totalorder %s6169_s4, %s4696_s22  ;;  %p4703_p5 = scmp.lt.u32.totalorder %s4696_s22, %s6169_s4 }
  0x29   : > { %p4699_p0 = pnand %p5103_p13, %p4697_p12 }
  0x2b   : > { %p4700_p3 = pneg %p4699_p0 }
  0x2d   : > { %p4705_p7 = pnand %p4703_p5, %p4700_p3 }
  0x2f   : > { %4708 = shalt.err (!%p4705_p7)
}
  0x30   : > { %s4709_s27 = scalar_lea.vmem %s481_s2, 256  ;;  %p4717_p2 = scmp.lt.s32.totalorder %s481_s2, %s481_s2 }
  0x31   : > { %p4710_p10 = scmp.ne.s32.totalorder %s481_s2, %s4709_s27  ;;  %p4718_p6 = scmp.lt.s32.totalorder %s4709_s27, %s4709_s27 }
  0x33   : > { %p4712_p9 = pnand %p4710_p10, %p5103_p13  ;;  %p4719_p4 = por %p4718_p6, %p4717_p2 }
  0x35   : > { %p4713_p1 = pneg %p4712_p9 }
  0x37   : > { %p4720_p8 = pnand %p4719_p4, %p4713_p1 }
  0x39   : > { %4723 = shalt.err (!%p4720_p8)
}
  0x3a   : > { %4418 = dma.hbm_to_vmem [thread:$0]  (!%p5087_p11), %s6169_s4, 256, %s481_s2, [#allocation7]  }
  0x3b   : > { %s6171_s14 = sld [smem:[#allocation28_spill]] }
  0x41   : > { %s4724_s22 = scalar_lea.hbm %s6171_s14, 1024 }
  0x42   : > { %p4725_p9 = scmp.ne.s32.totalorder %s6171_s14, %s4724_s22  ;;  %p4731_p1 = scmp.lt.u32.totalorder %s4724_s22, %s6171_s14 }
  0x44   : > { %p4727_p12 = pnand %p4725_p9, %p5103_p13 }
  0x46   : > { %p4728_p2 = pneg %p4727_p12 }
  0x48   : > { %p4733_p4 = pnand %p4731_p1, %p4728_p2 }
  0x4a   : > { %4736 = shalt.err (!%p4733_p4)
}
  0x4b   : > { %s4737_s2 = scalar_lea.vmem %s5091_s24, 1024  ;;  %p4745_p3 = scmp.lt.s32.totalorder %s5091_s24, %s5091_s24 }
  0x4c   : > { %p4738_p6 = scmp.ne.s32.totalorder %s5091_s24, %s4737_s2  ;;  %p4746_p5 = scmp.lt.s32.totalorder %s4737_s2, %s4737_s2 }
  0x4e   : > { %p4740_p8 = pnand %p4738_p6, %p5103_p13  ;;  %p4747_p7 = por %p4746_p5, %p4745_p3 }
  0x50   : > { %p4741_p0 = pneg %p4740_p8 }
  0x52   : > { %p4748_p10 = pnand %p4747_p7, %p4741_p0 }
  0x54   : > { %4751 = shalt.err (!%p4748_p10)
}
  0x55   : > { %s4923_s13 = smov 64   ;;  %s4924_s12 = smov 4  }
  0x56   : > { %4421 = dma.hbm_to_vmem [thread:$0]  (!%p5087_p11), %s6171_s14, 1024, %s5091_s24, [#allocation10], %s4923_s13, %s4923_s13, %s4924_s12  }
  0x57   : > { %s6172_s16 = sld [smem:[#allocation30_spill]] }
  0x5d   : > { %s4752_s22 = scalar_lea.hbm %s6172_s16, 1024 }
  0x5e   : > { %p4753_p9 = scmp.ne.s32.totalorder %s6172_s16, %s4752_s22  ;;  %p4759_p1 = scmp.lt.u32.totalorder %s4752_s22, %s6172_s16 }
  0x60   : > { %p4755_p12 = pnand %p4753_p9, %p5103_p13 }
  0x62   : > { %p4756_p2 = pneg %p4755_p12 }
  0x64   : > { %p4761_p4 = pnand %p4759_p1, %p4756_p2 }
  0x66   : > { %4764 = shalt.err (!%p4761_p4)
}
  0x67   : > { %s4765_s17 = scalar_lea.vmem %s534_s19, 1024  ;;  %p4773_p3 = scmp.lt.s32.totalorder %s534_s19, %s534_s19 }
  0x68   : > { %p4766_p6 = scmp.ne.s32.totalorder %s534_s19, %s4765_s17  ;;  %p4774_p5 = scmp.lt.s32.totalorder %s4765_s17, %s4765_s17 }
  0x6a   : > { %p4768_p8 = pnand %p4766_p6, %p5103_p13  ;;  %p4775_p7 = por %p4774_p5, %p4773_p3 }
  0x6c   : > { %p4769_p0 = pneg %p4768_p8 }
  0x6e   : > { %p4776_p10 = pnand %p4775_p7, %p4769_p0 }
  0x70   : > { %4779 = shalt.err (!%p4776_p10)
}
  0x71   : > { %4424 = dma.hbm_to_vmem [thread:$0]  (!%p5087_p11), %s6172_s16, 1024, %s534_s19, [#allocation10], %s4923_s13, %s4923_s13, %s4924_s12  }
  0x72   : > { %s5162_s4 = sadd.s32 1, %s4918_s30   ;;  %s97_s23 = sadd.s32 1, %s4914_s29 }
  0x73   : > { %s94_s25 = ssub.s32 %s4918_s30, %s5162_s4  ;;  %p104_p9 = scmp.ne.s32.totalorder %s4914_s29, %s4910_s28 }
  0x74   : > { %p95_p13 = scmp.eq.s32.totalorder %s94_s25, 0  ;;  %p105_p12 = scmp.eq.s32.totalorder %s4918_s30, 0 }
  0x75   : > { %p4439_p2 = scmp.lt.s32.totalorder %s4918_s30, 2  ;;  %p6174_p4 = scmp.eq.s32.totalorder %s5059_s0, 1 }
  0x76   : > { %s5172_s15 = scalar_select %p95_p13, %s4914_s29, %s97_s23  }
  0x77   : > { %p106_p1 = por %p105_p12, %p104_p9  ;;  %p5176_p6 = por %p6174_p4, %p104_p9 }
  0x78   : > { %6173 = sst [smem:[#allocation21_spill]] %s5172_s15  ;;  %s568_s22 = sand.u32 1, %s4914_s29  }
  0x79   : > { %s6148_s26 = sshll.u32 %s4918_s30, 6  ;;  %s5182_s19 = sshll.u32 %s568_s22, 2 }
  0x7a   : > { %s6176_s27 = sld [smem:[#allocation24_spill]]  ;;  %s572_s24 = scalar_lea.vmem [#allocation3], %s5182_s19 }
  0x7b   : > { %s579_s18 = sshll.u32 %s572_s24, 4  ;;  %p5192_p11 = pnand %p4439_p2, %p106_p1  ;;  %s5196_s18 = int_to_ptr.vmem [resolvable:$true] %s579_s18 }
  0x7c   : > { %s5198_s23 = scalar_lea.sflag [#allocation4], %s568_s22 }
  0x7d   : > { %p4782_p0 = pneg %p5192_p11 }
  0x80   : > { %s6177_s2 = smov %s6176_s27  ;;  %s5189_s17 = scalar_lea.hbm %s6176_s27, %s6148_s26 }
  0x81   : > { %s4780_s13 = scalar_lea.hbm %s5189_s17, 64  ;;  %s4785_s24 = scalar_lea.hbm %s6177_s2, 128 }
  0x82   : > { %p4781_p8 = scmp.ne.s32.totalorder %s5189_s17, %s4780_s13  ;;  %p4786_p7 = scmp.lt.u32.totalorder %s5189_s17, %s6177_s2 }
  0x83   : > { %p4787_p10 = scmp.lt.u32.totalorder %s4785_s24, %s4780_s13  ;;  %p4789_p9 = scmp.lt.u32.totalorder %s4780_s13, %s5189_s17 }
  0x84   : > { %p4783_p3 = pnand %p4782_p0, %p4781_p8 }
  0x85   : > { %p4788_p13 = por %p4787_p10, %p4786_p7 }
  0x86   : > { %p4784_p5 = pneg %p4783_p3 }
  0x87   : > { %p4790_p12 = por %p4789_p9, %p4788_p13 }
  0x89   : > { %p4791_p2 = pnand %p4790_p12, %p4784_p5 }
  0x8b   : > { %4794 = shalt.err (!%p4791_p2)
}
  0x8c   : > { %s4795_s22 = scalar_lea.vmem %s5196_s18, 64  ;;  %s4925_s12 = smov [#allocation3]  }
  0x8d   : > { %p4796_p1 = scmp.ne.s32.totalorder %s5196_s18, %s4795_s22  ;;  %s4800_s27 = sshll.u32 %s4925_s12, 4  ;;  %s4801_s27 = int_to_ptr.vmem [resolvable:$false] %s4800_s27 }
  0x8e   : > { %s4802_s14 = scalar_lea.vmem %s4801_s27, 128  ;;  %p4803_p3 = scmp.lt.s32.totalorder %s5196_s18, %s4801_s27 }
  0x8f   : > { %p4798_p4 = pnand %p4796_p1, %p4782_p0  ;;  %p4804_p7 = scmp.lt.s32.totalorder %s4802_s14, %s4795_s22 }
  0x91   : > { %p4799_p8 = pneg %p4798_p4  ;;  %p4805_p10 = por %p4804_p7, %p4803_p3 }
  0x93   : > { %p4806_p13 = pnand %p4805_p10, %p4799_p8 }
  0x95   : > { %4809 = shalt.err (!%p4806_p13)
}
  0x96   : > { %s4926_s26 = smov 16   ;;  %s4927_s13 = smov 1  }
  0x97   : > { %4428 = dma.hbm_to_vmem [thread:$0]  (!%p5192_p11), %s5189_s17, 64, %s5196_s18, %s5198_s23, %s4926_s26, %s4926_s26, %s4927_s13  }
  0x98   : > { %s6179_s24 = sshll.u32 %s4918_s30, 6  ;;  %s593_s14 = scalar_lea.vmem [#allocation6], %s5182_s19 }
  0x99   : > { %s5234_s27 = scalar_lea.hbm %s6125_s3, %s6179_s24  ;;  %s600_s2 = sshll.u32 %s593_s14, 4  ;;  %s5238_s2 = int_to_ptr.vmem [resolvable:$true] %s600_s2 }
  0x9a   : > { %s589_s16 = sand.u32 1, %s4918_s30   ;;  %s4810_s29 = scalar_lea.hbm %s5234_s27, 64 }
  0x9b   : > { %s5240_s15 = scalar_lea.sflag [#allocation7], %s589_s16  ;;  %p4811_p5 = scmp.ne.s32.totalorder %s5234_s27, %s4810_s29 }
  0x9c   : > { %s4815_s23 = scalar_lea.hbm %s6125_s3, 128  ;;  %p4816_p2 = scmp.lt.u32.totalorder %s5234_s27, %s6125_s3 }
  0x9d   : > { %p4813_p9 = pnand %p4811_p5, %p4782_p0  ;;  %p4817_p1 = scmp.lt.u32.totalorder %s4815_s23, %s4810_s29 }
  0x9e   : > { %p4819_p8 = scmp.lt.u32.totalorder %s4810_s29, %s5234_s27 }
  0x9f   : > { %p4814_p12 = pneg %p4813_p9  ;;  %p4818_p4 = por %p4817_p1, %p4816_p2 }
  0xa1   : > { %p4820_p3 = por %p4819_p8, %p4818_p4 }
  0xa3   : > { %p4821_p7 = pnand %p4820_p3, %p4814_p12 }
  0xa5   : > { %4824 = shalt.err (!%p4821_p7)
}
  0xa6   : > { %s4825_s16 = scalar_lea.vmem %s5238_s2, 64  ;;  %s4928_s19 = smov [#allocation6]  }
  0xa7   : > { %p4826_p10 = scmp.ne.s32.totalorder %s5238_s2, %s4825_s16  ;;  %s4830_s12 = sshll.u32 %s4928_s19, 4  ;;  %s4831_s12 = int_to_ptr.vmem [resolvable:$false] %s4830_s12 }
  0xa8   : > { %s4832_s14 = scalar_lea.vmem %s4831_s12, 128  ;;  %p4833_p9 = scmp.lt.s32.totalorder %s5238_s2, %s4831_s12 }
  0xa9   : > { %p4828_p13 = pnand %p4826_p10, %p4782_p0  ;;  %p4834_p2 = scmp.lt.s32.totalorder %s4832_s14, %s4825_s16 }
  0xab   : > { %p4829_p5 = pneg %p4828_p13  ;;  %p4835_p1 = por %p4834_p2, %p4833_p9 }
  0xad   : > { %p4836_p4 = pnand %p4835_p1, %p4829_p5 }
  0xaf   : > { %4839 = shalt.err (!%p4836_p4)
}
  0xb0   : > { %4431 = dma.hbm_to_vmem [thread:$0]  (!%p5192_p11), %s5234_s27, 64, %s5238_s2, %s5240_s15, %s4926_s26, %s4926_s26, %s4927_s13  }
  0xb1   : > { %p6180_p0 = scmp.ne.s32.totalorder %s6167_s21, 0 }
  0xb2   : > { %s5272_s29 = sand.u32 (!%p6180_p0), 1, %s4910_s28   ;;  %p6181_p12 = scmp.ne.s32.totalorder (!%p6180_p0), %s6164_s1, 0 }
  0xb3   : > { %612 = sbr.rel (%p6180_p0) target bundleno = 4586 (0x11ea), region = 92  ;;  %s3905_s17 = sshll.u32 (!%p6180_p0), %s5272_s29, 2 }
  0xb4   : > { %s615_s18 = scalar_lea.sflag (!%p6180_p0), [#allocation4], %s5272_s29  ;;  %s5276_s23 = scalar_lea.vmem (!%p6180_p0), [#allocation3], %s3905_s17 }
  0xba   : > { %4885 = dma.done.wait (%p6181_p12), %s615_s18, 64  }
  0xbb   : > { %4887 = vsyncadd (%p6181_p12), %s615_s18, 4294967232  ;;  %s623_s15 = sand.u32 1, %s5059_s0   ;;  %s5283_s2 = scalar_lea.vmem [#allocation6], %s3905_s17 }
  0xbc   : > { %s624_s21 = scalar_lea.sflag [#allocation7], %s623_s15 }
  0xbd   : > { %4889 = dma.done.wait (%p6181_p12), %s624_s21, 64  }
  0xbe   : > { %4891 = vsyncadd (%p6181_p12), %s624_s21, 4294967232  ;;  %p6182_p11 = scmp.eq.s32.totalorder %s5059_s0, 0 }
  0xc0   : > { %4893 = dma.done.wait (%p6182_p11), [#allocation7], 256   ;;  %p6183_p8 = pmov %p6182_p11 }
  0xc2   : > { %4895 = vsyncadd (%p6183_p8), [#allocation7], 4294967040  ;;  %p6184_p3 = pmov %p6183_p8 }
  0xc4   : > { %4897 = dma.done.wait (%p6184_p3), [#allocation10], 2048   ;;  %p6185_p7 = pmov %p6184_p3 }
  0xc5   : > { %s3911_s25 = sshll.u32 %s5059_s0, 2  ;;  %v4929_v0 = vmov 1   ;;  %v4930_v1 = vmov 0   ;;  %s6186_s27 = sld [smem:[#allocation23_spill]]  ;;  %v4931_v4 = vmov 2   ;;  %v4932_v5 = vmov 3  }
  0xc6   : > { %4899 = vsyncadd (%p6185_p7), [#allocation10], 4294965248  ;;  %4497 = vset.pattern.permute.xlu1 %v4929_v0  ;;  %4496 = vset.pattern.permute.xlu0 %v4930_v1  ;;  %p708_p10 = scmp.lt.s32.totalorder %s3911_s25, 7  ;;  %v4933_v6 = vmov 5   ;;  %v4934_v7 = vmov 4   ;;  %v4935_v8 = vmov 6   ;;  %v762_v15 = vlaneseq }
  0xc7   : > { %1339 = vmatprep.mubr.bf16.mxu0 %v4930_v1  ;;  %v732_v11 = vld [vmem:[%s5276_s23 + $0x1] sm:$0x1]  ;;  %v731_v12 = vld [vmem:[%s5276_s23] sm:$0x1]  ;;  %v733_v13 = vld [vmem:[%s5276_s23 + $0x2] sm:$0x1] }
  0xc8   : > { %s6211_s25 = smov (!%p708_p10, %s3911_s25), 7  ;;  %1054 = vst [vmem:[#allocation2 + $0xf] sm:$0x1] %v732_v11  ;;  %1053 = vst [vmem:[#allocation2 + $0x7] sm:$0x1] %v731_v12  ;;  %v763_v18 = vshrl.u32 %v762_v15, 7 }
  0xc9   : > { %s3912_s1 = sshll.u32 %s6211_s25, 3  ;;  %1055 = vst [vmem:[#allocation2 + $0x17] sm:$0x1] %v733_v13  ;;  %v734_v14 = vld [vmem:[%s5276_s23 + $0x3] sm:$0x1]  ;;  %s6187_s14 = sld [smem:[#allocation22_spill]] }
  0xca   : > { %1056 = vst [vmem:[#allocation2 + $0x1f] sm:$0x1] %v734_v14  ;;  %v5319_v21 = vsub.s32 0, %v763_v18  ;;  %v739_v22 = vld [vmem:[#allocation8] sm:$0x7f]  ;;  %v5321_v24 = vsub.s32 1, %v763_v18 }
  0xcb   : > { %s5308_s24 = scalar_lea.vmem %s6186_s27, %s3912_s1  ;;  %v740_v23 = vld [vmem:[#allocation8 + $0x8] sm:$0x7f]  ;;  %v741_v28 = vld [vmem:[%s6127_s5] sm:$0x3]  ;;  %v5334_v32 = vsub.s32 2, %v763_v18  ;;  %v895_v45 = vsub.s32 3, %v763_v18 }
  0xcc   : > { %v727_v2 = vld [vmem:[%s5308_s24] sm:$0x7f]  ;;  %v728_v3 = vld [vmem:[%s5308_s24 + $0x8] sm:$0x7f]  ;;  %v729_v9 = vld [vmem:[%s5308_s24 + $0x10] sm:$0x7f]  ;;  %v5324_v25 = vrot.slane %v739_v22, %v5319_v21  ;;  %v5327_v26 = vrot.slane %v740_v23, %v5319_v21  ;;  %v5337_v33 = vrot.slane %v741_v28, %v5319_v21  ;;  %v5340_v34 = vrot.slane %v741_v28, %v5321_v24 }
  0xcd   : > { %798 = vperm.xlu1 %4497, %v727_v2   ;;  %744 = vperm.xlu0 %4496, %v727_v2   ;;  %v730_v10 = vld [vmem:[%s5308_s24 + $0x18] sm:$0x7f]  ;;  %v5343_v35 = vrot.slane %v739_v22, %v5321_v24  ;;  %v5346_v36 = vrot.slane %v740_v23, %v5321_v24  ;;  %v5353_v41 = vrot.slane %v739_v22, %v5334_v32  ;;  %v935_v46 = vsub.s32 4, %v763_v18  ;;  %s4939_s26 = smov 64   ;;  %s4940_s13 = smov 32  }
  0xce   : > { %v5356_v42 = vrot.slane %v740_v23, %v5334_v32  ;;  %v975_v53 = vsub.s32 5, %v763_v18  ;;  %v5362_v54 = vrot.slane %v739_v22, %v895_v45  ;;  %v5364_v55 = vrot.slane %v740_v23, %v895_v45  ;;  %s6196_s19 = sld [smem:[#allocation26_spill]]  ;;  %s6198_s15 = sld [smem:[#allocation29_spill]] }
  0xcf   : > { %v5366_v56 = vrot.slane %v739_v22, %v935_v46  ;;  %v5368_v57 = vrot.slane %v740_v23, %v935_v46  ;;  %v1015_v62 = vsub.s32 6, %v763_v18  ;;  %s5395_s17 = scalar_lea.vmem %s6187_s14, %s3912_s1  ;;  %vm4937_vm0 = vmmov 0   ;;  %s6199_s1 = sld [smem:[#allocation31_spill]] }
  0xd0   : > { %v5384_v13 = vrot.slane %v740_v23, %v975_v53  ;;  %vm1417_vm1 = vcmask 261120   ;;  %vm1690_vm2 = vcmask 1043456   ;;  %vm1634_vm6 = vcmask 64512   ;;  %s4009_s24 = sshll.u32 %s5059_s0, 8  ;;  %s3731_s14 = scalar_lea.sflag [#allocation5], %s5272_s29 }
  0xd1   : > { %802 = vperm.xlu1 %4497, %v728_v3   ;;  %749 = vperm.xlu0 %4496, %v728_v3   ;;  %v5386_v14 = vrot.slane %v739_v22, %v1015_v62  ;;  %v5388_v15 = vrot.slane %v740_v23, %v1015_v62  ;;  %vm3268_vm12 = vcmask 523264   ;;  %vm3273_vm13 = vcmask 785408  }
  0xd5   : > { %4498 = vset.pattern.permute.xlu1 %v4931_v4  ;;  %4500 = vset.pattern.permute.xlu0 %v4932_v5 }
  0xd6   : > { %842 = vperm.xlu1 %4498, %v728_v3   ;;  %882 = vperm.xlu0 %4500, %v728_v3  }
  0xda   : > { %4499 = vset.pattern.permute.xlu1 %v4932_v5  ;;  %4502 = vset.pattern.permute.xlu0 %v4933_v6 }
  0xdb   : > { %878 = vperm.xlu1 %4499, %v727_v2   ;;  %958 = vperm.xlu0 %4502, %v727_v2  }
  0xdf   : > { %4501 = vset.pattern.permute.xlu1 %v4934_v7  ;;  %4505 = vset.pattern.permute.xlu0 %v4935_v8 }
  0xe0   : > { %918 = vperm.xlu1 %4501, %v727_v2   ;;  %1002 = vperm.xlu0 %4505, %v728_v3  }
  0xe4   : > { %922 = vperm.xlu1 %4501, %v728_v3   ;;  %4507 = vset.pattern.permute.xlu0 %v4929_v0 }
  0xe5   : > { %806 = vperm.xlu0 %4507, %v729_v9  }
  0xe8   : > { %4503 = vset.pattern.permute.xlu1 %v4933_v6 }
  0xe9   : > { %962 = vperm.xlu1 %4503, %v728_v3   ;;  %4508 = vset.pattern.permute.xlu0 %v4931_v4 }
  0xea   : > { %838 = vperm.xlu0 %4508, %v727_v2  }
  0xed   : > { %4504 = vset.pattern.permute.xlu1 %v4935_v8 }
  0xee   : > { %998 = vperm.xlu1 %4504, %v727_v2   ;;  %850 = vperm.xlu0 %4508, %v730_v10  }
  0xf2   : > { %4506 = vset.pattern.permute.xlu1 %v4930_v1  ;;  %4512 = vset.pattern.permute.xlu0 %v4934_v7 }
  0xf3   : > { %754 = vperm.xlu1 %4506, %v729_v9   ;;  %926 = vperm.xlu0 %4512, %v729_v9  }
  0xf7   : > { %759 = vperm.xlu1 %4506, %v730_v10   ;;  %4515 = vset.pattern.permute.xlu0 %v4933_v6 }
  0xf8   : > { %970 = vperm.xlu0 %4515, %v730_v10  }
  0xfb   : > { %4509 = vset.pattern.permute.xlu1 %v4929_v0  ;;  %v5372_v0 = vrot.slane %v739_v22, %v975_v53 }
  0xfc   : > { %810 = vperm.xlu1 %4509, %v730_v10   ;;  %4547 = vset.pattern.permute.xlu0 %v4935_v8 }
 0x100   : > { %4510 = vset.pattern.permute.xlu1 %v4931_v4 }
 0x101   : > { %846 = vperm.xlu1 %4510, %v729_v9  }
 0x105   : > { %4511 = vset.pattern.permute.xlu1 %v4932_v5 }
 0x106   : > { %886 = vperm.xlu1 %4511, %v729_v9  }
 0x10a   : > { %890 = vperm.xlu1 %4511, %v730_v10  }
 0x10e   : > { %4513 = vset.pattern.permute.xlu1 %v4934_v7 }
 0x10f   : > { %930 = vperm.xlu1 %4513, %v730_v10  }
 0x113   : > { %4514 = vset.pattern.permute.xlu1 %v4933_v6 }
 0x114   : > { %966 = vperm.xlu1 %4514, %v729_v9  }
 0x118   : > { %4516 = vset.pattern.permute.xlu1 %v4935_v8 }
 0x119   : > { %1006 = vperm.xlu1 %4516, %v729_v9  }
 0x11d   : > { %1010 = vperm.xlu1 %4516, %v730_v10  }
 0x14c   : > { %v799_v16 = vpop.permute.xlu1 %798  ;;  %v745_v17 = vpop.permute.xlu0 %744 }
 0x14d   : > { %v770_v58 = vmul.f32 %v5324_v25, %v745_v17  ;;  %v771_v59 = vmul.f32 %v5327_v26, %v745_v17  ;;  %v821_v7 = vmul.f32 %v5343_v35, %v799_v16  ;;  %v822_v8 = vmul.f32 %v5346_v36, %v799_v16 }
 0x14f   : > { %v789_v9 = vadd.f32 %v5337_v33, %v770_v58  ;;  %v790_v10 = vadd.f32 %v5340_v34, %v771_v59 }
 0x150   : > { %v803_v19 = vpop.permute.xlu1 %802  ;;  %v750_v20 = vpop.permute.xlu0 %749 }
 0x151   : > { %v772_v30 = vmul.f32 %v5324_v25, %v750_v20  ;;  %v773_v31 = vmul.f32 %v5327_v26, %v750_v20  ;;  %v823_v43 = vmul.f32 %v5343_v35, %v803_v19  ;;  %v824_v44 = vmul.f32 %v5346_v36, %v803_v19 }
 0x152   : > { %v829_v28 = vadd.f32 %v821_v7, %v789_v9  ;;  %v830_v22 = vadd.f32 %v822_v8, %v790_v10  ;;  %v723_v8 = vld [vmem:[%s5395_s17] sm:$0x7f] }
 0x153   : > { %v791_v39 = vadd.f32 %v5337_v33, %v772_v30  ;;  %v792_v40 = vadd.f32 %v5340_v34, %v773_v31 }
 0x155   : > { %v883_v27 = vpop.permute.xlu0 %882  ;;  %v843_v29 = vpop.permute.xlu1 %842  ;;  %v831_v47 = vadd.f32 %v823_v43, %v791_v39  ;;  %v832_v48 = vadd.f32 %v824_v44, %v792_v40  ;;  %v724_v44 = vld [vmem:[%s5395_s17 + $0x8] sm:$0x7f] }
 0x156   : > { %v863_v49 = vmul.f32 %v5353_v41, %v843_v29  ;;  %v864_v50 = vmul.f32 %v5356_v42, %v843_v29  ;;  %v903_v3 = vmul.f32 %v5362_v54, %v883_v27  ;;  %v904_v4 = vmul.f32 %v5364_v55, %v883_v27 }
 0x158   : > { %v871_v60 = vadd.f32 %v863_v49, %v831_v47  ;;  %v872_v61 = vadd.f32 %v864_v50, %v832_v48 }
 0x15a   : > { %v5348_v37 = vpop.permute.xlu0 %958  ;;  %v879_v38 = vpop.permute.xlu1 %878  ;;  %v911_v11 = vadd.f32 %v903_v3, %v871_v60  ;;  %v912_v12 = vadd.f32 %v904_v4, %v872_v61 }
 0x15b   : > { %v901_v40 = vmul.f32 %v5362_v54, %v879_v38  ;;  %v902_v43 = vmul.f32 %v5364_v55, %v879_v38  ;;  %v981_v60 = vmul.f32 %v5372_v0, %v5348_v37  ;;  %v982_v38 = vmul.f32 %v5384_v13, %v5348_v37 }
 0x15f   : > { %v919_v51 = vpop.permute.xlu1 %918  ;;  %v1003_v52 = vpop.permute.xlu0 %1002 }
 0x160   : > { %v1023_v30 = vmul.f32 %v5386_v14, %v1003_v52  ;;  %v1024_v47 = vmul.f32 %v5388_v15, %v1003_v52  ;;  %v941_v50 = vmul.f32 %v5366_v56, %v919_v51  ;;  %v942_v53 = vmul.f32 %v5368_v57, %v919_v51 }
 0x163   : > { %v923_v63 = vpop.permute.xlu1 %922 }
 0x164   : > { %v5374_v2 = vpop.permute.xlu0 %806  ;;  %v943_v5 = vmul.f32 %v5366_v56, %v923_v63  ;;  %v944_v6 = vmul.f32 %v5368_v57, %v923_v63 }
 0x166   : > { %v951_v18 = vadd.f32 %v943_v5, %v911_v11  ;;  %v952_v19 = vadd.f32 %v944_v6, %v912_v12 }
 0x168   : > { %v963_v17 = vpop.permute.xlu1 %962 }
 0x169   : > { %v983_v16 = vmul.f32 %v5372_v0, %v963_v17  ;;  %v984_v20 = vmul.f32 %v5384_v13, %v963_v17  ;;  %v839_v27 = vpop.permute.xlu0 %838 }
 0x16a   : > { %v861_v23 = vmul.f32 %v5353_v41, %v839_v27  ;;  %v862_v29 = vmul.f32 %v5356_v42, %v839_v27 }
 0x16b   : > { %v991_v31 = vadd.f32 %v983_v16, %v951_v18  ;;  %v992_v39 = vadd.f32 %v984_v20, %v952_v19 }
 0x16c   : > { %v869_v45 = vadd.f32 %v861_v23, %v829_v28  ;;  %v870_v46 = vadd.f32 %v862_v29, %v830_v22 }
 0x16d   : > { %v1031_v48 = vadd.f32 %v1023_v30, %v991_v31  ;;  %v999_v49 = vpop.permute.xlu1 %998  ;;  %v1032_v61 = vadd.f32 %v1024_v47, %v992_v39  ;;  %v851_v39 = vpop.permute.xlu0 %850 }
 0x16e   : > { %v909_v58 = vadd.f32 %v901_v40, %v869_v45  ;;  %v910_v59 = vadd.f32 %v902_v43, %v870_v46  ;;  %v1021_v52 = vmul.f32 %v5386_v14, %v999_v49  ;;  %v1022_v51 = vmul.f32 %v5388_v15, %v999_v49 }
 0x16f   : > { %v1038_v62 = vmul.f32 %v1031_v48, %v724_v44  ;;  %v825_v46 = vmul.f32 %v5343_v35, %v5374_v2 }
 0x170   : > { %v949_v63 = vadd.f32 %v941_v50, %v909_v58  ;;  %v950_v3 = vadd.f32 %v942_v53, %v910_v59 }
 0x171   : > { %v1042_v4 = vadd.f32 %v1038_v62, %v1032_v61  ;;  %v867_v62 = vmul.f32 %v5353_v41, %v851_v39 }
 0x172   : > { %v989_v5 = vadd.f32 %v981_v60, %v949_v63  ;;  %v990_v6 = vadd.f32 %v982_v38, %v950_v3  ;;  %v755_v7 = vpop.permute.xlu1 %754  ;;  %v927_v60 = vpop.permute.xlu0 %926 }
 0x173   : > { %4604 = vtanh.f32 %v1042_v4  ;;  %v774_v28 = vmul.f32 %v5324_v25, %v755_v7  ;;  %v775_v22 = vmul.f32 %v5327_v26, %v755_v7  ;;  %v946_v4 = vmul.f32 %v5368_v57, %v927_v60 }
 0x174   : > { %v1029_v9 = vadd.f32 %v1021_v52, %v989_v5  ;;  %v1030_v10 = vadd.f32 %v1022_v51, %v990_v6  ;;  %v868_v51 = vmul.f32 %v5356_v42, %v851_v39 }
 0x175   : > { %v793_v30 = vadd.f32 %v5337_v33, %v774_v28  ;;  %v794_v40 = vadd.f32 %v5340_v34, %v775_v22 }
 0x176   : > { %v1037_v11 = vmul.f32 %v1029_v9, %v723_v8  ;;  %v760_v12 = vpop.permute.xlu1 %759 }
 0x177   : > { %v776_v23 = vmul.f32 %v5324_v25, %v760_v12  ;;  %v777_v31 = vmul.f32 %v5327_v26, %v760_v12  ;;  %v826_v25 = vmul.f32 %v5346_v36, %v5374_v2  ;;  %v833_v50 = vadd.f32 %v825_v46, %v793_v30 }
 0x178   : > { %v1041_v17 = vadd.f32 %v1037_v11, %v1030_v10 }
 0x179   : > { %v795_v43 = vadd.f32 %v5337_v33, %v776_v23  ;;  %v796_v49 = vadd.f32 %v5340_v34, %v777_v31  ;;  %v834_v59 = vadd.f32 %v826_v25, %v794_v40  ;;  %v945_v34 = vmul.f32 %v5366_v56, %v927_v60 }
 0x17a   : > { %4606 = vtanh.f32 %v1041_v17 }
 0x17b   : > { %v811_v18 = vpop.permute.xlu1 %810 }
 0x17c   : > { %v827_v44 = vmul.f32 %v5343_v35, %v811_v18  ;;  %v828_v33 = vmul.f32 %v5346_v36, %v811_v18 }
 0x17d   : > { %v4605_v37 = vpop.eup %4604 }
 0x17e   : > { %1050 = vst [vmem:[#allocation2 + $0x8] sm:$0x7f] %v4605_v37  ;;  %v835_v58 = vadd.f32 %v827_v44, %v795_v43  ;;  %v836_v63 = vadd.f32 %v828_v33, %v796_v49  ;;  %v726_v43 = vld [vmem:[%s5395_s17 + $0x18] sm:$0x7f] }
 0x180   : > { %v847_v19 = vpop.permute.xlu1 %846  ;;  %v875_v5 = vadd.f32 %v867_v62, %v835_v58  ;;  %v876_v10 = vadd.f32 %v868_v51, %v836_v63  ;;  %v4554_v63 = vld [vmem:[%s6128_s6 + $0x34] ss:$12 sps:$4 sm:$0xff]   ;;  %v4568_v51 = vld [vmem:[%s6128_s6 + $0x90] ss:$12 sps:$4 sm:$0xff]  }
 0x181   : > { %v865_v47 = vmul.f32 %v5353_v41, %v847_v19  ;;  %v866_v26 = vmul.f32 %v5356_v42, %v847_v19  ;;  %v971_v41 = vpop.permute.xlu0 %970 }
 0x182   : > { %v987_v37 = vmul.f32 %v5372_v0, %v971_v41  ;;  %v988_v22 = vmul.f32 %v5384_v13, %v971_v41  ;;  %v4571_v41 = vld [vmem:[%s6128_s6 + $0xa8] ss:$12 sps:$4 sm:$0xff]  }
 0x183   : > { %v873_v61 = vadd.f32 %v865_v47, %v833_v50  ;;  %v874_v38 = vadd.f32 %v866_v26, %v834_v59 }
 0x184   : > { %v4607_v16 = vpop.eup %4606 }
 0x185   : > { %1049 = vst [vmem:[#allocation2] sm:$0x7f] %v4607_v16  ;;  %v887_v20 = vpop.permute.xlu1 %886  ;;  %v5415_v27 = vld [vmem:[#allocation2 + $0x8] sm:$0xff] }
 0x186   : > { %1065 = vadd.xlane.f32.xlu1 %v5415_v27  ;;  %v905_v53 = vmul.f32 %v5362_v54, %v887_v20  ;;  %v906_v35 = vmul.f32 %v5364_v55, %v887_v20  ;;  %v725_v20 = vld [vmem:[%s5395_s17 + $0x10] sm:$0x7f]  ;;  %s6197_s17 = sld [smem:[#allocation27_spill]] }
 0x188   : > { %v913_v3 = vadd.f32 %v905_v53, %v873_v61  ;;  %v914_v36 = vadd.f32 %v906_v35, %v874_v38 }
 0x189   : > { %v891_v29 = vpop.permute.xlu1 %890 }
 0x18a   : > { %v907_v2 = vmul.f32 %v5362_v54, %v891_v29  ;;  %v908_v7 = vmul.f32 %v5364_v55, %v891_v29  ;;  %v953_v9 = vadd.f32 %v945_v34, %v913_v3  ;;  %v954_v17 = vadd.f32 %v946_v4, %v914_v36  ;;  %v4557_v3 = vld [vmem:[%s6128_s6 + $0x4c] ss:$12 sps:$4 sm:$0xff]   ;;  %v4559_v34 = vld [vmem:[%s6128_s6 + $0x48] ss:$12 sps:$4 sm:$0xff]  }
 0x18b   : > { %v4562_v36 = vld [vmem:[%s6128_s6 + $0x60] ss:$12 sps:$4 sm:$0xff]   ;;  %v4563_v4 = vld [vmem:[%s6128_s6 + $0x7c] ss:$12 sps:$4 sm:$0xff]  }
 0x18c   : > { %v5426_v45 = vld [vmem:[#allocation2] sm:$0xff]  ;;  %v915_v54 = vadd.f32 %v907_v2, %v875_v5  ;;  %v916_v42 = vadd.f32 %v908_v7, %v876_v10  ;;  %v4551_v2 = vld [vmem:[%s6128_s6 + $0x1c] ss:$12 sps:$4 sm:$0xff]   ;;  %v4569_v7 = vld [vmem:[%s6128_s6 + $0xac] ss:$12 sps:$4 sm:$0xff]  }
 0x18d   : > { %1063 = vadd.xlane.f32.xlu0 %v5426_v45  ;;  %v4565_v5 = vld [vmem:[%s6128_s6 + $0x78] ss:$12 sps:$4 sm:$0xff]  }
 0x18e   : > { %v931_v48 = vpop.permute.xlu1 %930 }
 0x18f   : > { %v947_v6 = vmul.f32 %v5366_v56, %v931_v48  ;;  %v948_v11 = vmul.f32 %v5368_v57, %v931_v48 }
 0x191   : > { %v955_v18 = vadd.f32 %v947_v6, %v915_v54  ;;  %v956_v28 = vadd.f32 %v948_v11, %v916_v42  ;;  %v4566_v6 = vld [vmem:[%s6128_s6 + $0x94] ss:$12 sps:$4 sm:$0xff]   ;;  %v4574_v42 = vld [vmem:[%s6128_s6 + $0x38] ss:$12 sps:$4 sm:$0xff]  }
 0x193   : > { %v967_v52 = vpop.permute.xlu1 %966  ;;  %v995_v29 = vadd.f32 %v987_v37, %v955_v18  ;;  %v996_v44 = vadd.f32 %v988_v22, %v956_v28  ;;  %v4573_v18 = vld [vmem:[%s6128_s6 + $0x20] ss:$12 sps:$4 sm:$0xff]   ;;  %v4579_v28 = vld [vmem:[%s6128_s6 + $0xb0] ss:$12 sps:$4 sm:$0xff]  }
 0x194   : > { %v985_v8 = vmul.f32 %v5372_v0, %v967_v52  ;;  %v986_v12 = vmul.f32 %v5384_v13, %v967_v52  ;;  %v4560_v52 = vld [vmem:[%s6128_s6 + $0x64] ss:$12 sps:$4 sm:$0xff]  }
 0x196   : > { %v993_v19 = vadd.f32 %v985_v8, %v953_v9  ;;  %v994_v23 = vadd.f32 %v986_v12, %v954_v17  ;;  %v4572_v17 = vld [vmem:[%s6128_s6 + $0x8] ss:$12 sps:$4 sm:$0xff]  }
 0x197   : > { %4125 = vmatprep.subr.bf16.mxu1 %v4572_v17 }
 0x198   : > { %v1007_v56 = vpop.permute.xlu1 %1006  ;;  %4126 = vmatpush3.bf16.msra.mxu1 %v4572_v17 }
 0x199   : > { %v1025_v55 = vmul.f32 %v5386_v14, %v1007_v56  ;;  %v1026_v16 = vmul.f32 %v5388_v15, %v1007_v56  ;;  %4127 = vmatprep.subr.bf16.mxu1 %v4573_v18 }
 0x19b   : > { %v1033_v57 = vadd.f32 %v1025_v55, %v993_v19  ;;  %v1034_v31 = vadd.f32 %v1026_v16, %v994_v23  ;;  %v4575_v19 = vld [vmem:[%s6128_s6 + $0x50] ss:$12 sps:$4 sm:$0xff]   ;;  %v4576_v55 = vld [vmem:[%s6128_s6 + $0x68] ss:$12 sps:$4 sm:$0xff]   ;;  %v4577_v16 = vld [vmem:[%s6128_s6 + $0x80] ss:$12 sps:$4 sm:$0xff]  }
 0x19c   : > { %v1011_v30 = vpop.permute.xlu1 %1010  ;;  %4128 = vmatpush3.bf16.msra.mxu1 %v4573_v18 }
 0x19d   : > { %v1039_v39 = vmul.f32 %v1033_v57, %v725_v20  ;;  %v1027_v0 = vmul.f32 %v5386_v14, %v1011_v30  ;;  %v1028_v40 = vmul.f32 %v5388_v15, %v1011_v30  ;;  %v4548_v14 = vld [vmem:[%s6128_s6 + $0x4] ss:$12 sps:$4 sm:$0xff]   ;;  %v4550_v15 = vld [vmem:[%s6128_s6] ss:$12 sps:$4 sm:$0xff]   ;;  %4129 = vmatprep.subr.bf16.mxu1 %v4574_v42 }
 0x19e   : > { %1307 = vmatprep.subr.bf16.mxu0 %v4548_v14  ;;  %v4578_v20 = vld [vmem:[%s6128_s6 + $0x98] ss:$12 sps:$4 sm:$0xff]  }
 0x19f   : > { %v1043_v46 = vadd.f32 %v1039_v39, %v1034_v31  ;;  %v1035_v47 = vadd.f32 %v1027_v0, %v995_v29  ;;  %v1036_v25 = vadd.f32 %v1028_v40, %v996_v44  ;;  %1308 = vmatpush1.bf16.msra.mxu0 %v4550_v15  ;;  %v3915_v40 = vld [vmem:[%s6132_s10] ss:$0 sm:$0xff] }
 0x1a0   : > { %1309 = vmatprep.subr.bf16.mxu0 %v4551_v2  ;;  %4130 = vmatpush3.bf16.msra.mxu1 %v4574_v42 }
 0x1a1   : > { %4608 = vtanh.f32 %v1043_v46  ;;  %v1040_v26 = vmul.f32 %v1035_v47, %v726_v43  ;;  %4131 = vmatprep.subr.bf16.mxu1 %v4575_v19  ;;  %v3916_v47 = vld [vmem:[%s6133_s11] ss:$0 sm:$0xff] }
 0x1a3   : > { %v1044_v48 = vadd.f32 %v1040_v26, %v1036_v25 }
 0x1a4   : > { %4132 = vmatpush3.bf16.msra.mxu1 %v4575_v19 }
 0x1a5   : > { %4610 = vtanh.f32 %v1044_v48  ;;  %4133 = vmatprep.subr.bf16.mxu1 %v4576_v55 }
 0x1a8   : > { %4134 = vmatpush3.bf16.msra.mxu1 %v4576_v55 }
 0x1a9   : > { %4135 = vmatprep.subr.bf16.mxu1 %v4577_v16 }
 0x1ab   : > { %v4609_v13 = vpop.eup %4608 }
 0x1ac   : > { %1051 = vst [vmem:[#allocation2 + $0x10] sm:$0x7f] %v4609_v13  ;;  %4136 = vmatpush3.bf16.msra.mxu1 %v4577_v16 }
 0x1ad   : > { %4137 = vmatprep.subr.bf16.mxu1 %v4578_v20 }
 0x1af   : > { %v4611_v49 = vpop.eup %4610 }
 0x1b0   : > { %1052 = vst [vmem:[#allocation2 + $0x18] sm:$0x7f] %v4611_v49  ;;  %4138 = vmatpush3.bf16.msra.mxu1 %v4578_v20 }
 0x1b1   : > { %4139 = vmatprep.subr.bf16.mxu1 %v4579_v28 }
 0x1b3   : > { %v1059_v33 = vld [vmem:[#allocation2 + $0x10] sm:$0xff] }
 0x1b4   : > { %1067 = vadd.xlane.f32.xlu0 %v1059_v33  ;;  %4140 = vmatpush3.bf16.msra.mxu1 %v4579_v28 }
 0x1b7   : > { %v1060_v50 = vld [vmem:[#allocation2 + $0x18] sm:$0xff] }
 0x1b8   : > { %1069 = vadd.xlane.f32.xlu0 %v1060_v50 }
 0x213   : > { %v1066_v53 = vpop.xlane.xlu1 %1065 }
 0x214   : > { %v1073_v58 = vmul.f32 0.0078125, %v1066_v53 }
 0x216   : > { %v5464_v59 = vsub.f32 %v5415_v27, %v1073_v58  ;;  %v4553_v27 = vld [vmem:[%s6128_s6 + $0x18] ss:$12 sps:$4 sm:$0xff]  }
 0x217   : > { %1310 = vmatpush1.bf16.msra.mxu0 %v4553_v27 }
 0x218   : > { %v1081_v35 = vmul.f32 %v5464_v59, %v5464_v59  ;;  %1311 = vmatprep.subr.bf16.mxu0 %v4554_v63  ;;  %v4936_v63 = vmov 0.0  }
 0x219   : > { %4157 = vmatprep.subr.bf16.mxu1 %v4936_v63 }
 0x21a   : > { %1086 = vadd.xlane.f32.xlu0 %v1081_v35  ;;  %v1064_v60 = vpop.xlane.xlu0 %1063 }
 0x21b   : > { %v1072_v61 = vmul.f32 0.0078125, %v1064_v60 }
 0x21d   : > { %v5469_v62 = vsub.f32 %v5426_v45, %v1072_v61  ;;  %v4556_v45 = vld [vmem:[%s6128_s6 + $0x30] ss:$12 sps:$4 sm:$0xff]  }
 0x21e   : > { %1312 = vmatpush1.bf16.msra.mxu0 %v4556_v45  ;;  %v1162_v45 = vld [vmem:[%s6129_s7] sm:$0x7] }
 0x21f   : > { %v1080_v38 = vmul.f32 %v5469_v62, %v5469_v62  ;;  %1313 = vmatprep.subr.bf16.mxu0 %v4557_v3  ;;  %v1171_v3 = vrot.slane %v1162_v45, %v5321_v24 }
 0x221   : > { %1084 = vadd.xlane.f32.xlu1 %v1080_v38 }
 0x222   : > { %1314 = vmatpush1.bf16.msra.mxu0 %v4559_v34 }
 0x223   : > { %1315 = vmatprep.subr.bf16.mxu0 %v4560_v52 }
 0x226   : > { %1316 = vmatpush1.bf16.msra.mxu0 %v4562_v36 }
 0x227   : > { %1317 = vmatprep.subr.bf16.mxu0 %v4563_v4 }
 0x22a   : > { %1318 = vmatpush1.bf16.msra.mxu0 %v4565_v5 }
 0x22b   : > { %1319 = vmatprep.subr.bf16.mxu0 %v4566_v6  ;;  %v1167_v6 = vrot.slane %v1162_v45, %v5319_v21 }
 0x22e   : > { %1320 = vmatpush1.bf16.msra.mxu0 %v4568_v51 }
 0x22f   : > { %1321 = vmatprep.subr.bf16.mxu0 %v4569_v7 }
 0x232   : > { %1322 = vmatpush1.bf16.msra.mxu0 %v4571_v41 }
 0x233   : > { %4145 = vmatprep.subr.bf16.mxu0 %v4936_v63 }
 0x241   : > { %v1068_v8 = vpop.xlane.xlu0 %1067 }
 0x242   : > { %v1074_v54 = vmul.f32 0.0078125, %v1068_v8 }
 0x244   : > { %v5515_v9 = vsub.f32 %v1059_v33, %v1074_v54 }
 0x245   : > { %v1070_v10 = vpop.xlane.xlu0 %1069 }
 0x246   : > { %v1075_v11 = vmul.f32 0.0078125, %v1070_v10  ;;  %v1082_v12 = vmul.f32 %v5515_v9, %v5515_v9 }
 0x248   : > { %v1079_v37 = vsub.f32 %v1060_v50, %v1075_v11  ;;  %1088 = vadd.xlane.f32.xlu1 %v1082_v12  ;;  %v1175_v12 = vrot.slane %v1162_v45, %v5334_v32 }
 0x24a   : > { %v1083_v56 = vmul.f32 %v1079_v37, %v1079_v37 }
 0x24c   : > { %1090 = vadd.xlane.f32.xlu0 %v1083_v56 }
 0x2a7   : > { %v1087_v22 = vpop.xlane.xlu0 %1086 }
 0x2a8   : > { %v1093_v23 = vmul.f32 0.0078125, %v1087_v22 }
 0x2aa   : > { %v1097_v57 = vadd.f32 1e-05, %v1093_v23 }
 0x2ac   : > { %4612 = vrsqrt.f32 %v1097_v57 }
 0x2ae   : > { %v1085_v29 = vpop.xlane.xlu1 %1084 }
 0x2af   : > { %v1092_v30 = vmul.f32 0.0078125, %v1085_v29 }
 0x2b1   : > { %v1096_v31 = vadd.f32 1e-05, %v1092_v30 }
 0x2b3   : > { %4614 = vrsqrt.f32 %v1096_v31 }
 0x2b6   : > { %v4613_v39 = vpop.eup %4612 }
 0x2b7   : > { %v1105_v0 = vmul.f32 %v4613_v39, %v5464_v59 }
 0x2b9   : > { %v1115_v46 = vmul.f32 %v3915_v40, %v1105_v0 }
 0x2bb   : > { %v1125_v48 = vadd.f32 %v3916_v47, %v1115_v46 }
 0x2bd   : > { %v4615_v43 = vpop.eup %4614 }
 0x2be   : > { %v1104_v44 = vmul.f32 %v4615_v43, %v5469_v62 }
 0x2c0   : > { %v1114_v25 = vmul.f32 %v3915_v40, %v1104_v44 }
 0x2c2   : > { %v1124_v26 = vadd.f32 %v3916_v47, %v1114_v25 }
 0x2c4   : > { %v1128_v13 = vpack.c.bf16 %v1125_v48, %v1124_v26  ;;  %v735_v48 = vld [vmem:[%s5283_s2] sm:$0x1] }
 0x2c5   : > { %vm1602_vm3 = vcmp.gt.f32.partialorder %v735_v48, 0.0 }
 0x2c6   : > { %1340 = vmatmul.mubr.bf16.vlgmr.msra.gmra.mrb[0].mxu0 %v1128_v13  ;;  %4141 = vmatprep.mubr.bf16.mxu1 %v1128_v13  ;;  %v1606_v13 = vsel %vm1602_vm3, 1, %v4930_v1 }
 0x2c7   : > { %1349 = vmatprep.mubr.bf16.mxu0 %v4930_v1 }
 0x2d5   : > { %v1089_v49 = vpop.xlane.xlu1 %1088 }
 0x2d6   : > { %v1094_v33 = vmul.f32 0.0078125, %v1089_v49  ;;  %v736_v49 = vld [vmem:[%s5283_s2 + $0x1] sm:$0x1] }
 0x2d7   : > { %vm1603_vm4 = vcmp.gt.f32.partialorder %v736_v49, 0.0 }
 0x2d8   : > { %v1098_v50 = vadd.f32 1e-05, %v1094_v33  ;;  %v1613_v33 = vrot.slane %v1606_v13, %v5319_v21 }
 0x2d9   : > { %v1091_v14 = vpop.xlane.xlu0 %1090 }
 0x2da   : > { %4616 = vrsqrt.f32 %v1098_v50  ;;  %v1095_v15 = vmul.f32 0.0078125, %v1091_v14  ;;  %vm5627_vm5 = vcmp.eq.s32.totalorder %v1613_v33, 1  ;;  %v1607_v14 = vsel %vm1603_vm4, 1, %v4930_v1 }
 0x2dc   : > { %v1099_v53 = vadd.f32 1e-05, %v1095_v15 }
 0x2de   : > { %4618 = vrsqrt.f32 %v1099_v53 }
 0x2e4   : > { %v4617_v58 = vpop.eup %4616 }
 0x2e5   : > { %v1106_v59 = vmul.f32 %v4617_v58, %v5515_v9 }
 0x2e7   : > { %v1116_v61 = vmul.f32 %v3915_v40, %v1106_v59 }
 0x2e8   : > { %v4619_v35 = vpop.eup %4618 }
 0x2e9   : > { %v1107_v60 = vmul.f32 %v4619_v35, %v1079_v37  ;;  %v1126_v38 = vadd.f32 %v3916_v47, %v1116_v61 }
 0x2eb   : > { %v1117_v62 = vmul.f32 %v3915_v40, %v1107_v60  ;;  %v1617_v60 = vrot.slane %v1607_v14, %v5319_v21 }
 0x2ed   : > { %v1127_v2 = vadd.f32 %v3916_v47, %v1117_v62  ;;  %vm5636_vm7 = vcmp.eq.s32.totalorder %v1617_v60, 1 }
 0x2ef   : > { %v1129_v27 = vpack.c.bf16 %v1127_v2, %v1126_v38 }
 0x2f1   : > { %1350 = vmatmul.mubr.bf16.gmra.mrb[4].mxu0 %v1129_v27  ;;  %4142 = vmatmul.mubr.bf16.vlgmr.msra.gmra.mrb[0].mxu1 %v1129_v27 }
 0x2f2   : > { %4147 = vmatprep.mubr.msk.bf16.mxu0 %vm4937_vm0, %v4936_v63  ;;  %4159 = vmatprep.mubr.msk.bf16.mxu1 %vm4937_vm0, %v4936_v63 }
 0x399   : > { %v1341_v34 = vpop.f32.mrb[0].mxu0 }
 0x39a   : > { %v1343_v52 = vpop.f32.mrb[1].mxu0  ;;  %v1342_v8 = vadd.f32 %v1341_v34, %v1167_v6 }
 0x39b   : > { %v1344_v36 = vadd.f32 %v1343_v52, %v1171_v3  ;;  %v1345_v4 = vpop.f32.mrb[2].mxu0  ;;  %v737_v52 = vld [vmem:[%s5283_s2 + $0x2] sm:$0x1] }
 0x39c   : > { %v1347_v5 = vpop.f32.mrb[3].mxu0  ;;  %v5571_v24 = vpack.c.bf16 %v1342_v8, %v1342_v8  ;;  %v1346_v10 = vadd.f32 %v1345_v4, %v1167_v6  ;;  %vm1604_vm8 = vcmp.gt.f32.partialorder %v737_v52, 0.0 }
 0x39d   : > { %v5564_v51 = vpack.c.bf16 %v1344_v36, %v1344_v36  ;;  %v1348_v7 = vadd.f32 %v1347_v5, %v1171_v3  ;;  %v738_v36 = vld [vmem:[%s5283_s2 + $0x3] sm:$0x1]  ;;  %v1608_v4 = vsel %vm1604_vm8, 1, %v4930_v1  ;;  %s4938_s2 = smov 96  }
 0x39e   : > { %v5580_v11 = vpack.c.bf16 %v1346_v10, %v1346_v10  ;;  %vm1605_vm9 = vcmp.gt.f32.partialorder %v738_v36, 0.0 }
 0x39f   : > { %v1422_v41 = vsel %vm1417_vm1, %v5564_v51, 0  ;;  %v5569_v54 = vpack.c.bf16 %v1348_v7, %v1348_v7  ;;  %v1609_v5 = vsel %vm1605_vm9, 1, %v4930_v1 }
 0x3a0   : > { %4146 = vmatpush3.bf16.xpose.msra.mxu0 %v1422_v41  ;;  %v1625_v7 = vrot.slane %v1609_v5, %v5319_v21 }
 0x3a1   : > { %4151 = vmatprep.subr.bf16.mxu0 %v4936_v63  ;;  %v1468_v9 = vsel %vm1417_vm1, %v5569_v54, 0 }
 0x3a2   : > { %vm5653_vm11 = vcmp.eq.s32.totalorder %v1625_v7, 1 }
 0x3a7   : > { %4148 = vmatmul.mubr.msk.bf16.vlgmr.msra.gmra.mrb[8].mxu0 %vm1417_vm1, %v5571_v24 }
 0x3a8   : > { %4152 = vmatpush3.bf16.xpose.msra.mxu0 %v1468_v9  ;;  %4153 = vmatprep.mubr.msk.bf16.mxu0 %vm4937_vm0, %v4936_v63 }
 0x3a9   : > { %4163 = vmatprep.subr.bf16.mxu0 %v4936_v63 }
 0x3af   : > { %4154 = vmatmul.mubr.msk.bf16.vlgmr.msra.gmra.mrb[12].mxu0 %vm1417_vm1, %v5580_v11 }
 0x3b0   : > { %4165 = vmatprep.mubr.msk.bf16.mxu0 %vm4937_vm0, %v4936_v63 }
 0x3c4   : > { %v1351_v17 = vpop.f32.mrb[4].mxu0  ;;  %v4143_v18 = vpop.f32.mrb[0].mxu1 }
 0x3c5   : > { %v5587_v37 = vadd.f32 %v4143_v18, %v1175_v12  ;;  %v1353_v56 = vpop.f32.mrb[5].mxu0  ;;  %v1394_v42 = vpop.f32.mrb[1].mxu1  ;;  %v1352_v31 = vadd.f32 %v1351_v17, %v1167_v6 }
 0x3c6   : > { %v1354_v19 = vadd.f32 %v1353_v56, %v1171_v3  ;;  %v1355_v55 = vpop.f32.mrb[6].mxu0  ;;  %v4144_v16 = vpop.f32.mrb[2].mxu1  ;;  %v1395_v29 = vadd.f32 %v1394_v42, %v1175_v12 }
 0x3c7   : > { %v5589_v20 = vadd.f32 %v4144_v16, %v1175_v12  ;;  %v1357_v28 = vpop.f32.mrb[7].mxu0  ;;  %v1397_v22 = vpop.f32.mrb[3].mxu1  ;;  %v1356_v43 = vadd.f32 %v1355_v55, %v1167_v6  ;;  %v5603_v44 = vpack.c.bf16 %v1352_v31, %v1352_v31  ;;  %v1621_v6 = vrot.slane %v1608_v4, %v5319_v21 }
 0x3c8   : > { %v5591_v23 = vpack.c.bf16 %v1354_v19, %v1354_v19  ;;  %v1358_v57 = vadd.f32 %v1357_v28, %v1171_v3  ;;  %v1398_v39 = vadd.f32 %v1397_v22, %v1175_v12  ;;  %v5600_v40 = vpack.c.bf16 %v1395_v29, %v1395_v29 }
 0x3c9   : > { %v5607_v47 = vpack.c.bf16 %v1356_v43, %v1356_v43  ;;  %vm5649_vm10 = vcmp.eq.s32.totalorder %v1621_v6, 1 }
 0x3ca   : > { %v5593_v30 = vpack.c.bf16 %v1358_v57, %v1358_v57  ;;  %v1514_v32 = vsel %vm1417_vm1, %v5591_v23, 0  ;;  %v5605_v46 = vpack.c.bf16 %v1398_v39, %v1398_v39  ;;  %v1692_v25 = vsel %vm1690_vm2, %v5600_v40, 0 }
 0x3cb   : > { %4158 = vmatpush3.bf16.xpose.msra.mxu1 %v1514_v32 }
 0x3cc   : > { %v1560_v0 = vsel %vm1417_vm1, %v5593_v30, 0  ;;  %4169 = vmatprep.subr.bf16.mxu1 %v4936_v63  ;;  %v1738_v26 = vsel %vm1690_vm2, %v5605_v46, 0 }
 0x3cd   : > { %4164 = vmatpush3.bf16.xpose.msra.mxu0 %v1560_v0 }
 0x3ce   : > { %4175 = vmatprep.subr.bf16.mxu0 %v4936_v63 }
 0x3d2   : > { %4160 = vmatmul.mubr.msk.bf16.vlgmr.msra.gmra.mrb[4].mxu1 %vm1417_vm1, %v5603_v44 }
 0x3d3   : > { %4170 = vmatpush3.bf16.msra.mxu1 %v1692_v25  ;;  %4171 = vmatprep.mubr.msk.bf16.mxu1 %vm4937_vm0, %v4936_v63 }
 0x3d4   : > { %4166 = vmatmul.mubr.msk.bf16.vlgmr.msra.gmra.mrb[16].mxu0 %vm1417_vm1, %v5607_v47  ;;  %4181 = vmatprep.subr.bf16.mxu1 %v4936_v63 }
 0x3d5   : > { %4176 = vmatpush3.bf16.msra.mxu0 %v1738_v26  ;;  %4177 = vmatprep.mubr.msk.bf16.mxu0 %vm4937_vm0, %v4936_v63 }
 0x3d6   : > { %4187 = vmatprep.subr.bf16.mxu0 %v4936_v63 }
 0x47a   : > { %v1458_v15 = vpop.f32.mrb[8].mxu0 }
 0x47b   : > { %v1630_v53 = vsel %vm5627_vm5, %v1458_v15, -1e+30  ;;  %v4149_v58 = vpop.f32.mrb[9].mxu0 }
 0x47c   : > { %v1461_v59 = vpop.f32.mrb[10].mxu0  ;;  %v1635_v35 = vsel %vm1634_vm6, %v1630_v53, -inf }
 0x47d   : > { %1636 = vmax.xlane.f32.xlu1 %v1635_v35  ;;  %v4150_v61 = vpop.f32.mrb[11].mxu0 }
 0x482   : > { %v1504_v38 = vpop.f32.mrb[12].mxu0 }
 0x483   : > { %v1631_v2 = vsel %vm5636_vm7, %v1504_v38, -1e+30  ;;  %v4155_v27 = vpop.f32.mrb[13].mxu0  ;;  %v5685_v38 = vpack.c.bf16 %v5587_v37, %v5587_v37 }
 0x484   : > { %v1507_v45 = vpop.f32.mrb[14].mxu0  ;;  %v1638_v3 = vsel %vm1634_vm6, %v1631_v2, -inf }
 0x485   : > { %1639 = vmax.xlane.f32.xlu0 %v1638_v3  ;;  %v4156_v34 = vpop.f32.mrb[15].mxu0  ;;  %v1784_v45 = vsel %vm1690_vm2, %v5685_v38, 0 }
 0x486   : > { %v5695_v34 = vpack.c.bf16 %v5589_v20, %v5589_v20 }
 0x488   : > { %v1830_v36 = vsel %vm1690_vm2, %v5695_v34, 0 }
 0x4a5   : > { %v1550_v8 = vpop.f32.mrb[4].mxu1 }
 0x4a6   : > { %v1632_v10 = vsel %vm5649_vm10, %v1550_v8, -1e+30  ;;  %v4161_v12 = vpop.f32.mrb[5].mxu1 }
 0x4a7   : > { %v1553_v17 = vpop.f32.mrb[6].mxu1  ;;  %v1596_v18 = vpop.f32.mrb[16].mxu0  ;;  %v1641_v1 = vsel %vm1634_vm6, %v1632_v10, -inf }
 0x4a8   : > { %v1633_v21 = vsel %vm5653_vm11, %v1596_v18, -1e+30  ;;  %v4167_v56 = vpop.f32.mrb[17].mxu0  ;;  %1642 = vmax.xlane.f32.xlu1 %v1641_v1  ;;  %v4162_v42 = vpop.f32.mrb[7].mxu1 }
 0x4a9   : > { %v1599_v19 = vpop.f32.mrb[18].mxu0  ;;  %v1644_v55 = vsel %vm1634_vm6, %v1633_v21, -inf }
 0x4aa   : > { %1645 = vmax.xlane.f32.xlu0 %v1644_v55  ;;  %v4168_v16 = vpop.f32.mrb[19].mxu0 }
 0x50a   : > { %v1637_v28 = vpop.xlane.xlu1 %1636 }
 0x50b   : > { %v1647_v22 = vsub.f32 %v1630_v53, %v1637_v28 }
 0x50d   : > { %v1651_v57 = vmul.f32 1.442695, %v1647_v22 }
 0x50f   : > { %4620 = vpow2.f32 %v1651_v57 }
 0x512   : > { %v1640_v29 = vpop.xlane.xlu0 %1639 }
 0x513   : > { %v1648_v32 = vsub.f32 %v1631_v2, %v1640_v29 }
 0x515   : > { %v1653_v31 = vmul.f32 1.442695, %v1648_v32 }
 0x517   : > { %4622 = vpow2.f32 %v1653_v31 }
 0x519   : > { %v4621_v39 = vpop.eup %4620 }
 0x51a   : > { %v1659_v0 = vsel %vm1634_vm6, %v4621_v39, 0.0 }
 0x51b   : > { %1660 = vadd.xlane.f32.xlu1 %v1659_v0 }
 0x521   : > { %v4623_v43 = vpop.eup %4622 }
 0x522   : > { %v1662_v25 = vsel %vm1634_vm6, %v4623_v43, 0.0 }
 0x523   : > { %1663 = vadd.xlane.f32.xlu0 %v1662_v25 }
 0x52c   : > { %1876 = vrot.lane.b32.xlu1 %v5564_v51, %s4938_s2 }
 0x535   : > { %v1643_v26 = vpop.xlane.xlu1 %1642 }
 0x536   : > { %v1649_v49 = vsub.f32 %v1632_v10, %v1643_v26 }
 0x537   : > { %v1646_v48 = vpop.xlane.xlu0 %1645 }
 0x538   : > { %v1650_v13 = vsub.f32 %v1633_v21, %v1646_v48  ;;  %v1655_v14 = vmul.f32 1.442695, %v1649_v49 }
 0x53a   : > { %v1657_v33 = vmul.f32 1.442695, %v1650_v13 }
 0x53c   : > { %4624 = vpow2.f32 %v1657_v33 }
 0x53d   : > { %4626 = vpow2.f32 %v1655_v14 }
 0x546   : > { %v4625_v15 = vpop.eup %4624 }
 0x547   : > { %v1668_v53 = vsel %vm1634_vm6, %v4625_v15, 0.0  ;;  %v4627_v58 = vpop.eup %4626 }
 0x548   : > { %1669 = vadd.xlane.f32.xlu0 %v1668_v53  ;;  %v1665_v59 = vsel %vm1634_vm6, %v4627_v58, 0.0 }
 0x550   : > { %1666 = vadd.xlane.f32.xlu1 %v1665_v59 }
 0x55e   : > { %1928 = vrot.lane.b32.xlu0 %v5569_v54, %s4938_s2 }
 0x561   : > { %1873 = vrot.lane.b32.xlu1 %v5571_v24, %s4938_s2 }
 0x562   : > { %1980 = vrot.lane.b32.xlu0 %v5591_v23, %s4938_s2 }
 0x565   : > { %1925 = vrot.lane.b32.xlu1 %v5580_v11, %s4938_s2 }
 0x566   : > { %1977 = vrot.lane.b32.xlu0 %v5603_v44, %s4938_s2 }
 0x569   : > { %2032 = vrot.lane.b32.xlu1 %v5593_v30, %s4938_s2 }
 0x56d   : > { %2029 = vrot.lane.b32.xlu1 %v5607_v47, %s4938_s2 }
 0x5a8   : > { %v1661_v35 = vpop.xlane.xlu1 %1660 }
 0x5a9   : > { %4628 = vrcp.f32 %v1661_v35 }
 0x5ac   : > { %v1877_v5 = vpop.permute.xlu1 %1876 }
 0x5ad   : > { %v1882_v19 = vsel %vm1417_vm1, %v1877_v5, 0 }
 0x5b0   : > { %v1664_v60 = vpop.xlane.xlu0 %1663 }
 0x5b1   : > { %4630 = vrcp.f32 %v1664_v60 }
 0x5b3   : > { %v4629_v61 = vpop.eup %4628 }
 0x5b4   : > { %v1675_v2 = vmul.f32 %v4629_v61, %v4621_v39 }
 0x5b6   : > { %v1679_v27 = vpack.c.bf16 %v1675_v2, %v1675_v2 }
 0x5b8   : > { %4172 = vmatmul.mubr.msk.bf16.vlgmr.msra.gmra.mrb[8].mxu1 %vm1634_vm6, %v1679_v27 }
 0x5b9   : > { %4182 = vmatpush3.bf16.msra.mxu1 %v1784_v45  ;;  %4183 = vmatprep.mubr.msk.bf16.mxu1 %vm4937_vm0, %v4936_v63 }
 0x5ba   : > { %4193 = vmatprep.subr.bf16.mxu1 %v4936_v63 }
 0x5bb   : > { %v4631_v3 = vpop.eup %4630 }
 0x5bc   : > { %v1676_v37 = vmul.f32 %v4631_v3, %v4623_v43 }
 0x5be   : > { %v1680_v52 = vpack.c.bf16 %v1676_v37, %v1676_v37 }
 0x5c0   : > { %4178 = vmatmul.mubr.msk.bf16.vlgmr.msra.gmra.mrb[20].mxu0 %vm1634_vm6, %v1680_v52 }
 0x5c1   : > { %4188 = vmatpush3.bf16.msra.mxu0 %v1830_v36  ;;  %4189 = vmatprep.mubr.msk.bf16.mxu0 %vm4937_vm0, %v4936_v63 }
 0x5c2   : > { %4199 = vmatprep.subr.bf16.mxu0 %v4936_v63 }
 0x5d5   : > { %v1670_v4 = vpop.xlane.xlu0 %1669 }
 0x5d6   : > { %4632 = vrcp.f32 %v1670_v4 }
 0x5d9   : > { %v1929_v10 = vpop.permute.xlu0 %1928 }
 0x5da   : > { %v1934_v17 = vsel %vm1417_vm1, %v1929_v10, 0 }
 0x5dd   : > { %v1667_v6 = vpop.xlane.xlu1 %1666  ;;  %v1981_v16 = vpop.permute.xlu0 %1980 }
 0x5de   : > { %4634 = vrcp.f32 %v1667_v6  ;;  %v1986_v22 = vsel %vm1417_vm1, %v1981_v16, 0 }
 0x5e0   : > { %v4633_v20 = vpop.eup %4632 }
 0x5e1   : > { %v1678_v7 = vmul.f32 %v4633_v20, %v4625_v15  ;;  %v1874_v8 = vpop.permute.xlu1 %1873  ;;  %v1978_v57 = vpop.permute.xlu0 %1977 }
 0x5e3   : > { %v1682_v12 = vpack.c.bf16 %v1678_v7, %v1678_v7 }
 0x5e5   : > { %4190 = vmatmul.mubr.msk.bf16.vlgmr.msra.gmra.mrb[24].mxu0 %vm1634_vm6, %v1682_v12  ;;  %v1926_v18 = vpop.permute.xlu1 %1925 }
 0x5e6   : > { %4200 = vmatpush3.bf16.xpose.msra.mxu0 %v1934_v17  ;;  %4201 = vmatprep.mubr.msk.bf16.mxu0 %vm4937_vm0, %v4936_v63 }
 0x5e7   : > { %4211 = vmatprep.subr.bf16.mxu0 %v4936_v63 }
 0x5e8   : > { %v4635_v1 = vpop.eup %4634 }
 0x5e9   : > { %v1677_v21 = vmul.f32 %v4635_v1, %v4627_v58  ;;  %v2033_v56 = vpop.permute.xlu1 %2032 }
 0x5ea   : > { %v2038_v55 = vsel %vm1417_vm1, %v2033_v56, 0 }
 0x5eb   : > { %v1681_v42 = vpack.c.bf16 %v1677_v21, %v1677_v21 }
 0x5ed   : > { %4184 = vmatmul.mubr.msk.bf16.vlgmr.msra.gmra.mrb[12].mxu1 %vm1634_vm6, %v1681_v42  ;;  %4202 = vmatmul.mubr.msk.bf16.vlgmr.msra.gmra.mrb[28].mxu0 %vm1417_vm1, %v1926_v18  ;;  %v2030_v28 = vpop.permute.xlu1 %2029 }
 0x5ee   : > { %4194 = vmatpush3.bf16.xpose.msra.mxu1 %v1882_v19  ;;  %4212 = vmatpush3.bf16.xpose.msra.mxu0 %v2038_v55 }
 0x5ef   : > { %4195 = vmatprep.mubr.msk.bf16.mxu1 %vm4937_vm0, %v4936_v63  ;;  %4205 = vmatprep.subr.bf16.mxu1 %v4936_v63 }
 0x5f0   : > { %4213 = vmatprep.mubr.msk.bf16.mxu0 %vm4937_vm0, %v4936_v63  ;;  %4223 = vmatprep.subr.bf16.mxu0 %v4936_v63 }
 0x5f5   : > { %4196 = vmatmul.mubr.msk.bf16.vlgmr.msra.gmra.mrb[16].mxu1 %vm1417_vm1, %v1874_v8  ;;  %4214 = vmatmul.mubr.msk.bf16.vlgmr.msra.gmra.mrb[32].mxu0 %vm1417_vm1, %v2030_v28 }
 0x5f6   : > { %4206 = vmatpush3.bf16.xpose.msra.mxu1 %v1986_v22  ;;  %4207 = vmatprep.mubr.msk.bf16.mxu1 %vm4937_vm0, %v4936_v63 }
 0x5f7   : > { %4217 = vmatprep.subr.bf16.mxu1 %v4936_v63  ;;  %4225 = vmatprep.mubr.msk.bf16.mxu0 %vm4937_vm0, %v4936_v63 }
 0x5fd   : > { %4208 = vmatmul.mubr.msk.bf16.vlgmr.msra.gmra.mrb[20].mxu1 %vm1417_vm1, %v1978_v57 }
 0x5fe   : > { %4219 = vmatprep.mubr.msk.bf16.mxu1 %vm4937_vm0, %v4936_v63 }
 0x68b   : > { %v5729_v29 = vpop.f32.mrb[8].mxu1 }
 0x68c   : > { %v4173_v32 = vpop.f32.mrb[9].mxu1 }
 0x68d   : > { %v1731_v31 = vpop.f32.mrb[10].mxu1 }
 0x68e   : > { %v4174_v39 = vpop.f32.mrb[11].mxu1 }
 0x693   : > { %v5731_v0 = vpop.f32.mrb[20].mxu0 }
 0x694   : > { %v4179_v43 = vpop.f32.mrb[21].mxu0 }
 0x695   : > { %v1777_v25 = vpop.f32.mrb[22].mxu0 }
 0x696   : > { %v4180_v26 = vpop.f32.mrb[23].mxu0 }
 0x6b8   : > { %v5733_v48 = vpop.f32.mrb[24].mxu0 }
 0x6b9   : > { %v4191_v13 = vpop.f32.mrb[25].mxu0 }
 0x6ba   : > { %v1869_v49 = vpop.f32.mrb[26].mxu0 }
 0x6bb   : > { %v4192_v33 = vpop.f32.mrb[27].mxu0 }
 0x6c0   : > { %v5735_v14 = vpop.f32.mrb[12].mxu1  ;;  %v1970_v15 = vpop.f32.mrb[28].mxu0 }
 0x6c1   : > { %v2081_v53 = vsel %vm5636_vm7, %v1970_v15, -1e+30  ;;  %v4185_v58 = vpop.f32.mrb[13].mxu1  ;;  %v4203_v59 = vpop.f32.mrb[29].mxu0 }
 0x6c2   : > { %v1823_v35 = vpop.f32.mrb[14].mxu1  ;;  %v1973_v60 = vpop.f32.mrb[30].mxu0  ;;  %v2087_v61 = vsel %vm1634_vm6, %v2081_v53, -inf }
 0x6c3   : > { %2088 = vmax.xlane.f32.xlu1 %v2087_v61  ;;  %v4186_v2 = vpop.f32.mrb[15].mxu1  ;;  %v4204_v27 = vpop.f32.mrb[31].mxu0 }
 0x6c8   : > { %v1918_v45 = vpop.f32.mrb[16].mxu1  ;;  %v2074_v3 = vpop.f32.mrb[32].mxu0 }
 0x6c9   : > { %v2080_v37 = vsel %vm5627_vm5, %v1918_v45, -1e+30  ;;  %v4197_v52 = vpop.f32.mrb[17].mxu1  ;;  %v4215_v36 = vpop.f32.mrb[33].mxu0  ;;  %v2083_v1 = vsel %vm5653_vm11, %v2074_v3, -1e+30 }
 0x6ca   : > { %v1921_v4 = vpop.f32.mrb[18].mxu1  ;;  %v2077_v5 = vpop.f32.mrb[34].mxu0  ;;  %v2084_v6 = vsel %vm1634_vm6, %v2080_v37, -inf  ;;  %v2093_v56 = vsel %vm1634_vm6, %v2083_v1, -inf }
 0x6cb   : > { %v4216_v20 = vpop.f32.mrb[35].mxu0  ;;  %2085 = vmax.xlane.f32.xlu0 %v2084_v6  ;;  %v4198_v7 = vpop.f32.mrb[19].mxu1 }
 0x6d0   : > { %v2022_v8 = vpop.f32.mrb[20].mxu1 }
 0x6d1   : > { %v2082_v10 = vsel %vm5649_vm10, %v2022_v8, -1e+30  ;;  %v4209_v12 = vpop.f32.mrb[21].mxu1 }
 0x6d2   : > { %v2025_v17 = vpop.f32.mrb[22].mxu1  ;;  %v2090_v18 = vsel %vm1634_vm6, %v2082_v10, -inf }
 0x6d3   : > { %2091 = vmax.xlane.f32.xlu0 %v2090_v18  ;;  %v4210_v21 = vpop.f32.mrb[23].mxu1 }
 0x6d4   : > { %2133 = vrot.lane.b32.xlu1 %v5600_v40, %s4938_s2 }
 0x6d7   : > { %2094 = vmax.xlane.f32.xlu0 %v2093_v56 }
 0x750   : > { %v2089_v42 = vpop.xlane.xlu1 %2088 }
 0x751   : > { %v2097_v19 = vsub.f32 %v2081_v53, %v2089_v42 }
 0x753   : > { %v2102_v55 = vmul.f32 1.442695, %v2097_v19 }
 0x754   : > { %v2134_v16 = vpop.permute.xlu1 %2133 }
 0x755   : > { %4636 = vpow2.f32 %v2102_v55  ;;  %v2139_v28 = vsel %vm1690_vm2, %v2134_v16, 0 }
 0x756   : > { %4218 = vmatpush3.bf16.msra.mxu1 %v2139_v28 }
 0x757   : > { %4229 = vmatprep.subr.bf16.mxu1 %v4936_v63 }
 0x758   : > { %v2086_v22 = vpop.xlane.xlu0 %2085 }
 0x759   : > { %v2096_v57 = vsub.f32 %v2080_v37, %v2086_v22 }
 0x75b   : > { %v2100_v32 = vmul.f32 1.442695, %v2096_v57 }
 0x75d   : > { %4638 = vpow2.f32 %v2100_v32 }
 0x75f   : > { %v4637_v31 = vpop.eup %4636 }
 0x760   : > { %v2111_v39 = vsel %vm1634_vm6, %v4637_v31, 0.0  ;;  %v2092_v26 = vpop.xlane.xlu0 %2091 }
 0x761   : > { %2112 = vadd.xlane.f32.xlu0 %v2111_v39  ;;  %v2098_v15 = vsub.f32 %v2082_v10, %v2092_v26 }
 0x763   : > { %v2104_v53 = vmul.f32 1.442695, %v2098_v15 }
 0x764   : > { %v2095_v13 = vpop.xlane.xlu0 %2094 }
 0x765   : > { %v2099_v49 = vsub.f32 %v2083_v1, %v2095_v13 }
 0x767   : > { %v4639_v43 = vpop.eup %4638  ;;  %v2106_v33 = vmul.f32 1.442695, %v2099_v49 }
 0x768   : > { %v2108_v25 = vsel %vm1634_vm6, %v4639_v43, 0.0 }
 0x769   : > { %2109 = vadd.xlane.f32.xlu1 %v2108_v25  ;;  %4640 = vpow2.f32 %v2106_v33 }
 0x76a   : > { %4642 = vpow2.f32 %v2104_v53 }
 0x773   : > { %v4641_v58 = vpop.eup %4640 }
 0x774   : > { %v2117_v59 = vsel %vm1634_vm6, %v4641_v58, 0.0  ;;  %v4643_v35 = vpop.eup %4642 }
 0x775   : > { %v2114_v60 = vsel %vm1634_vm6, %v4643_v35, 0.0 }
 0x777   : > { %2182 = vrot.lane.b32.xlu0 %v5605_v46, %s4938_s2 }
 0x77a   : > { %2231 = vrot.lane.b32.xlu1 %v5685_v38, %s4938_s2 }
 0x77e   : > { %2280 = vrot.lane.b32.xlu1 %v5695_v34, %s4938_s2 }
 0x796   : > { %2118 = vadd.xlane.f32.xlu0 %v2117_v59 }
 0x7a2   : > { %2115 = vadd.xlane.f32.xlu1 %v2114_v60 }
 0x7ac   : > { %2330 = vrot.lane.b32.xlu0 %v5564_v51, %s4939_s26 }
 0x7b0   : > { %2328 = vrot.lane.b32.xlu0 %v5571_v24, %s4939_s26 }
 0x7b3   : > { %2380 = vrot.lane.b32.xlu1 %v5569_v54, %s4939_s26 }
 0x7b4   : > { %2430 = vrot.lane.b32.xlu0 %v5591_v23, %s4939_s26 }
 0x7b7   : > { %2378 = vrot.lane.b32.xlu1 %v5580_v11, %s4939_s26 }
 0x7b8   : > { %2428 = vrot.lane.b32.xlu0 %v5603_v44, %s4939_s26 }
 0x7bb   : > { %2480 = vrot.lane.b32.xlu1 %v5593_v30, %s4939_s26 }
 0x7bf   : > { %2478 = vrot.lane.b32.xlu1 %v5607_v47, %s4939_s26 }
 0x7ee   : > { %v2113_v61 = vpop.xlane.xlu0 %2112 }
 0x7ef   : > { %4644 = vrcp.f32 %v2113_v61 }
 0x7f2   : > { %v2183_v2 = vpop.permute.xlu0 %2182 }
 0x7f3   : > { %v2188_v27 = vsel %vm1690_vm2, %v2183_v2, 0 }
 0x7f4   : > { %4224 = vmatpush3.bf16.msra.mxu0 %v2188_v27 }
 0x7f5   : > { %4235 = vmatprep.subr.bf16.mxu0 %v4936_v63 }
 0x7f6   : > { %v2110_v45 = vpop.xlane.xlu1 %2109 }
 0x7f7   : > { %4646 = vrcp.f32 %v2110_v45 }
 0x7f9   : > { %v4645_v3 = vpop.eup %4644 }
 0x7fa   : > { %v2125_v37 = vmul.f32 %v4645_v3, %v4637_v31  ;;  %v2232_v52 = vpop.permute.xlu1 %2231 }
 0x7fb   : > { %v2237_v8 = vsel %vm1690_vm2, %v2232_v52, 0 }
 0x7fc   : > { %v2129_v36 = vpack.c.bf16 %v2125_v37, %v2125_v37 }
 0x7fe   : > { %v2281_v4 = vpop.permute.xlu1 %2280  ;;  %4226 = vmatmul.mubr.msk.bf16.vlgmr.msra.gmra.mrb[36].mxu0 %vm1634_vm6, %v2129_v36 }
 0x7ff   : > { %v2286_v5 = vsel %vm1690_vm2, %v2281_v4, 0  ;;  %4237 = vmatprep.mubr.msk.bf16.mxu0 %vm4937_vm0, %v4936_v63 }
 0x800   : > { %4236 = vmatpush3.bf16.msra.mxu0 %v2286_v5 }
 0x801   : > { %v4647_v6 = vpop.eup %4646  ;;  %4247 = vmatprep.subr.bf16.mxu0 %v4936_v63 }
 0x802   : > { %v2124_v20 = vmul.f32 %v4647_v6, %v4639_v43 }
 0x804   : > { %v2128_v7 = vpack.c.bf16 %v2124_v20, %v2124_v20 }
 0x806   : > { %4220 = vmatmul.mubr.msk.bf16.vlgmr.msra.gmra.mrb[24].mxu1 %vm1634_vm6, %v2128_v7 }
 0x807   : > { %4230 = vmatpush3.bf16.msra.mxu1 %v2237_v8  ;;  %4231 = vmatprep.mubr.msk.bf16.mxu1 %vm4937_vm0, %v4936_v63 }
 0x808   : > { %4241 = vmatprep.subr.bf16.mxu1 %v4936_v63 }
 0x823   : > { %v2119_v10 = vpop.xlane.xlu0 %2118 }
 0x824   : > { %4648 = vrcp.f32 %v2119_v10 }
 0x827   : > { %v2331_v19 = vpop.permute.xlu0 %2330 }
 0x828   : > { %v2336_v31 = vsel %vm1417_vm1, %v2331_v19, 0 }
 0x82b   : > { %v2329_v32 = vpop.permute.xlu0 %2328 }
 0x82e   : > { %v4649_v12 = vpop.eup %4648 }
 0x82f   : > { %v2127_v17 = vmul.f32 %v4649_v12, %v4641_v58  ;;  %v2116_v18 = vpop.xlane.xlu1 %2115  ;;  %v2431_v43 = vpop.permute.xlu0 %2430 }
 0x830   : > { %4650 = vrcp.f32 %v2116_v18  ;;  %v2436_v25 = vsel %vm1417_vm1, %v2431_v43, 0 }
 0x831   : > { %v2131_v1 = vpack.c.bf16 %v2127_v17, %v2127_v17 }
 0x833   : > { %v2381_v21 = vpop.permute.xlu1 %2380  ;;  %4238 = vmatmul.mubr.msk.bf16.vlgmr.msra.gmra.mrb[40].mxu0 %vm1634_vm6, %v2131_v1  ;;  %v2429_v26 = vpop.permute.xlu0 %2428 }
 0x834   : > { %v2386_v56 = vsel %vm1417_vm1, %v2381_v21, 0  ;;  %4249 = vmatprep.mubr.msk.bf16.mxu0 %vm4937_vm0, %v4936_v63 }
 0x835   : > { %4248 = vmatpush3.bf16.xpose.msra.mxu0 %v2386_v56 }
 0x836   : > { %4259 = vmatprep.subr.bf16.mxu0 %v4936_v63 }
 0x837   : > { %v2379_v42 = vpop.permute.xlu1 %2378 }
 0x83a   : > { %v4651_v55 = vpop.eup %4650 }
 0x83b   : > { %v2126_v16 = vmul.f32 %v4651_v55, %v4643_v35  ;;  %v2481_v28 = vpop.permute.xlu1 %2480 }
 0x83c   : > { %v2486_v22 = vsel %vm1417_vm1, %v2481_v28, 0  ;;  %4250 = vmatmul.mubr.msk.bf16.vlgmr.msra.gmra.mrb[44].mxu0 %vm1417_vm1, %v2379_v42 }
 0x83d   : > { %4260 = vmatpush3.bf16.xpose.msra.mxu0 %v2486_v22  ;;  %v2130_v57 = vpack.c.bf16 %v2126_v16, %v2126_v16  ;;  %4261 = vmatprep.mubr.msk.bf16.mxu0 %vm4937_vm0, %v4936_v63 }
 0x83e   : > { %4271 = vmatprep.subr.bf16.mxu0 %v4936_v63 }
 0x83f   : > { %4232 = vmatmul.mubr.msk.bf16.vlgmr.msra.gmra.mrb[28].mxu1 %vm1634_vm6, %v2130_v57  ;;  %v2479_v39 = vpop.permute.xlu1 %2478 }
 0x840   : > { %4242 = vmatpush3.bf16.xpose.msra.mxu1 %v2336_v31  ;;  %4243 = vmatprep.mubr.msk.bf16.mxu1 %vm4937_vm0, %v4936_v63 }
 0x841   : > { %4253 = vmatprep.subr.bf16.mxu1 %v4936_v63 }
 0x844   : > { %4262 = vmatmul.mubr.msk.bf16.vlgmr.msra.gmra.mrb[48].mxu0 %vm1417_vm1, %v2479_v39 }
 0x845   : > { %4273 = vmatprep.mubr.msk.bf16.mxu0 %vm4937_vm0, %v4936_v63 }
 0x847   : > { %4244 = vmatmul.mubr.msk.bf16.vlgmr.msra.gmra.mrb[32].mxu1 %vm1417_vm1, %v2329_v32 }
 0x848   : > { %4254 = vmatpush3.bf16.xpose.msra.mxu1 %v2436_v25  ;;  %4255 = vmatprep.mubr.msk.bf16.mxu1 %vm4937_vm0, %v4936_v63 }
 0x849   : > { %4265 = vmatprep.subr.bf16.mxu1 %v4936_v63 }
 0x84f   : > { %4256 = vmatmul.mubr.msk.bf16.vlgmr.msra.gmra.mrb[36].mxu1 %vm1417_vm1, %v2429_v26 }
 0x850   : > { %4267 = vmatprep.mubr.msk.bf16.mxu1 %vm4937_vm0, %v4936_v63 }
 0x8d1   : > { %v5817_v13 = vpop.f32.mrb[36].mxu0 }
 0x8d2   : > { %v4227_v49 = vpop.f32.mrb[37].mxu0 }
 0x8d3   : > { %v2227_v33 = vpop.f32.mrb[38].mxu0 }
 0x8d4   : > { %v4228_v15 = vpop.f32.mrb[39].mxu0 }
 0x8d9   : > { %v5819_v53 = vpop.f32.mrb[24].mxu1 }
 0x8da   : > { %v4517_v58 = vpack.i.bf16 %v5817_v13, %v5819_v53  ;;  %v4221_v59 = vpop.f32.mrb[25].mxu1 }
 0x8db   : > { %v2178_v35 = vpop.f32.mrb[26].mxu1 }
 0x8dc   : > { %v4222_v60 = vpop.f32.mrb[27].mxu1 }
 0x906   : > { %v5823_v61 = vpop.f32.mrb[40].mxu0 }
 0x907   : > { %v4239_v2 = vpop.f32.mrb[41].mxu0 }
 0x908   : > { %v2325_v27 = vpop.f32.mrb[42].mxu0 }
 0x909   : > { %v4240_v45 = vpop.f32.mrb[43].mxu0 }
 0x90f   : > { %v2422_v3 = vpop.f32.mrb[44].mxu0 }
 0x910   : > { %v2529_v37 = vsel %vm5636_vm7, %v2422_v3, -1e+30  ;;  %v4251_v52 = vpop.f32.mrb[45].mxu0 }
 0x911   : > { %v2425_v36 = vpop.f32.mrb[46].mxu0  ;;  %v2535_v4 = vsel %vm1634_vm6, %v2529_v37, -inf }
 0x912   : > { %2536 = vmax.xlane.f32.xlu1 %v2535_v4  ;;  %v5828_v5 = vpop.f32.mrb[28].mxu1  ;;  %v4252_v6 = vpop.f32.mrb[47].mxu0 }
 0x913   : > { %v4522_v20 = vpack.i.bf16 %v5823_v61, %v5828_v5  ;;  %v4233_v7 = vpop.f32.mrb[29].mxu1 }
 0x914   : > { %v2276_v8 = vpop.f32.mrb[30].mxu1 }
 0x915   : > { %v4234_v10 = vpop.f32.mrb[31].mxu1 }
 0x917   : > { %v2522_v12 = vpop.f32.mrb[48].mxu0 }
 0x918   : > { %v4263_v17 = vpop.f32.mrb[49].mxu0  ;;  %v2531_v39 = vsel %vm5653_vm11, %v2522_v12, -1e+30 }
 0x919   : > { %v2525_v18 = vpop.f32.mrb[50].mxu0  ;;  %v2541_v25 = vsel %vm1634_vm6, %v2531_v39, -inf }
 0x91a   : > { %v2372_v1 = vpop.f32.mrb[32].mxu1  ;;  %v4264_v21 = vpop.f32.mrb[51].mxu0 }
 0x91b   : > { %v2528_v56 = vsel %vm5627_vm5, %v2372_v1, -1e+30  ;;  %v4245_v42 = vpop.f32.mrb[33].mxu1 }
 0x91c   : > { %v2375_v19 = vpop.f32.mrb[34].mxu1  ;;  %v2532_v55 = vsel %vm1634_vm6, %v2528_v56, -inf }
 0x91d   : > { %2533 = vmax.xlane.f32.xlu0 %v2532_v55  ;;  %v4246_v16 = vpop.f32.mrb[35].mxu1 }
 0x922   : > { %v2472_v28 = vpop.f32.mrb[36].mxu1 }
 0x923   : > { %v2530_v22 = vsel %vm5649_vm10, %v2472_v28, -1e+30  ;;  %2580 = vrot.lane.b32.xlu1 %v5600_v40, %s4939_s26  ;;  %v4257_v57 = vpop.f32.mrb[37].mxu1 }
 0x924   : > { %v2475_v32 = vpop.f32.mrb[38].mxu1  ;;  %v2538_v31 = vsel %vm1634_vm6, %v2530_v22, -inf }
 0x925   : > { %2539 = vmax.xlane.f32.xlu0 %v2538_v31  ;;  %v4258_v43 = vpop.f32.mrb[39].mxu1 }
 0x929   : > { %2542 = vmax.xlane.f32.xlu0 %v2541_v25 }
 0x99f   : > { %v2537_v26 = vpop.xlane.xlu1 %2536 }
 0x9a0   : > { %v2545_v49 = vsub.f32 %v2529_v37, %v2537_v26 }
 0x9a2   : > { %v2550_v33 = vmul.f32 1.442695, %v2545_v49 }
 0x9a3   : > { %v2581_v15 = vpop.permute.xlu1 %2580 }
 0x9a4   : > { %4652 = vpow2.f32 %v2550_v33  ;;  %v2586_v59 = vsel %vm1690_vm2, %v2581_v15, 0 }
 0x9a5   : > { %4266 = vmatpush3.bf16.msra.mxu1 %v2586_v59 }
 0x9a6   : > { %4277 = vmatprep.subr.bf16.mxu1 %v4936_v63 }
 0x9aa   : > { %v2534_v35 = vpop.xlane.xlu0 %2533 }
 0x9ab   : > { %v2544_v60 = vsub.f32 %v2528_v56, %v2534_v35 }
 0x9ad   : > { %v2548_v2 = vmul.f32 1.442695, %v2544_v60 }
 0x9ae   : > { %v4653_v27 = vpop.eup %4652 }
 0x9af   : > { %4654 = vpow2.f32 %v2548_v2  ;;  %v2559_v45 = vsel %vm1634_vm6, %v4653_v27, 0.0 }
 0x9b0   : > { %2560 = vadd.xlane.f32.xlu0 %v2559_v45 }
 0x9b2   : > { %v2540_v37 = vpop.xlane.xlu0 %2539 }
 0x9b3   : > { %v2546_v7 = vsub.f32 %v2530_v22, %v2540_v37 }
 0x9b5   : > { %v2552_v10 = vmul.f32 1.442695, %v2546_v7 }
 0x9b6   : > { %v2543_v36 = vpop.xlane.xlu0 %2542 }
 0x9b7   : > { %v2547_v4 = vsub.f32 %v2531_v39, %v2543_v36 }
 0x9b9   : > { %v4655_v3 = vpop.eup %4654  ;;  %v2554_v6 = vmul.f32 1.442695, %v2547_v4 }
 0x9ba   : > { %v2556_v52 = vsel %vm1634_vm6, %v4655_v3, 0.0 }
 0x9bb   : > { %2557 = vadd.xlane.f32.xlu1 %v2556_v52  ;;  %4656 = vpow2.f32 %v2554_v6 }
 0x9bc   : > { %4658 = vpow2.f32 %v2552_v10 }
 0x9c5   : > { %v4657_v8 = vpop.eup %4656 }
 0x9c6   : > { %2628 = vrot.lane.b32.xlu0 %v5605_v46, %s4939_s26  ;;  %v2565_v12 = vsel %vm1634_vm6, %v4657_v8, 0.0  ;;  %v4659_v17 = vpop.eup %4658 }
 0x9c7   : > { %v2562_v18 = vsel %vm1634_vm6, %v4659_v17, 0.0 }
 0x9cc   : > { %2676 = vrot.lane.b32.xlu1 %v5685_v38, %s4939_s26 }
 0x9d0   : > { %2724 = vrot.lane.b32.xlu1 %v5695_v34, %s4939_s26 }
 0x9e5   : > { %2566 = vadd.xlane.f32.xlu0 %v2565_v12 }
 0x9f4   : > { %2563 = vadd.xlane.f32.xlu1 %v2562_v18 }
 0x9fb   : > { %2774 = vrot.lane.b32.xlu0 %v5564_v51, %s4940_s13 }
 0x9ff   : > { %2772 = vrot.lane.b32.xlu0 %v5571_v24, %s4940_s13 }
 0xa03   : > { %2874 = vrot.lane.b32.xlu0 %v5591_v23, %s4940_s13 }
 0xa05   : > { %2824 = vrot.lane.b32.xlu1 %v5569_v54, %s4940_s13 }
 0xa07   : > { %2872 = vrot.lane.b32.xlu0 %v5603_v44, %s4940_s13 }
 0xa09   : > { %2822 = vrot.lane.b32.xlu1 %v5580_v11, %s4940_s13 }
 0xa0d   : > { %2924 = vrot.lane.b32.xlu1 %v5593_v30, %s4940_s13 }
 0xa11   : > { %2922 = vrot.lane.b32.xlu1 %v5607_v47, %s4940_s13 }
 0xa3d   : > { %v2561_v51 = vpop.xlane.xlu0 %2560 }
 0xa3e   : > { %4660 = vrcp.f32 %v2561_v51 }
 0xa41   : > { %v2629_v24 = vpop.permute.xlu0 %2628 }
 0xa42   : > { %v2634_v23 = vsel %vm1690_vm2, %v2629_v24, 0 }
 0xa43   : > { %4272 = vmatpush3.bf16.msra.mxu0 %v2634_v23 }
 0xa44   : > { %4283 = vmatprep.subr.bf16.mxu0 %v4936_v63 }
 0xa48   : > { %v4661_v54 = vpop.eup %4660  ;;  %v2558_v1 = vpop.xlane.xlu1 %2557 }
 0xa49   : > { %v2573_v44 = vmul.f32 %v4661_v54, %v4653_v27  ;;  %4662 = vrcp.f32 %v2558_v1 }
 0xa4b   : > { %v2577_v21 = vpack.c.bf16 %v2573_v44, %v2573_v44 }
 0xa4c   : > { %v2677_v11 = vpop.permute.xlu1 %2676 }
 0xa4d   : > { %4274 = vmatmul.mubr.msk.bf16.vlgmr.msra.gmra.mrb[52].mxu0 %vm1634_vm6, %v2577_v21  ;;  %v2682_v55 = vsel %vm1690_vm2, %v2677_v11, 0 }
 0xa4e   : > { %4285 = vmatprep.mubr.msk.bf16.mxu0 %vm4937_vm0, %v4936_v63 }
 0xa50   : > { %v2725_v30 = vpop.permute.xlu1 %2724 }
 0xa51   : > { %v2730_v47 = vsel %vm1690_vm2, %v2725_v30, 0 }
 0xa52   : > { %4284 = vmatpush3.bf16.msra.mxu0 %v2730_v47 }
 0xa53   : > { %v4663_v56 = vpop.eup %4662  ;;  %4295 = vmatprep.subr.bf16.mxu0 %v4936_v63 }
 0xa54   : > { %v2572_v42 = vmul.f32 %v4663_v56, %v4655_v3 }
 0xa56   : > { %v2576_v19 = vpack.c.bf16 %v2572_v42, %v2572_v42 }
 0xa58   : > { %4268 = vmatmul.mubr.msk.bf16.vlgmr.msra.gmra.mrb[40].mxu1 %vm1634_vm6, %v2576_v19 }
 0xa59   : > { %4278 = vmatpush3.bf16.msra.mxu1 %v2682_v55  ;;  %4279 = vmatprep.mubr.msk.bf16.mxu1 %vm4937_vm0, %v4936_v63 }
 0xa5a   : > { %4289 = vmatprep.subr.bf16.mxu1 %v4936_v63 }
 0xa72   : > { %v2567_v16 = vpop.xlane.xlu0 %2566 }
 0xa73   : > { %4664 = vrcp.f32 %v2567_v16 }
 0xa76   : > { %v2775_v25 = vpop.permute.xlu0 %2774 }
 0xa77   : > { %v2780_v60 = vsel %vm1417_vm1, %v2775_v25, 0 }
 0xa7a   : > { %v2773_v35 = vpop.permute.xlu0 %2772 }
 0xa7d   : > { %v4665_v28 = vpop.eup %4664 }
 0xa7e   : > { %v2575_v22 = vmul.f32 %v4665_v28, %v4657_v8  ;;  %v2875_v27 = vpop.permute.xlu0 %2874 }
 0xa7f   : > { %v2880_v45 = vsel %vm1417_vm1, %v2875_v27, 0 }
 0xa80   : > { %v2579_v57 = vpack.c.bf16 %v2575_v22, %v2575_v22 }
 0xa81   : > { %v2564_v32 = vpop.xlane.xlu1 %2563 }
 0xa82   : > { %4666 = vrcp.f32 %v2564_v32  ;;  %4286 = vmatmul.mubr.msk.bf16.vlgmr.msra.gmra.mrb[56].mxu0 %vm1634_vm6, %v2579_v57  ;;  %v2873_v3 = vpop.permute.xlu0 %2872 }
 0xa83   : > { %4297 = vmatprep.mubr.msk.bf16.mxu0 %vm4937_vm0, %v4936_v63 }
 0xa85   : > { %v2825_v31 = vpop.permute.xlu1 %2824 }
 0xa86   : > { %v2830_v39 = vsel %vm1417_vm1, %v2825_v31, 0 }
 0xa87   : > { %4296 = vmatpush3.bf16.xpose.msra.mxu0 %v2830_v39 }
 0xa88   : > { %4307 = vmatprep.subr.bf16.mxu0 %v4936_v63 }
 0xa89   : > { %v2823_v43 = vpop.permute.xlu1 %2822 }
 0xa8c   : > { %v4667_v26 = vpop.eup %4666 }
 0xa8d   : > { %v2574_v49 = vmul.f32 %v4667_v26, %v4659_v17  ;;  %v2925_v33 = vpop.permute.xlu1 %2924 }
 0xa8e   : > { %v2930_v15 = vsel %vm1417_vm1, %v2925_v33, 0  ;;  %4298 = vmatmul.mubr.msk.bf16.vlgmr.msra.gmra.mrb[60].mxu0 %vm1417_vm1, %v2823_v43 }
 0xa8f   : > { %4308 = vmatpush3.bf16.xpose.msra.mxu0 %v2930_v15  ;;  %v2578_v59 = vpack.c.bf16 %v2574_v49, %v2574_v49  ;;  %4309 = vmatprep.mubr.msk.bf16.mxu0 %vm4937_vm0, %v4936_v63 }
 0xa90   : > { %4319 = vmatprep.subr.bf16.mxu0 %v4936_v63 }
 0xa91   : > { %4280 = vmatmul.mubr.msk.bf16.vlgmr.msra.gmra.mrb[44].mxu1 %vm1634_vm6, %v2578_v59  ;;  %v2923_v2 = vpop.permute.xlu1 %2922 }
 0xa92   : > { %4290 = vmatpush3.bf16.xpose.msra.mxu1 %v2780_v60  ;;  %4291 = vmatprep.mubr.msk.bf16.mxu1 %vm4937_vm0, %v4936_v63 }
 0xa93   : > { %4301 = vmatprep.subr.bf16.mxu1 %v4936_v63 }
 0xa96   : > { %4310 = vmatmul.mubr.msk.bf16.vlgmr.msra.gmra.mrb[64].mxu0 %vm1417_vm1, %v2923_v2 }
 0xa97   : > { %4321 = vmatprep.mubr.msk.bf16.mxu0 %vm4937_vm0, %v4936_v63 }
 0xa99   : > { %4292 = vmatmul.mubr.msk.bf16.vlgmr.msra.gmra.mrb[48].mxu1 %vm1417_vm1, %v2773_v35 }
 0xa9a   : > { %4302 = vmatpush3.bf16.xpose.msra.mxu1 %v2880_v45  ;;  %4303 = vmatprep.mubr.msk.bf16.mxu1 %vm4937_vm0, %v4936_v63 }
 0xa9b   : > { %4313 = vmatprep.subr.bf16.mxu1 %v4936_v63 }
 0xaa1   : > { %4304 = vmatmul.mubr.msk.bf16.vlgmr.msra.gmra.mrb[52].mxu1 %vm1417_vm1, %v2873_v3 }
 0xaa2   : > { %4315 = vmatprep.mubr.msk.bf16.mxu1 %vm4937_vm0, %v4936_v63 }
 0xb20   : > { %v5909_v52 = vpop.f32.mrb[52].mxu0 }
 0xb21   : > { %v4275_v37 = vpop.f32.mrb[53].mxu0 }
 0xb22   : > { %v2673_v36 = vpop.f32.mrb[54].mxu0 }
 0xb23   : > { %v4276_v4 = vpop.f32.mrb[55].mxu0 }
 0xb2b   : > { %v5911_v6 = vpop.f32.mrb[40].mxu1 }
 0xb2c   : > { %v4527_v7 = vpack.i.bf16 %v5909_v52, %v5911_v6  ;;  %v4269_v8 = vpop.f32.mrb[41].mxu1 }
 0xb2d   : > { %v2625_v10 = vpop.f32.mrb[42].mxu1 }
 0xb2e   : > { %v4270_v12 = vpop.f32.mrb[43].mxu1 }
 0xb55   : > { %v5915_v17 = vpop.f32.mrb[56].mxu0 }
 0xb56   : > { %v4287_v18 = vpop.f32.mrb[57].mxu0 }
 0xb57   : > { %v2769_v51 = vpop.f32.mrb[58].mxu0 }
 0xb58   : > { %v4288_v24 = vpop.f32.mrb[59].mxu0 }
 0xb61   : > { %v2866_v23 = vpop.f32.mrb[60].mxu0 }
 0xb62   : > { %v2973_v54 = vsel %vm5636_vm7, %v2866_v23, -1e+30  ;;  %v4299_v1 = vpop.f32.mrb[61].mxu0 }
 0xb63   : > { %v2979_v44 = vsel %vm1634_vm6, %v2973_v54, -inf  ;;  %v2869_v21 = vpop.f32.mrb[62].mxu0 }
 0xb64   : > { %2980 = vmax.xlane.f32.xlu1 %v2979_v44  ;;  %v5920_v11 = vpop.f32.mrb[44].mxu1  ;;  %v4300_v30 = vpop.f32.mrb[63].mxu0 }
 0xb65   : > { %v4532_v47 = vpack.i.bf16 %v5915_v17, %v5920_v11  ;;  %v4281_v56 = vpop.f32.mrb[45].mxu1 }
 0xb66   : > { %v2721_v42 = vpop.f32.mrb[46].mxu1 }
 0xb67   : > { %v4282_v19 = vpop.f32.mrb[47].mxu1 }
 0xb69   : > { %v2966_v55 = vpop.f32.mrb[64].mxu0 }
 0xb6a   : > { %v4311_v16 = vpop.f32.mrb[65].mxu0  ;;  %v2975_v50 = vsel %vm5653_vm11, %v2966_v55, -1e+30 }
 0xb6b   : > { %v2969_v28 = vpop.f32.mrb[66].mxu0  ;;  %v2985_v35 = vsel %vm1634_vm6, %v2975_v50, -inf }
 0xb6c   : > { %v2816_v22 = vpop.f32.mrb[48].mxu1  ;;  %v4312_v62 = vpop.f32.mrb[67].mxu0 }
 0xb6d   : > { %v2972_v57 = vsel %vm5627_vm5, %v2816_v22, -1e+30  ;;  %v4293_v32 = vpop.f32.mrb[49].mxu1  ;;  %v4580_v22 = vld [vmem:[%s6130_s8] sm:$0xff]   ;;  %v4581_v62 = vld [vmem:[%s6130_s8 + $0x8] sm:$0xff]  }
 0xb6e   : > { %v2819_v31 = vpop.f32.mrb[50].mxu1  ;;  %v2976_v39 = vsel %vm1634_vm6, %v2972_v57, -inf  ;;  %v4584_v32 = vld [vmem:[%s6130_s8 + $0x20] sm:$0xff]  }
 0xb6f   : > { %2977 = vmax.xlane.f32.xlu0 %v2976_v39  ;;  %v4294_v43 = vpop.f32.mrb[51].mxu1  ;;  %v4585_v31 = vld [vmem:[%s6130_s8 + $0x28] sm:$0xff]   ;;  %v4586_v39 = vld [vmem:[%s6130_s8 + $0x30] sm:$0xff]  }
 0xb74   : > { %v2916_v25 = vpop.f32.mrb[52].mxu1 }
 0xb75   : > { %v2974_v26 = vsel %vm5649_vm10, %v2916_v25, -1e+30  ;;  %3024 = vrot.lane.b32.xlu1 %v5600_v40, %s4940_s13  ;;  %v4305_v49 = vpop.f32.mrb[53].mxu1 }
 0xb76   : > { %v2919_v33 = vpop.f32.mrb[54].mxu1  ;;  %v2982_v15 = vsel %vm1634_vm6, %v2974_v26, -inf }
 0xb77   : > { %2983 = vmax.xlane.f32.xlu0 %v2982_v15  ;;  %v4306_v59 = vpop.f32.mrb[55].mxu1  ;;  %v4587_v33 = vld [vmem:[%s6130_s8 + $0x38] sm:$0xff]  }
 0xb7b   : > { %2986 = vmax.xlane.f32.xlu0 %v2985_v35 }
 0xbf1   : > { %v2981_v60 = vpop.xlane.xlu1 %2980 }
 0xbf2   : > { %v2989_v2 = vsub.f32 %v2973_v54, %v2981_v60 }
 0xbf4   : > { %v2994_v27 = vmul.f32 1.442695, %v2989_v2 }
 0xbf5   : > { %v3025_v41 = vpop.permute.xlu1 %3024 }
 0xbf6   : > { %4668 = vpow2.f32 %v2994_v27  ;;  %v3030_v45 = vsel %vm1690_vm2, %v3025_v41, 0 }
 0xbf7   : > { %4314 = vmatpush3.bf16.msra.mxu1 %v3030_v45 }
 0xbf8   : > { %4325 = vmatprep.subr.bf16.mxu1 %v4936_v63 }
 0xbfc   : > { %v2978_v40 = vpop.xlane.xlu0 %2977 }
 0xbfd   : > { %v2988_v3 = vsub.f32 %v2972_v57, %v2978_v40  ;;  %v4583_v57 = vld [vmem:[%s6130_s8 + $0x18] sm:$0xff]  }
 0xbff   : > { %v2992_v37 = vmul.f32 1.442695, %v2988_v3 }
 0xc00   : > { %v4669_v9 = vpop.eup %4668 }
 0xc01   : > { %4670 = vpow2.f32 %v2992_v37  ;;  %v3003_v36 = vsel %vm1634_vm6, %v4669_v9, 0.0 }
 0xc02   : > { %3004 = vadd.xlane.f32.xlu0 %v3003_v36 }
 0xc04   : > { %v2984_v4 = vpop.xlane.xlu0 %2983 }
 0xc05   : > { %v2990_v8 = vsub.f32 %v2974_v26, %v2984_v4 }
 0xc07   : > { %v2996_v10 = vmul.f32 1.442695, %v2990_v8 }
 0xc08   : > { %v2987_v12 = vpop.xlane.xlu0 %2986 }
 0xc09   : > { %4672 = vpow2.f32 %v2996_v10  ;;  %v2991_v17 = vsub.f32 %v2975_v50, %v2987_v12 }
 0xc0b   : > { %v4671_v18 = vpop.eup %4670  ;;  %v2998_v51 = vmul.f32 1.442695, %v2991_v17 }
 0xc0c   : > { %v3000_v24 = vsel %vm1634_vm6, %v4671_v18, 0.0 }
 0xc0d   : > { %4674 = vpow2.f32 %v2998_v51  ;;  %3001 = vadd.xlane.f32.xlu1 %v3000_v24 }
 0xc13   : > { %v4673_v23 = vpop.eup %4672 }
 0xc14   : > { %v3006_v54 = vsel %vm1634_vm6, %v4673_v23, 0.0 }
 0xc15   : > { %3007 = vadd.xlane.f32.xlu1 %v3006_v54 }
 0xc17   : > { %v4675_v1 = vpop.eup %4674 }
 0xc18   : > { %v3009_v44 = vsel %vm1634_vm6, %v4675_v1, 0.0 }
 0xc19   : > { %3010 = vadd.xlane.f32.xlu0 %v3009_v44 }
 0xc26   : > { %3120 = vrot.lane.b32.xlu1 %v5685_v38, %s4940_s13 }
 0xc2a   : > { %3168 = vrot.lane.b32.xlu1 %v5695_v34, %s4940_s13 }
 0xc2e   : > { %4523 = vrot.lane.b32.xlu1 %v4522_v20, %s4940_s13 }
 0xc2f   : > { %3072 = vrot.lane.b32.xlu0 %v5605_v46, %s4940_s13 }
 0xc32   : > { %4533 = vrot.lane.b32.xlu1 %v4532_v47, %s4939_s26 }
 0xc33   : > { %4518 = vrot.lane.b32.xlu0 %v4517_v58, %s4940_s13  ;;  %s3910_s13 = sshll.u32 %s5272_s29, 4 }
 0xc34   : > { %s706_s27 = scalar_lea.vmem [#allocation12], %s3910_s13 }
 0xc37   : > { %4528 = vrot.lane.b32.xlu0 %v4527_v7, %s4939_s26 }
 0xc8f   : > { %v3005_v38 = vpop.xlane.xlu0 %3004 }
 0xc9a   : > { %v3002_v34 = vpop.xlane.xlu1 %3001 }
 0xc9b   : > { %4676 = vrcp.f32 %v3002_v34 }
 0xc9c   : > { %4678 = vrcp.f32 %v3005_v38 }
 0xca2   : > { %v3008_v61 = vpop.xlane.xlu1 %3007 }
 0xca3   : > { %4680 = vrcp.f32 %v3008_v61 }
 0xca5   : > { %v4677_v5 = vpop.eup %4676 }
 0xca6   : > { %v4679_v46 = vpop.eup %4678  ;;  %v3016_v20 = vmul.f32 %v4677_v5, %v4671_v18  ;;  %v3121_v21 = vpop.permute.xlu1 %3120 }
 0xca7   : > { %v3011_v11 = vpop.xlane.xlu0 %3010  ;;  %v3017_v13 = vmul.f32 %v4679_v46, %v4669_v9  ;;  %v3126_v53 = vsel %vm1690_vm2, %v3121_v21, 0 }
 0xca8   : > { %4682 = vrcp.f32 %v3011_v11  ;;  %v3020_v30 = vpack.c.bf16 %v3016_v20, %v3016_v20 }
 0xca9   : > { %v3021_v47 = vpack.c.bf16 %v3017_v13, %v3017_v13 }
 0xcaa   : > { %4316 = vmatmul.mubr.msk.bf16.vlgmr.msra.gmra.mrb[56].mxu1 %vm1634_vm6, %v3020_v30  ;;  %v3169_v6 = vpop.permute.xlu1 %3168 }
 0xcab   : > { %v3073_v58 = vpop.permute.xlu0 %3072  ;;  %4326 = vmatpush3.bf16.msra.mxu1 %v3126_v53  ;;  %4327 = vmatprep.mubr.msk.bf16.mxu1 %vm4937_vm0, %v4936_v63  ;;  %v3174_v42 = vsel %vm1690_vm2, %v3169_v6, 0 }
 0xcac   : > { %v3078_v52 = vsel %vm1690_vm2, %v3073_v58, 0  ;;  %4337 = vmatprep.subr.bf16.mxu1 %v4580_v22 }
 0xcad   : > { %4320 = vmatpush3.bf16.msra.mxu0 %v3078_v52  ;;  %v4681_v7 = vpop.eup %4680 }
 0xcae   : > { %4331 = vmatprep.subr.bf16.mxu0 %v4936_v63  ;;  %v3018_v56 = vmul.f32 %v4681_v7, %v4673_v23  ;;  %v4524_v10 = vpop.permute.xlu1 %4523 }
 0xcaf   : > { %v4519_v4 = vpop.permute.xlu0 %4518  ;;  %v4526_v21 = vunpack.i.h.bf16 %v4524_v10  ;;  %v4525_v11 = vunpack.i.l.bf16 %v4524_v10  ;;  %v4589_v10 = vld [vmem:[#allocation9 + $0x8] sm:$0xff]  }
 0xcb0   : > { %4322 = vmatmul.mubr.msk.bf16.vlgmr.msra.gmra.mrb[68].mxu0 %vm1634_vm6, %v3021_v47  ;;  %v3022_v19 = vpack.c.bf16 %v3018_v56, %v3018_v56  ;;  %v4521_v12 = vunpack.i.h.bf16 %v4519_v4  ;;  %v4520_v17 = vunpack.i.l.bf16 %v4519_v4 }
 0xcb1   : > { %4332 = vmatpush3.bf16.msra.mxu0 %v3174_v42  ;;  %4333 = vmatprep.mubr.msk.bf16.mxu0 %vm4937_vm0, %v4936_v63  ;;  %v4582_v63 = vld [vmem:[%s6130_s8 + $0x10] sm:$0xff]   ;;  %v3266_v53 = vsel %vm1417_vm1, %v5735_v14, %v4525_v11 }
 0xcb2   : > { %v4683_v55 = vpop.eup %4682  ;;  %4328 = vmatmul.mubr.msk.bf16.vlgmr.msra.gmra.mrb[60].mxu1 %vm1634_vm6, %v3022_v19  ;;  %v3265_v23 = vsel %vm1417_vm1, %v5731_v0, %v4521_v12  ;;  %v3264_v54 = vsel %vm1417_vm1, %v5729_v29, %v4520_v17  ;;  %v4534_v61 = vpop.permute.xlu1 %4533  ;;  %v3267_v29 = vsel %vm1417_vm1, %v5733_v48, %v4526_v21  ;;  %v3973_v19 = vld [vmem:[%s6131_s9] ss:$0 sm:$0xff]  ;;  %v4590_v12 = vld [vmem:[#allocation9 + $0x10] sm:$0xff]   ;;  %v4591_v17 = vld [vmem:[#allocation9 + $0x18] sm:$0xff]  }
 0xcb3   : > { %v3019_v16 = vmul.f32 %v4683_v55, %v4675_v1  ;;  %4338 = vmatpush3.bf16.msra.mxu1 %v4580_v22  ;;  %v4529_v8 = vpop.permute.xlu0 %4528  ;;  %v4536_v30 = vunpack.i.h.bf16 %v4534_v61  ;;  %v4535_v13 = vunpack.i.l.bf16 %v4534_v61  ;;  %v4601_v61 = vld [vmem:[#allocation11 + $0x28] sm:$0xff]  }
 0xcb4   : > { %4339 = vmatprep.subr.bf16.mxu1 %v4581_v62  ;;  %v4531_v18 = vunpack.i.h.bf16 %v4529_v8  ;;  %v4530_v51 = vunpack.i.l.bf16 %v4529_v8 }
 0xcb5   : > { %v3023_v28 = vpack.c.bf16 %v3019_v16, %v3019_v16  ;;  %v3271_v6 = vsel %vm3268_vm12, %v3266_v53, %v4535_v13  ;;  %v3272_v7 = vsel %vm3268_vm12, %v3267_v29, %v4536_v30 }
 0xcb6   : > { %v3269_v38 = vsel %vm3268_vm12, %v3264_v54, %v4530_v51  ;;  %v3270_v34 = vsel %vm3268_vm12, %v3265_v23, %v4531_v18  ;;  %v4592_v18 = vld [vmem:[#allocation9 + $0x20] sm:$0xff]   ;;  %v4593_v51 = vld [vmem:[#allocation9 + $0x28] sm:$0xff]   ;;  %v4595_v23 = vld [vmem:[#allocation9 + $0x38] sm:$0xff]  }
 0xcb7   : > { %4340 = vmatpush3.bf16.msra.mxu1 %v4581_v62  ;;  %v4692_v62 = vld [vmem:[#allocation2] sm:$0xff] }
 0xcb8   : > { %4334 = vmatmul.mubr.msk.bf16.vlgmr.msra.gmra.mrb[72].mxu0 %vm1634_vm6, %v3023_v28  ;;  %4341 = vmatprep.subr.bf16.mxu1 %v4582_v63  ;;  %v4596_v54 = vld [vmem:[#allocation11] sm:$0xff]  }
 0xcbb   : > { %4342 = vmatpush3.bf16.msra.mxu1 %v4582_v63 }
 0xcbc   : > { %4343 = vmatprep.subr.bf16.mxu1 %v4583_v57 }
 0xcbf   : > { %4344 = vmatpush3.bf16.msra.mxu1 %v4583_v57 }
 0xcc0   : > { %4345 = vmatprep.subr.bf16.mxu1 %v4584_v32 }
 0xcc3   : > { %4346 = vmatpush3.bf16.msra.mxu1 %v4584_v32  ;;  %v4693_v32 = vld [vmem:[#allocation2 + $0x8] sm:$0xff] }
 0xcc4   : > { %4347 = vmatprep.subr.bf16.mxu1 %v4585_v31 }
 0xcc7   : > { %4348 = vmatpush3.bf16.msra.mxu1 %v4585_v31 }
 0xcc8   : > { %4349 = vmatprep.subr.bf16.mxu1 %v4586_v39 }
 0xccb   : > { %4350 = vmatpush3.bf16.msra.mxu1 %v4586_v39  ;;  %v4694_v39 = vld [vmem:[#allocation2 + $0x10] sm:$0xff] }
 0xccc   : > { %4351 = vmatprep.subr.bf16.mxu1 %v4587_v33 }
 0xccf   : > { %4352 = vmatpush3.bf16.msra.mxu1 %v4587_v33  ;;  %v4588_v33 = vld [vmem:[#allocation9] sm:$0xff]  }
 0xcd0   : > { %4357 = vmatprep.subr.bf16.mxu0 %v4588_v33  ;;  %4377 = vmatprep.subr.bf16.mxu1 %v4596_v54 }
 0xcd1   : > { %4358 = vmatpush3.bf16.msra.mxu0 %v4588_v33 }
 0xcd2   : > { %4359 = vmatprep.subr.bf16.mxu0 %v4589_v10 }
 0xcd5   : > { %4360 = vmatpush3.bf16.msra.mxu0 %v4589_v10 }
 0xcd6   : > { %4361 = vmatprep.subr.bf16.mxu0 %v4590_v12 }
 0xcd9   : > { %4362 = vmatpush3.bf16.msra.mxu0 %v4590_v12 }
 0xcda   : > { %4363 = vmatprep.subr.bf16.mxu0 %v4591_v17 }
 0xcdd   : > { %4364 = vmatpush3.bf16.msra.mxu0 %v4591_v17  ;;  %v3993_v17 = vld [vmem:[%s6199_s1] ss:$0 sm:$0xff] }
 0xcde   : > { %4365 = vmatprep.subr.bf16.mxu0 %v4592_v18 }
 0xce1   : > { %4366 = vmatpush3.bf16.msra.mxu0 %v4592_v18 }
 0xce2   : > { %4367 = vmatprep.subr.bf16.mxu0 %v4593_v51 }
 0xce5   : > { %4368 = vmatpush3.bf16.msra.mxu0 %v4593_v51 }
 0xd7d   : > { %v3066_v43 = vpop.f32.mrb[56].mxu1 }
 0xd7e   : > { %v4317_v25 = vpop.f32.mrb[57].mxu1 }
 0xd7f   : > { %v3069_v26 = vpop.f32.mrb[58].mxu1 }
 0xd80   : > { %v4318_v49 = vpop.f32.mrb[59].mxu1  ;;  %v4695_v26 = vld [vmem:[#allocation2 + $0x18] sm:$0xff] }
 0xd83   : > { %v3114_v15 = vpop.f32.mrb[68].mxu0 }
 0xd84   : > { %v4537_v50 = vpack.i.bf16 %v3114_v15, %v3066_v43  ;;  %v4323_v59 = vpop.f32.mrb[69].mxu0 }
 0xd85   : > { %v3117_v35 = vpop.f32.mrb[70].mxu0  ;;  %v3162_v2 = vpop.f32.mrb[60].mxu1 }
 0xd86   : > { %v4324_v60 = vpop.f32.mrb[71].mxu0  ;;  %4538 = vrot.lane.b32.xlu0 %v4537_v50, %s4938_s2  ;;  %v4329_v27 = vpop.f32.mrb[61].mxu1 }
 0xd87   : > { %v3165_v41 = vpop.f32.mrb[62].mxu1 }
 0xd88   : > { %v4330_v45 = vpop.f32.mrb[63].mxu1 }
 0xd8b   : > { %v3210_v40 = vpop.f32.mrb[72].mxu0 }
 0xd8c   : > { %v4542_v3 = vpack.i.bf16 %v3210_v40, %v3162_v2  ;;  %v4335_v37 = vpop.f32.mrb[73].mxu0 }
 0xd8d   : > { %v3213_v9 = vpop.f32.mrb[74].mxu0 }
 0xd8e   : > { %v4336_v36 = vpop.f32.mrb[75].mxu0  ;;  %4543 = vrot.lane.b32.xlu1 %v4542_v3, %s4938_s2  ;;  %s3744_s2 = sshll.u32 %s706_s27, 4  ;;  %s6071_s2 = int_to_ptr.vmem [resolvable:$true] %s3744_s2 }
 0xd8f   : > { %s4840_s0 = scalar_lea.vmem %s6071_s2, 256 }
 0xd90   : > { %p4841_p13 = scmp.ne.s32.totalorder %s6071_s2, %s4840_s0 }
 0xd92   : > { %p4842_p5 = pnand %p4841_p13, %p5176_p6 }
 0xd94   : > { %p4843_p9 = pneg %p4842_p5 }
 0xdf8   : > { %v4539_v24 = vpop.permute.xlu0 %4538 }
 0xdf9   : > { %v4541_v1 = vunpack.i.h.bf16 %v4539_v24  ;;  %v4540_v44 = vunpack.i.l.bf16 %v4539_v24  ;;  %v4594_v24 = vld [vmem:[#allocation9 + $0x30] sm:$0xff]  }
 0xdfa   : > { %4369 = vmatprep.subr.bf16.mxu0 %v4594_v24 }
 0xdfb   : > { %v3274_v5 = vsel %vm3273_vm13, %v3269_v38, %v4540_v44  ;;  %v3275_v46 = vsel %vm3273_vm13, %v3270_v34, %v4541_v1  ;;  %4370 = vmatpush3.bf16.msra.mxu0 %v4594_v24  ;;  %v4597_v1 = vld [vmem:[#allocation11 + $0x8] sm:$0xff]   ;;  %v4598_v44 = vld [vmem:[#allocation11 + $0x10] sm:$0xff]   ;;  %v4599_v38 = vld [vmem:[#allocation11 + $0x18] sm:$0xff]  }
 0xdfc   : > { %v3278_v20 = vpack.c.bf16 %v3275_v46, %v3274_v5  ;;  %4371 = vmatprep.subr.bf16.mxu0 %v4595_v23  ;;  %v4600_v34 = vld [vmem:[#allocation11 + $0x20] sm:$0xff]  }
 0xdfe   : > { %4353 = vmatprep.mubr.bf16.mxu1 %v3278_v20 }
 0xdff   : > { %4372 = vmatpush3.bf16.msra.mxu0 %v4595_v23 }
 0xe00   : > { %v4544_v0 = vpop.permute.xlu1 %4543 }
 0xe01   : > { %v4546_v58 = vunpack.i.h.bf16 %v4544_v0  ;;  %v4545_v52 = vunpack.i.l.bf16 %v4544_v0 }
 0xe03   : > { %v3277_v47 = vsel %vm3273_vm13, %v3272_v7, %v4546_v58  ;;  %v3276_v56 = vsel %vm3273_vm13, %v3271_v6, %v4545_v52  ;;  %v3982_v7 = vld [vmem:[%s6196_s19] ss:$0 sm:$0xff]  ;;  %s6200_s19 = sld [smem:[#allocation32_spill]] }
 0xe04   : > { %v3279_v42 = vpack.c.bf16 %v3277_v47, %v3276_v56 }
 0xe06   : > { %4354 = vmatmul.mubr.bf16.vlgmr.msra.gmra.mrb[64].mxu1 %v3279_v42 }
 0xe07   : > { %4378 = vmatpush3.bf16.msra.mxu1 %v4596_v54 }
 0xe08   : > { %4379 = vmatprep.subr.bf16.mxu1 %v4597_v1 }
 0xe09   : > { %s6076_s12 = scalar_lea.hbm %s6200_s19, %s4009_s24 }
 0xe0b   : > { %4380 = vmatpush3.bf16.msra.mxu1 %v4597_v1 }
 0xe0c   : > { %4381 = vmatprep.subr.bf16.mxu1 %v4598_v44 }
 0xe0f   : > { %4382 = vmatpush3.bf16.msra.mxu1 %v4598_v44 }
 0xe10   : > { %4383 = vmatprep.subr.bf16.mxu1 %v4599_v38 }
 0xe13   : > { %4384 = vmatpush3.bf16.msra.mxu1 %v4599_v38 }
 0xe14   : > { %4385 = vmatprep.subr.bf16.mxu1 %v4600_v34 }
 0xe17   : > { %4386 = vmatpush3.bf16.msra.mxu1 %v4600_v34 }
 0xe18   : > { %4387 = vmatprep.subr.bf16.mxu1 %v4601_v61 }
 0xe1b   : > { %4388 = vmatpush3.bf16.msra.mxu1 %v4601_v61 }
 0xed9   : > { %v4355_v48 = vpop.f32.mrb[64].mxu1 }
 0xeda   : > { %v3385_v55 = vpop.f32.mrb[65].mxu1  ;;  %v3394_v22 = vadd.f32 %v4355_v48, %v3973_v19 }
 0xedb   : > { %v3386_v16 = vadd.f32 %v3973_v19, %v3385_v55  ;;  %v4356_v14 = vpop.f32.mrb[66].mxu1  ;;  %v3983_v55 = vld [vmem:[%s6197_s17] ss:$0 sm:$0xff]  ;;  %s4941_s17 = smov [#allocation12]  }
 0xedc   : > { %v3388_v28 = vpop.f32.mrb[67].mxu1  ;;  %v6022_v43 = vadd.f32 %v4694_v39, %v3394_v22  ;;  %v3397_v25 = vadd.f32 %v4356_v14, %v3973_v19  ;;  %s4844_s18 = sshll.u32 %s4941_s17, 4  ;;  %s4845_s18 = int_to_ptr.vmem [resolvable:$false] %s4844_s18 }
 0xedd   : > { %v6017_v63 = vadd.f32 %v4692_v62, %v3386_v16  ;;  %v3389_v57 = vadd.f32 %v3973_v19, %v3388_v28  ;;  %s4846_s23 = scalar_lea.vmem %s4845_s18, 512  ;;  %p4847_p2 = scmp.lt.s32.totalorder %s6071_s2, %s4845_s18 }
 0xede   : > { %v6026_v49 = vadd.f32 %v4695_v26, %v3397_v25  ;;  %p4848_p1 = scmp.lt.s32.totalorder %s4846_s23, %s4840_s0 }
 0xedf   : > { %v6019_v31 = vadd.f32 %v4693_v32, %v3389_v57  ;;  %3406 = vadd.xlane.f32.xlu0 %v6017_v63 }
 0xee0   : > { %p4849_p4 = por %p4848_p1, %p4847_p2 }
 0xee1   : > { %3408 = vadd.xlane.f32.xlu1 %v6019_v31 }
 0xee2   : > { %p4850_p0 = pnand %p4849_p4, %p4843_p9 }
 0xee3   : > { %3410 = vadd.xlane.f32.xlu0 %v6022_v43 }
 0xee7   : > { %3412 = vadd.xlane.f32.xlu0 %v6026_v49 }
 0xf6c   : > { %v3407_v15 = vpop.xlane.xlu0 %3406 }
 0xf6d   : > { %v3414_v50 = vmul.f32 0.0078125, %v3407_v15 }
 0xf6e   : > { %v3409_v59 = vpop.xlane.xlu1 %3408 }
 0xf6f   : > { %v6030_v35 = vsub.f32 %v6017_v63, %v3414_v50  ;;  %v3415_v60 = vmul.f32 0.0078125, %v3409_v59  ;;  %v4602_v50 = vld [vmem:[#allocation11 + $0x30] sm:$0xff]   ;;  %v4603_v59 = vld [vmem:[#allocation11 + $0x38] sm:$0xff]  }
 0xf70   : > { %v3411_v2 = vpop.xlane.xlu0 %3410  ;;  %4389 = vmatprep.subr.bf16.mxu1 %v4602_v50 }
 0xf71   : > { %v6033_v27 = vsub.f32 %v6019_v31, %v3415_v60  ;;  %v3416_v41 = vmul.f32 0.0078125, %v3411_v2  ;;  %v3422_v45 = vmul.f32 %v6030_v35, %v6030_v35  ;;  %4390 = vmatpush3.bf16.msra.mxu1 %v4602_v50 }
 0xf72   : > { %4391 = vmatprep.subr.bf16.mxu1 %v4603_v59 }
 0xf73   : > { %v6038_v40 = vsub.f32 %v6022_v43, %v3416_v41  ;;  %3426 = vadd.xlane.f32.xlu1 %v3422_v45  ;;  %v3423_v3 = vmul.f32 %v6033_v27, %v6033_v27 }
 0xf74   : > { %v3413_v37 = vpop.xlane.xlu0 %3412 }
 0xf75   : > { %v3417_v9 = vmul.f32 0.0078125, %v3413_v37  ;;  %3428 = vadd.xlane.f32.xlu0 %v3423_v3  ;;  %v3424_v36 = vmul.f32 %v6038_v40, %v6038_v40  ;;  %4392 = vmatpush3.bf16.msra.mxu1 %v4603_v59 }
 0xf77   : > { %v6045_v4 = vsub.f32 %v6026_v49, %v3417_v9  ;;  %3430 = vadd.xlane.f32.xlu1 %v3424_v36 }
 0xf79   : > { %v3425_v8 = vmul.f32 %v6045_v4, %v6045_v4 }
 0xf7b   : > { %3432 = vadd.xlane.f32.xlu0 %v3425_v8 }
0x1000   : > { %v3427_v5 = vpop.xlane.xlu1 %3426 }
0x1001   : > { %v3434_v46 = vmul.f32 0.0078125, %v3427_v5 }
0x1002   : > { %v3429_v20 = vpop.xlane.xlu0 %3428 }
0x1003   : > { %v3438_v21 = vadd.f32 1e-05, %v3434_v46  ;;  %v3435_v11 = vmul.f32 0.0078125, %v3429_v20 }
0x1004   : > { %v3431_v30 = vpop.xlane.xlu1 %3430 }
0x1005   : > { %4684 = vrsqrt.f32 %v3438_v21  ;;  %v3439_v13 = vadd.f32 1e-05, %v3435_v11  ;;  %v3436_v0 = vmul.f32 0.0078125, %v3431_v30 }
0x1007   : > { %4686 = vrsqrt.f32 %v3439_v13  ;;  %v3440_v29 = vadd.f32 1e-05, %v3436_v0 }
0x1008   : > { %v3433_v53 = vpop.xlane.xlu0 %3432 }
0x1009   : > { %4688 = vrsqrt.f32 %v3440_v29  ;;  %v3437_v58 = vmul.f32 0.0078125, %v3433_v53 }
0x100b   : > { %v3441_v52 = vadd.f32 1e-05, %v3437_v58 }
0x100d   : > { %4690 = vrsqrt.f32 %v3441_v52 }
0x100f   : > { %v4685_v6 = vpop.eup %4684 }
0x1010   : > { %v3446_v47 = vmul.f32 %v4685_v6, %v6030_v35  ;;  %v3984_v35 = vld [vmem:[%s6198_s15] ss:$0 sm:$0xff] }
0x1011   : > { %v4687_v56 = vpop.eup %4686 }
0x1012   : > { %v3447_v42 = vmul.f32 %v4687_v56, %v6033_v27  ;;  %v3456_v19 = vmul.f32 %v3982_v7, %v3446_v47 }
0x1013   : > { %v4689_v48 = vpop.eup %4688 }
0x1014   : > { %v3448_v16 = vmul.f32 %v4689_v48, %v6038_v40  ;;  %v3457_v14 = vmul.f32 %v3982_v7, %v3447_v42  ;;  %v3466_v28 = vadd.f32 %v3983_v55, %v3456_v19 }
0x1016   : > { %v3467_v22 = vadd.f32 %v3983_v55, %v3457_v14  ;;  %v3458_v39 = vmul.f32 %v3982_v7, %v3448_v16 }
0x1017   : > { %v4691_v62 = vpop.eup %4690 }
0x1018   : > { %v3449_v57 = vmul.f32 %v4691_v62, %v6045_v4  ;;  %v3470_v32 = vpack.c.bf16 %v3467_v22, %v3466_v28  ;;  %v3468_v26 = vadd.f32 %v3983_v55, %v3458_v39 }
0x101a   : > { %4373 = vmatprep.mubr.bf16.mxu0 %v3470_v32  ;;  %v3459_v25 = vmul.f32 %v3982_v7, %v3449_v57 }
0x101c   : > { %v3469_v33 = vadd.f32 %v3983_v55, %v3459_v25 }
0x101e   : > { %v3471_v15 = vpack.c.bf16 %v3469_v33, %v3468_v26 }
0x1020   : > { %4374 = vmatmul.mubr.bf16.vlgmr.msra.gmra.mrb[76].mxu0 %v3471_v15 }
0x10f3   : > { %v4375_v60 = vpop.f32.mrb[76].mxu0 }
0x10f4   : > { %v3586_v2 = vadd.f32 %v4375_v60, %v3984_v35  ;;  %v3577_v27 = vpop.f32.mrb[77].mxu0 }
0x10f5   : > { %v3578_v41 = vadd.f32 %v3984_v35, %v3577_v27  ;;  %v4376_v45 = vpop.f32.mrb[78].mxu0 }
0x10f6   : > { %v3589_v40 = vadd.f32 %v4376_v45, %v3984_v35  ;;  %v3580_v3 = vpop.f32.mrb[79].mxu0  ;;  %v3594_v9 = vmax.f32 %v3586_v2, 0.0 }
0x10f7   : > { %v3581_v37 = vadd.f32 %v3984_v35, %v3580_v3  ;;  %v3592_v4 = vmax.f32 %v3578_v41, 0.0 }
0x10f8   : > { %v3595_v36 = vmax.f32 %v3589_v40, 0.0 }
0x10f9   : > { %v3593_v8 = vmax.f32 %v3581_v37, 0.0 }
0x10fa   : > { %v3597_v10 = vpack.c.bf16 %v3595_v36, %v3594_v9 }
0x10fb   : > { %v3596_v12 = vpack.c.bf16 %v3593_v8, %v3592_v4 }
0x10fd   : > { %4393 = vmatprep.mubr.bf16.mxu1 %v3596_v12 }
0x10fe   : > { %4394 = vmatmul.mubr.bf16.vlgmr.msra.gmra.mrb[68].mxu1 %v3597_v10 }
0x11d1   : > { %v4395_v18 = vpop.f32.mrb[68].mxu1 }
0x11d2   : > { %v3712_v51 = vadd.f32 %v4395_v18, %v3993_v17  ;;  %v3703_v24 = vpop.f32.mrb[69].mxu1 }
0x11d3   : > { %v3704_v23 = vadd.f32 %v3993_v17, %v3703_v24  ;;  %v4396_v54 = vpop.f32.mrb[70].mxu1 }
0x11d4   : > { %v3715_v1 = vadd.f32 %v4396_v54, %v3993_v17  ;;  %v3706_v44 = vpop.f32.mrb[71].mxu1  ;;  %v3720_v34 = vadd.f32 %v3712_v51, %v6022_v43 }
0x11d5   : > { %v3707_v38 = vadd.f32 %v3993_v17, %v3706_v44  ;;  %v3718_v5 = vadd.f32 %v3704_v23, %v6017_v63 }
0x11d6   : > { %v3721_v61 = vadd.f32 %v3715_v1, %v6026_v49 }
0x11d7   : > { %v3719_v46 = vadd.f32 %v3707_v38, %v6019_v31 }
0x11d8   : > { %v4018_v20 = vpack.c.bf16 %v3721_v61, %v3720_v34 }
0x11d9   : > { %v4013_v21 = vpack.c.bf16 %v3719_v46, %v3718_v5 }
0x11da   : > { %4020 = vst [vmem:[%s706_s27 + $0x8] sm:$0xff] %v4018_v20  }
0x11db   : > { %4014 = vst [vmem:[%s706_s27] sm:$0xff] %v4013_v21  }
0x11dc   : > { %4853 = shalt.err (!%p4850_p0)
}
0x11dd   : > { %s4854_s15 = scalar_lea.hbm %s6076_s12, 256  ;;  %s4858_s1 = scalar_lea.hbm %s6200_s19, 512 }
0x11de   : > { %p4855_p12 = scmp.ne.s32.totalorder %s6076_s12, %s4854_s15  ;;  %p4859_p3 = scmp.lt.u32.totalorder %s6076_s12, %s6200_s19 }
0x11df   : > { %p4860_p7 = scmp.lt.u32.totalorder %s4858_s1, %s4854_s15  ;;  %p4862_p13 = scmp.lt.u32.totalorder %s4854_s15, %s6076_s12 }
0x11e0   : > { %p4856_p11 = pnand %p4855_p12, %p5176_p6 }
0x11e1   : > { %p4861_p10 = por %p4860_p7, %p4859_p3 }
0x11e2   : > { %p4857_p8 = pneg %p4856_p11 }
0x11e3   : > { %p4863_p5 = por %p4862_p13, %p4861_p10 }
0x11e5   : > { %p4864_p9 = pnand %p4863_p5, %p4857_p8 }
0x11e7   : > { %4867 = shalt.err (!%p4864_p9)
}
0x11e8   : > { %s4942_s24 = smov 4  }
0x11e9   : > { %4413 = dma.vmem_to_hbm [thread:$0]  (%p5176_p6), %s6071_s2, 256, %s6076_s12, %s3731_s14, %s4939_s26, %s4939_s26, %s4942_s24  }
0x11ea PF: > { %s6201_s22 = sld [smem:[#allocation18_spill]]  ;;  %s6202_s16 = sld [smem:[#allocation20_spill]] }
0x11eb   : > { %p6204_p1 = scmp.ge.s32.totalorder %s4918_s30, 2 }
0x11f0   : > { %s3759_s0 = sand.u32 1, %s6201_s22   ;;  %p6203_p2 = scmp.ne.s32.totalorder %s6202_s16, 0 }
0x11f1   : > { %s3760_s17 = scalar_lea.sflag [#allocation5], %s3759_s0 }
0x11f2   : > { %p4433_p4 = pnand %p6204_p1, %p6203_p2 }
0x11f4   : > { %4901 = dma.done.wait (!%p4433_p4), %s3760_s17, 256  }
0x11f5   : > { %4903 = vsyncadd (!%p4433_p4), %s3760_s17, 4294967040  ;;  %s6205_s20 = sld [smem:[#allocation19_spill]]  ;;  %s6206_s29 = sld [smem:[#allocation21_spill]] }
0x11f6   : > { %p35_p0 = scmp.ge.s32.totalorder %s5162_s4, 4   ;;  %s6207_s27 = smov %s4910_s28 }
0x11f7   : > { %s6209_s30 = smov %s5162_s4 }
0x11f8   :  { %37 = sbr.rel (!%p35_p0) target bundleno = 20 (0x14), region = 168 }
0x11fb   : > { %s6208_s28 = smov %s6205_s20 }
0x11ff   :  { %3765 = vsyncpa [#allocation4], 1 }
0x1200   :  { %3767 = vsyncpa [#allocation4 + $0x1], 1 }
0x1201   :  { %3768 = vsyncpa [#allocation7], 1 }
0x1202   :  { %3770 = vsyncpa [#allocation7 + $0x1], 1 }
0x1203   :  { %3771 = vsyncpa [#allocation10], 1 }
0x1204   :  { %3772 = vsyncpa [#allocation5], 1 }
0x1205   :  { %3774 = vsyncpa [#allocation5 + $0x1], 1 }

</bundles_post_ra>
